<compile_context>
chip_gen: v6e
topology: v6e:2x2x1
jax: 0.10.0
libtpu: 0.0.40
codegen_flags: <defaults>
</compile_context>

<pallas_src>
import functools

import jax
import jax.numpy as jnp
from jax import lax
from jax.experimental import pallas as pl
from jax.experimental.pallas import tpu as pltpu


# --------------------------------------------------------------------------- kernel
def _fused_forward_kernel(idf_ref, idb_ref, m2_ref, pa_ref,
                          mcat_ref, bs_ref, whh_s_ref,
                          wdf_ref, wdb_ref, bd_ref, whh_d_ref,
                          w1_ref, b1_ref, w2_ref, b2_ref, w3_ref, b3_ref,
                          o_ref, docf_scr, docb_scr,
                          *, T, B, H, V):
    """Fused forward pass.

    idf/idb : (T*B, 1) int32   token id at time t / time T-1-t (time-major rows)
    m2      : (T, B, 2H) f32   validity mask, [fwd | bwd] lane layout
    pa      : (T, 1, 2H) f32   0 where t < max(lengths), -inf otherwise (max-pool)
    mcat    : (2V, 8H) bf16    embedding table folded into input projection
    bs, bd  : (1, 8H) f32      fused (b_ih + b_hh) biases, interleaved gate layout
    whh_*   : (2H, 8H) bf16    block-diagonal recurrent weights
    w1..w3  : classifier weights (bf16) / biases (f32); w3/b3 lane-padded to 128
    o_ref   : (B, 128) f32     lane-padded logits
    """
    H2 = 2 * H
    TB = T * B

    # ---- hoisted: embedding lookup + input projection, both directions, all steps.
    # One-hot over a doubled vocab: cols [0,V) select the fwd token (time t),
    # cols [V,2V) select the bwd token (time T-1-t). Single MXU matmul, off chain.
    lane = lax.broadcasted_iota(jnp.int32, (TB, 2 * V), 1)
    onehot = jnp.logical_or(lane == idf_ref[...], lane == idb_ref[...] + V)
    onehot = onehot.astype(jnp.float32).astype(jnp.bfloat16)
    gx = jnp.dot(onehot, mcat_ref[...],
                 preferred_element_type=jnp.float32) + bs_ref[...]      # (T*B, 8H)

    whh_s = whh_s_ref[...]                                              # (2H, 8H) bf16

    # ---- sentence BiLSTM: fused [fwd|bwd] state, masked running max over time ----
    h = jnp.zeros((B, H2), jnp.float32)
    c = jnp.zeros((B, H2), jnp.float32)
    mx = jnp.full((B, H2), -jnp.inf, jnp.float32)
    for t in range(T):                                   # T static -> straight-line
        gates = gx[t * B:(t + 1) * B, :] + jnp.dot(
            h.astype(jnp.bfloat16), whh_s, preferred_element_type=jnp.float32)
        sig = jax.nn.sigmoid(gates[:, :3 * H2])          # one wide sigmoid (i,f,o)
        i_g = sig[:, 0:H2]
        f_g = sig[:, H2:2 * H2]
        o_g = sig[:, 2 * H2:3 * H2]
        g_g = jnp.tanh(gates[:, 3 * H2:])                # one tanh (g)
        c_new = f_g * c + i_g * g_g
        h_new = o_g * jnp.tanh(c_new)
        m = m2_ref[t]                                    # (B, 2H)
        c = c + m * (c_new - c)                          # freeze state at padded steps
        h = h + m * (h_new - h)
        mx = jnp.maximum(mx, h_new * m + pa_ref[t])      # masked max, truncated to max_len
    sent = mx                                            # (B, 2H) sentence encodings

    # ---- document BiLSTM (batch 1, length B, no padding) ----
    sent_bf = sent.astype(jnp.bfloat16)
    gdf = jnp.dot(sent_bf, wdf_ref[...],
                  preferred_element_type=jnp.float32) + bd_ref[...]     # fwd cols + bias
    gdb = jnp.dot(sent_bf, wdb_ref[...],
                  preferred_element_type=jnp.float32)                   # bwd cols
    whh_d = whh_d_ref[...]

    hd = jnp.zeros((1, H2), jnp.float32)
    cd = jnp.zeros((1, H2), jnp.float32)
    for s in range(B):
        gates = gdf[s:s + 1, :] + gdb[B - 1 - s:B - s, :] + jnp.dot(
            hd.astype(jnp.bfloat16), whh_d, preferred_element_type=jnp.float32)
        sig = jax.nn.sigmoid(gates[:, :3 * H2])
        i_g = sig[:, 0:H2]
        f_g = sig[:, H2:2 * H2]
        o_g = sig[:, 2 * H2:3 * H2]
        g_g = jnp.tanh(gates[:, 3 * H2:])
        cd = f_g * cd + i_g * g_g
        hd = o_g * jnp.tanh(cd)
        docf_scr[s:s + 1, :] = hd[:, :H]                 # fwd output at position s
        docb_scr[B - 1 - s:B - s, :] = hd[:, H:]         # bwd output at position B-1-s

    doc = jnp.concatenate([docf_scr[...], docb_scr[...]], axis=1)       # (B, 2H)

    # ---- classifier MLP (Dropout == identity in eval mode) ----
    h1 = jnp.maximum(jnp.dot(doc.astype(jnp.bfloat16), w1_ref[...],
                             preferred_element_type=jnp.float32) + b1_ref[...], 0.0)
    h2 = jnp.maximum(jnp.dot(h1.astype(jnp.bfloat16), w2_ref[...],
                             preferred_element_type=jnp.float32) + b2_ref[...], 0.0)
    o_ref[...] = jnp.dot(h2.astype(jnp.bfloat16), w3_ref[...],
                         preferred_element_type=jnp.float32) + b3_ref[...]


# --------------------------------------------------------------------------- weight prep
def _reorder_ifog(w):
    """PyTorch LSTM gate order (i, f, g, o) -> (i, f, o, g) along axis 0."""
    i, f, g, o = jnp.split(w, 4, axis=0)
    return jnp.concatenate([i, f, o, g], axis=0)


def _interleave_dirs(a, b, H):
    """(K, 4H) fwd cols + (K, 4H) bwd cols -> (K, 8H): (i_f,i_b | f_f,f_b | o_f,o_b | g_f,g_b)."""
    cols = []
    for k in range(4):
        cols.append(a[:, k * H:(k + 1) * H])
        cols.append(b[:, k * H:(k + 1) * H])
    return jnp.concatenate(cols, axis=1)


def _block_diag_hh(p, H):
    """Block-diagonal recurrent weight (2H, 8H) for the fused [fwd|bwd] state."""
    whf = _reorder_ifog(p["w_hh_f"]).T                   # (H, 4H)
    whb = _reorder_ifog(p["w_hh_b"]).T
    z = jnp.zeros((H, 4 * H), jnp.float32)
    return _interleave_dirs(jnp.concatenate([whf, z], axis=0),
                            jnp.concatenate([z, whb], axis=0), H)


def _fused_bias(p, H):
    bf = _reorder_ifog(p["b_ih_f"] + p["b_hh_f"])
    bb = _reorder_ifog(p["b_ih_b"] + p["b_hh_b"])
    return _interleave_dirs(bf[None, :], bb[None, :], H)                # (1, 8H)


# --------------------------------------------------------------------------- wrapper
@jax.jit
def bilstm_bilstm_forward(sentence, lengths, params):
    B, T = sentence.shape
    table = params["embedding"].astype(jnp.float32)
    V, E = table.shape
    pe, pd, pc = params["enc_lstm"], params["sent_lstm"], params["classifier"]
    H = pe["w_hh_f"].shape[1]            # module implicitly requires E == H
    fc_dim = pc["w1"].shape[0]
    tagset = pc["w3"].shape[0]
    n_pad = ((tagset + 127) // 128) * 128

    # token ids, time-major: fwd reads time t, bwd reads time T-1-t
    idf = sentence.T.reshape(T * B, 1).astype(jnp.int32)
    idb = sentence[:, ::-1].T.reshape(T * B, 1).astype(jnp.int32)

    # packed-sequence validity masks in [fwd | bwd] lane layout
    t_idx = jnp.arange(T, dtype=jnp.int32)
    mf = (t_idx[:, None] < lengths[None, :]).astype(jnp.float32)         # (T, B)
    mb = ((T - 1 - t_idx)[:, None] < lengths[None, :]).astype(jnp.float32)
    m2 = jnp.concatenate([jnp.broadcast_to(mf[:, :, None], (T, B, H)),
                          jnp.broadcast_to(mb[:, :, None], (T, B, H))], axis=2)

    # max-pool time mask: PyTorch truncates to max(lengths) before pooling
    max_len = jnp.max(lengths)
    paf = jnp.where(t_idx < max_len, 0.0, -jnp.inf).astype(jnp.float32)
    pab = jnp.where((T - 1 - t_idx) < max_len, 0.0, -jnp.inf).astype(jnp.float32)
    pa = jnp.concatenate([jnp.broadcast_to(paf[:, None, None], (T, 1, H)),
                          jnp.broadcast_to(pab[:, None, None], (T, 1, H))], axis=2)

    # sentence LSTM: fold embedding table into the input projection (lookup == one-hot matmul)
    wxf = _reorder_ifog(pe["w_ih_f"]).T                  # (E, 4H)
    wxb = _reorder_ifog(pe["w_ih_b"]).T
    mf_t = table @ wxf                                   # (V, 4H)
    mb_t = table @ wxb
    zv = jnp.zeros((V, 4 * H), jnp.float32)
    mcat = _interleave_dirs(jnp.concatenate([mf_t, zv], axis=0),
                            jnp.concatenate([zv, mb_t], axis=0), H)      # (2V, 8H)
    bs = _fused_bias(pe, H)
    whh_s = _block_diag_hh(pe, H)

    # document LSTM (input dim 2E == 2H)
    wdf = _reorder_ifog(pd["w_ih_f"]).T                  # (2E, 4H)
    wdb = _reorder_ifog(pd["w_ih_b"]).T
    zd = jnp.zeros_like(wdf)
    wdf_full = _interleave_dirs(wdf, zd, H)              # (2E, 8H), bwd cols zero
    wdb_full = _interleave_dirs(zd, wdb, H)              # (2E, 8H), fwd cols zero
    bd = _fused_bias(pd, H)
    whh_d = _block_diag_hh(pd, H)

    # classifier (final layer lane-padded to 128 for a dense store)
    w1 = pc["w1"].T
    w2 = pc["w2"].T
    w3p = jnp.zeros((fc_dim, n_pad), jnp.float32).at[:, :tagset].set(pc["w3"].T)
    b3p = jnp.zeros((1, n_pad), jnp.float32).at[:, :tagset].set(pc["b3"][None, :])

    bf16 = jnp.bfloat16
    kernel = functools.partial(_fused_forward_kernel, T=T, B=B, H=H, V=V)
    out = pl.pallas_call(
        kernel,
        out_shape=jax.ShapeDtypeStruct((B, n_pad), jnp.float32),
        scratch_shapes=[pltpu.VMEM((B, H), jnp.float32),     # doc fwd outputs
                        pltpu.VMEM((B, H), jnp.float32)],    # doc bwd outputs
    )(idf, idb, m2, pa,
      mcat.astype(bf16), bs, whh_s.astype(bf16),
      wdf_full.astype(bf16), wdb_full.astype(bf16), bd, whh_d.astype(bf16),
      w1.astype(bf16), pc["b1"][None, :], w2.astype(bf16), pc["b2"][None, :],
      w3p.astype(bf16), b3p)
    return out[:, :tagset]


# --------------------------------------------------------------------------- params
def init_params(key, vocab, E, H, fc_dim, tagset):
    keys = iter(jax.random.split(key, 32))

    def nrm(shape, scale=0.1):
        return scale * jax.random.normal(next(keys), shape, dtype=jnp.float32)

    def lstm_params(D):
        return {
            "w_ih_f": nrm((4 * H, D)), "w_hh_f": nrm((4 * H, H)),
            "b_ih_f": nrm((4 * H,)), "b_hh_f": nrm((4 * H,)),
            "w_ih_b": nrm((4 * H, D)), "w_hh_b": nrm((4 * H, H)),
            "b_ih_b": nrm((4 * H,)), "b_hh_b": nrm((4 * H,)),
        }

    return {
        "embedding": nrm((vocab, E), 1.0),     # stand-in for word_vec_matrix
        "enc_lstm": lstm_params(E),
        "sent_lstm": lstm_params(2 * E),
        "classifier": {
            "w1": nrm((fc_dim, 2 * H)), "b1": nrm((fc_dim,)),
            "w2": nrm((fc_dim, fc_dim)), "b2": nrm((fc_dim,)),
            "w3": nrm((tagset, fc_dim)), "b3": nrm((tagset,)),
        },
        # TODO(synk): qa_score_linear is only used by get_loss(), not forward(); omitted.
    }


if __name__ == "__main__":
    E = H = 32            # module requires hidden_dim == embedding_dim
    fc_dim = 64
    vocab = 50
    tagset = 6
    B = 8                 # number of sentences (document length)
    T = 8                 # max tokens per sentence

    key = jax.random.PRNGKey(0)
    pkey, skey = jax.random.split(key)
    params = init_params(pkey, vocab, E, H, fc_dim, tagset)

    sentence = jax.random.randint(skey, (B, T), 0, vocab, dtype=jnp.int32)
    lengths = jnp.array([8, 5, 3, 7, 8, 2, 6, 4], dtype=jnp.int32)

    out = bilstm_bilstm_forward(sentence, lengths, params)
    out = jax.block_until_ready(out)
    assert out.shape == (B, tagset) and out.dtype == jnp.float32
    print("KERNEL_OK")
</pallas_src>

<mosaic_0001>
module attributes {stable_mosaic.version = 11 : i64} {
  func.func @_fused_forward_kernel(%arg0: memref<64x1xi32, #tpu.memory_space<vmem>>, %arg1: memref<64x1xi32, #tpu.memory_space<vmem>>, %arg2: memref<8x8x64xf32, #tpu.memory_space<vmem>>, %arg3: memref<8x1x64xf32, #tpu.memory_space<vmem>>, %arg4: memref<100x256xbf16, #tpu.memory_space<vmem>>, %arg5: memref<1x256xf32, #tpu.memory_space<vmem>>, %arg6: memref<64x256xbf16, #tpu.memory_space<vmem>>, %arg7: memref<64x256xbf16, #tpu.memory_space<vmem>>, %arg8: memref<64x256xbf16, #tpu.memory_space<vmem>>, %arg9: memref<1x256xf32, #tpu.memory_space<vmem>>, %arg10: memref<64x256xbf16, #tpu.memory_space<vmem>>, %arg11: memref<64x64xbf16, #tpu.memory_space<vmem>>, %arg12: memref<1x64xf32, #tpu.memory_space<vmem>>, %arg13: memref<64x64xbf16, #tpu.memory_space<vmem>>, %arg14: memref<1x64xf32, #tpu.memory_space<vmem>>, %arg15: memref<64x128xbf16, #tpu.memory_space<vmem>>, %arg16: memref<1x128xf32, #tpu.memory_space<vmem>>, %arg17: memref<8x128xf32, #tpu.memory_space<vmem>>, %arg18: memref<8x32xf32, #tpu.memory_space<vmem>>, %arg19: memref<8x32xf32, #tpu.memory_space<vmem>>) attributes {dimension_semantics = [], scalar_prefetch = 0 : i64, scratch_operands = 2 : i64, tpu.core_type = #tpu.core_type<tc>} {
    %0 = tpu.iota {dimensions = array<i32: 1>} : vector<64x100xi32>
    %c0 = arith.constant 0 : index
    %c0_0 = arith.constant 0 : index
    %1 = vector.load %arg0[%c0, %c0_0] : memref<64x1xi32, #tpu.memory_space<vmem>>, vector<64x1xi32>
    %2 = vector.broadcast %1 : vector<64x1xi32> to vector<64x100xi32>
    %3 = arith.cmpi eq, %0, %2 : vector<64x100xi32>
    %c0_1 = arith.constant 0 : index
    %c0_2 = arith.constant 0 : index
    %4 = vector.load %arg1[%c0_1, %c0_2] : memref<64x1xi32, #tpu.memory_space<vmem>>, vector<64x1xi32>
    %c50_i32 = arith.constant 50 : i32
    %5 = vector.broadcast %c50_i32 : i32 to vector<64x1xi32>
    %6 = arith.addi %4, %5 : vector<64x1xi32>
    %7 = vector.broadcast %6 : vector<64x1xi32> to vector<64x100xi32>
    %8 = arith.cmpi eq, %0, %7 : vector<64x100xi32>
    %9 = arith.ori %3, %8 : vector<64x100xi1>
    %10 = arith.extui %9 : vector<64x100xi1> to vector<64x100xi32>
    %11 = arith.sitofp %10 : vector<64x100xi32> to vector<64x100xf32>
    %12 = arith.truncf %11 : vector<64x100xf32> to vector<64x100xbf16>
    %c0_3 = arith.constant 0 : index
    %c0_4 = arith.constant 0 : index
    %13 = vector.load %arg4[%c0_3, %c0_4] : memref<100x256xbf16, #tpu.memory_space<vmem>>, vector<100x256xbf16>
    %cst = arith.constant dense<0.000000e+00> : vector<64x256xf32>
    %14 = tpu.matmul %12, %13, %cst {dimension_numbers = #tpu.dot_dimension_numbers<[1], [0], [0], [1], [0, 0, 1, 1], [], []>} : vector<64x100xbf16>, vector<100x256xbf16>, vector<64x256xf32> -> vector<64x256xf32>
    %c0_5 = arith.constant 0 : index
    %c0_6 = arith.constant 0 : index
    %15 = vector.load %arg5[%c0_5, %c0_6] : memref<1x256xf32, #tpu.memory_space<vmem>>, vector<1x256xf32>
    %16 = vector.broadcast %15 : vector<1x256xf32> to vector<64x256xf32>
    %17 = arith.addf %14, %16 : vector<64x256xf32>
    %c0_7 = arith.constant 0 : index
    %c0_8 = arith.constant 0 : index
    %18 = vector.load %arg6[%c0_7, %c0_8] : memref<64x256xbf16, #tpu.memory_space<vmem>>, vector<64x256xbf16>
    %cst_9 = arith.constant 0.000000e+00 : f32
    %19 = vector.broadcast %cst_9 : f32 to vector<8x64xf32>
    %cst_10 = arith.constant 0.000000e+00 : f32
    %20 = vector.broadcast %cst_10 : f32 to vector<8x64xf32>
    %cst_11 = arith.constant 0xFF800000 : f32
    %21 = vector.broadcast %cst_11 : f32 to vector<8x64xf32>
    %22 = vector.extract_strided_slice %17 {offsets = [0, 0], sizes = [8, 256], strides = [1, 1]} : vector<64x256xf32> to vector<8x256xf32>
    %23 = arith.truncf %19 : vector<8x64xf32> to vector<8x64xbf16>
    %cst_12 = arith.constant dense<0.000000e+00> : vector<8x256xf32>
    %24 = tpu.matmul %23, %18, %cst_12 {dimension_numbers = #tpu.dot_dimension_numbers<[1], [0], [0], [1], [0, 0, 1, 1], [], []>} : vector<8x64xbf16>, vector<64x256xbf16>, vector<8x256xf32> -> vector<8x256xf32>
    %25 = arith.addf %22, %24 : vector<8x256xf32>
    %26 = vector.extract_strided_slice %25 {offsets = [0, 0], sizes = [8, 192], strides = [1, 1]} : vector<8x256xf32> to vector<8x192xf32>
    %27 = arith.negf %26 : vector<8x192xf32>
    %28 = math.exp %27 : vector<8x192xf32>
    %cst_13 = arith.constant 1.000000e+00 : f32
    %29 = vector.broadcast %cst_13 : f32 to vector<8x192xf32>
    %30 = arith.addf %29, %28 : vector<8x192xf32>
    %31 = arith.divf %29, %30 : vector<8x192xf32>
    %32 = vector.extract_strided_slice %31 {offsets = [0, 0], sizes = [8, 64], strides = [1, 1]} : vector<8x192xf32> to vector<8x64xf32>
    %33 = vector.extract_strided_slice %31 {offsets = [0, 64], sizes = [8, 64], strides = [1, 1]} : vector<8x192xf32> to vector<8x64xf32>
    %34 = vector.extract_strided_slice %31 {offsets = [0, 128], sizes = [8, 64], strides = [1, 1]} : vector<8x192xf32> to vector<8x64xf32>
    %35 = vector.extract_strided_slice %25 {offsets = [0, 192], sizes = [8, 64], strides = [1, 1]} : vector<8x256xf32> to vector<8x64xf32>
    %36 = math.tanh %35 : vector<8x64xf32>
    %37 = arith.mulf %33, %20 : vector<8x64xf32>
    %38 = arith.mulf %32, %36 : vector<8x64xf32>
    %39 = arith.addf %37, %38 : vector<8x64xf32>
    %40 = math.tanh %39 : vector<8x64xf32>
    %41 = arith.mulf %34, %40 : vector<8x64xf32>
    %c0_14 = arith.constant 0 : index
    %c0_15 = arith.constant 0 : index
    %c0_16 = arith.constant 0 : index
    %42 = vector.load %arg2[%c0_14, %c0_15, %c0_16] : memref<8x8x64xf32, #tpu.memory_space<vmem>>, vector<1x8x64xf32>
    %43 = vector.shape_cast %42 : vector<1x8x64xf32> to vector<8x64xf32>
    %44 = arith.subf %39, %20 : vector<8x64xf32>
    %45 = arith.mulf %43, %44 : vector<8x64xf32>
    %46 = arith.addf %20, %45 : vector<8x64xf32>
    %47 = arith.subf %41, %19 : vector<8x64xf32>
    %48 = arith.mulf %43, %47 : vector<8x64xf32>
    %49 = arith.addf %19, %48 : vector<8x64xf32>
    %50 = arith.mulf %41, %43 : vector<8x64xf32>
    %c0_17 = arith.constant 0 : index
    %c0_18 = arith.constant 0 : index
    %c0_19 = arith.constant 0 : index
    %51 = vector.load %arg3[%c0_17, %c0_18, %c0_19] : memref<8x1x64xf32, #tpu.memory_space<vmem>>, vector<1x1x64xf32>
    %52 = vector.shape_cast %51 : vector<1x1x64xf32> to vector<1x64xf32>
    %53 = vector.broadcast %52 : vector<1x64xf32> to vector<8x64xf32>
    %54 = arith.addf %50, %53 : vector<8x64xf32>
    %55 = arith.maximumf %21, %54 : vector<8x64xf32>
    %56 = vector.extract_strided_slice %17 {offsets = [8, 0], sizes = [8, 256], strides = [1, 1]} : vector<64x256xf32> to vector<8x256xf32>
    %57 = arith.truncf %49 : vector<8x64xf32> to vector<8x64xbf16>
    %cst_20 = arith.constant dense<0.000000e+00> : vector<8x256xf32>
    %58 = tpu.matmul %57, %18, %cst_20 {dimension_numbers = #tpu.dot_dimension_numbers<[1], [0], [0], [1], [0, 0, 1, 1], [], []>} : vector<8x64xbf16>, vector<64x256xbf16>, vector<8x256xf32> -> vector<8x256xf32>
    %59 = arith.addf %56, %58 : vector<8x256xf32>
    %60 = vector.extract_strided_slice %59 {offsets = [0, 0], sizes = [8, 192], strides = [1, 1]} : vector<8x256xf32> to vector<8x192xf32>
    %61 = arith.negf %60 : vector<8x192xf32>
    %62 = math.exp %61 : vector<8x192xf32>
    %cst_21 = arith.constant 1.000000e+00 : f32
    %63 = vector.broadcast %cst_21 : f32 to vector<8x192xf32>
    %64 = arith.addf %63, %62 : vector<8x192xf32>
    %65 = arith.divf %63, %64 : vector<8x192xf32>
    %66 = vector.extract_strided_slice %65 {offsets = [0, 0], sizes = [8, 64], strides = [1, 1]} : vector<8x192xf32> to vector<8x64xf32>
    %67 = vector.extract_strided_slice %65 {offsets = [0, 64], sizes = [8, 64], strides = [1, 1]} : vector<8x192xf32> to vector<8x64xf32>
    %68 = vector.extract_strided_slice %65 {offsets = [0, 128], sizes = [8, 64], strides = [1, 1]} : vector<8x192xf32> to vector<8x64xf32>
    %69 = vector.extract_strided_slice %59 {offsets = [0, 192], sizes = [8, 64], strides = [1, 1]} : vector<8x256xf32> to vector<8x64xf32>
    %70 = math.tanh %69 : vector<8x64xf32>
    %71 = arith.mulf %67, %46 : vector<8x64xf32>
    %72 = arith.mulf %66, %70 : vector<8x64xf32>
    %73 = arith.addf %71, %72 : vector<8x64xf32>
    %74 = math.tanh %73 : vector<8x64xf32>
    %75 = arith.mulf %68, %74 : vector<8x64xf32>
    %c1 = arith.constant 1 : index
    %c0_22 = arith.constant 0 : index
    %c0_23 = arith.constant 0 : index
    %76 = vector.load %arg2[%c1, %c0_22, %c0_23] : memref<8x8x64xf32, #tpu.memory_space<vmem>>, vector<1x8x64xf32>
    %77 = vector.shape_cast %76 : vector<1x8x64xf32> to vector<8x64xf32>
    %78 = arith.subf %73, %46 : vector<8x64xf32>
    %79 = arith.mulf %77, %78 : vector<8x64xf32>
    %80 = arith.addf %46, %79 : vector<8x64xf32>
    %81 = arith.subf %75, %49 : vector<8x64xf32>
    %82 = arith.mulf %77, %81 : vector<8x64xf32>
    %83 = arith.addf %49, %82 : vector<8x64xf32>
    %84 = arith.mulf %75, %77 : vector<8x64xf32>
    %c1_24 = arith.constant 1 : index
    %c0_25 = arith.constant 0 : index
    %c0_26 = arith.constant 0 : index
    %85 = vector.load %arg3[%c1_24, %c0_25, %c0_26] : memref<8x1x64xf32, #tpu.memory_space<vmem>>, vector<1x1x64xf32>
    %86 = vector.shape_cast %85 : vector<1x1x64xf32> to vector<1x64xf32>
    %87 = vector.broadcast %86 : vector<1x64xf32> to vector<8x64xf32>
    %88 = arith.addf %84, %87 : vector<8x64xf32>
    %89 = arith.maximumf %55, %88 : vector<8x64xf32>
    %90 = vector.extract_strided_slice %17 {offsets = [16, 0], sizes = [8, 256], strides = [1, 1]} : vector<64x256xf32> to vector<8x256xf32>
    %91 = arith.truncf %83 : vector<8x64xf32> to vector<8x64xbf16>
    %cst_27 = arith.constant dense<0.000000e+00> : vector<8x256xf32>
    %92 = tpu.matmul %91, %18, %cst_27 {dimension_numbers = #tpu.dot_dimension_numbers<[1], [0], [0], [1], [0, 0, 1, 1], [], []>} : vector<8x64xbf16>, vector<64x256xbf16>, vector<8x256xf32> -> vector<8x256xf32>
    %93 = arith.addf %90, %92 : vector<8x256xf32>
    %94 = vector.extract_strided_slice %93 {offsets = [0, 0], sizes = [8, 192], strides = [1, 1]} : vector<8x256xf32> to vector<8x192xf32>
    %95 = arith.negf %94 : vector<8x192xf32>
    %96 = math.exp %95 : vector<8x192xf32>
    %cst_28 = arith.constant 1.000000e+00 : f32
    %97 = vector.broadcast %cst_28 : f32 to vector<8x192xf32>
    %98 = arith.addf %97, %96 : vector<8x192xf32>
    %99 = arith.divf %97, %98 : vector<8x192xf32>
    %100 = vector.extract_strided_slice %99 {offsets = [0, 0], sizes = [8, 64], strides = [1, 1]} : vector<8x192xf32> to vector<8x64xf32>
    %101 = vector.extract_strided_slice %99 {offsets = [0, 64], sizes = [8, 64], strides = [1, 1]} : vector<8x192xf32> to vector<8x64xf32>
    %102 = vector.extract_strided_slice %99 {offsets = [0, 128], sizes = [8, 64], strides = [1, 1]} : vector<8x192xf32> to vector<8x64xf32>
    %103 = vector.extract_strided_slice %93 {offsets = [0, 192], sizes = [8, 64], strides = [1, 1]} : vector<8x256xf32> to vector<8x64xf32>
    %104 = math.tanh %103 : vector<8x64xf32>
    %105 = arith.mulf %101, %80 : vector<8x64xf32>
    %106 = arith.mulf %100, %104 : vector<8x64xf32>
    %107 = arith.addf %105, %106 : vector<8x64xf32>
    %108 = math.tanh %107 : vector<8x64xf32>
    %109 = arith.mulf %102, %108 : vector<8x64xf32>
    %c2 = arith.constant 2 : index
    %c0_29 = arith.constant 0 : index
    %c0_30 = arith.constant 0 : index
    %110 = vector.load %arg2[%c2, %c0_29, %c0_30] : memref<8x8x64xf32, #tpu.memory_space<vmem>>, vector<1x8x64xf32>
    %111 = vector.shape_cast %110 : vector<1x8x64xf32> to vector<8x64xf32>
    %112 = arith.subf %107, %80 : vector<8x64xf32>
    %113 = arith.mulf %111, %112 : vector<8x64xf32>
    %114 = arith.addf %80, %113 : vector<8x64xf32>
    %115 = arith.subf %109, %83 : vector<8x64xf32>
    %116 = arith.mulf %111, %115 : vector<8x64xf32>
    %117 = arith.addf %83, %116 : vector<8x64xf32>
    %118 = arith.mulf %109, %111 : vector<8x64xf32>
    %c2_31 = arith.constant 2 : index
    %c0_32 = arith.constant 0 : index
    %c0_33 = arith.constant 0 : index
    %119 = vector.load %arg3[%c2_31, %c0_32, %c0_33] : memref<8x1x64xf32, #tpu.memory_space<vmem>>, vector<1x1x64xf32>
    %120 = vector.shape_cast %119 : vector<1x1x64xf32> to vector<1x64xf32>
    %121 = vector.broadcast %120 : vector<1x64xf32> to vector<8x64xf32>
    %122 = arith.addf %118, %121 : vector<8x64xf32>
    %123 = arith.maximumf %89, %122 : vector<8x64xf32>
    %124 = vector.extract_strided_slice %17 {offsets = [24, 0], sizes = [8, 256], strides = [1, 1]} : vector<64x256xf32> to vector<8x256xf32>
    %125 = arith.truncf %117 : vector<8x64xf32> to vector<8x64xbf16>
    %cst_34 = arith.constant dense<0.000000e+00> : vector<8x256xf32>
    %126 = tpu.matmul %125, %18, %cst_34 {dimension_numbers = #tpu.dot_dimension_numbers<[1], [0], [0], [1], [0, 0, 1, 1], [], []>} : vector<8x64xbf16>, vector<64x256xbf16>, vector<8x256xf32> -> vector<8x256xf32>
    %127 = arith.addf %124, %126 : vector<8x256xf32>
    %128 = vector.extract_strided_slice %127 {offsets = [0, 0], sizes = [8, 192], strides = [1, 1]} : vector<8x256xf32> to vector<8x192xf32>
    %129 = arith.negf %128 : vector<8x192xf32>
    %130 = math.exp %129 : vector<8x192xf32>
    %cst_35 = arith.constant 1.000000e+00 : f32
    %131 = vector.broadcast %cst_35 : f32 to vector<8x192xf32>
    %132 = arith.addf %131, %130 : vector<8x192xf32>
    %133 = arith.divf %131, %132 : vector<8x192xf32>
    %134 = vector.extract_strided_slice %133 {offsets = [0, 0], sizes = [8, 64], strides = [1, 1]} : vector<8x192xf32> to vector<8x64xf32>
    %135 = vector.extract_strided_slice %133 {offsets = [0, 64], sizes = [8, 64], strides = [1, 1]} : vector<8x192xf32> to vector<8x64xf32>
    %136 = vector.extract_strided_slice %133 {offsets = [0, 128], sizes = [8, 64], strides = [1, 1]} : vector<8x192xf32> to vector<8x64xf32>
    %137 = vector.extract_strided_slice %127 {offsets = [0, 192], sizes = [8, 64], strides = [1, 1]} : vector<8x256xf32> to vector<8x64xf32>
    %138 = math.tanh %137 : vector<8x64xf32>
    %139 = arith.mulf %135, %114 : vector<8x64xf32>
    %140 = arith.mulf %134, %138 : vector<8x64xf32>
    %141 = arith.addf %139, %140 : vector<8x64xf32>
    %142 = math.tanh %141 : vector<8x64xf32>
    %143 = arith.mulf %136, %142 : vector<8x64xf32>
    %c3 = arith.constant 3 : index
    %c0_36 = arith.constant 0 : index
    %c0_37 = arith.constant 0 : index
    %144 = vector.load %arg2[%c3, %c0_36, %c0_37] : memref<8x8x64xf32, #tpu.memory_space<vmem>>, vector<1x8x64xf32>
    %145 = vector.shape_cast %144 : vector<1x8x64xf32> to vector<8x64xf32>
    %146 = arith.subf %141, %114 : vector<8x64xf32>
    %147 = arith.mulf %145, %146 : vector<8x64xf32>
    %148 = arith.addf %114, %147 : vector<8x64xf32>
    %149 = arith.subf %143, %117 : vector<8x64xf32>
    %150 = arith.mulf %145, %149 : vector<8x64xf32>
    %151 = arith.addf %117, %150 : vector<8x64xf32>
    %152 = arith.mulf %143, %145 : vector<8x64xf32>
    %c3_38 = arith.constant 3 : index
    %c0_39 = arith.constant 0 : index
    %c0_40 = arith.constant 0 : index
    %153 = vector.load %arg3[%c3_38, %c0_39, %c0_40] : memref<8x1x64xf32, #tpu.memory_space<vmem>>, vector<1x1x64xf32>
    %154 = vector.shape_cast %153 : vector<1x1x64xf32> to vector<1x64xf32>
    %155 = vector.broadcast %154 : vector<1x64xf32> to vector<8x64xf32>
    %156 = arith.addf %152, %155 : vector<8x64xf32>
    %157 = arith.maximumf %123, %156 : vector<8x64xf32>
    %158 = vector.extract_strided_slice %17 {offsets = [32, 0], sizes = [8, 256], strides = [1, 1]} : vector<64x256xf32> to vector<8x256xf32>
    %159 = arith.truncf %151 : vector<8x64xf32> to vector<8x64xbf16>
    %cst_41 = arith.constant dense<0.000000e+00> : vector<8x256xf32>
    %160 = tpu.matmul %159, %18, %cst_41 {dimension_numbers = #tpu.dot_dimension_numbers<[1], [0], [0], [1], [0, 0, 1, 1], [], []>} : vector<8x64xbf16>, vector<64x256xbf16>, vector<8x256xf32> -> vector<8x256xf32>
    %161 = arith.addf %158, %160 : vector<8x256xf32>
    %162 = vector.extract_strided_slice %161 {offsets = [0, 0], sizes = [8, 192], strides = [1, 1]} : vector<8x256xf32> to vector<8x192xf32>
    %163 = arith.negf %162 : vector<8x192xf32>
    %164 = math.exp %163 : vector<8x192xf32>
    %cst_42 = arith.constant 1.000000e+00 : f32
    %165 = vector.broadcast %cst_42 : f32 to vector<8x192xf32>
    %166 = arith.addf %165, %164 : vector<8x192xf32>
    %167 = arith.divf %165, %166 : vector<8x192xf32>
    %168 = vector.extract_strided_slice %167 {offsets = [0, 0], sizes = [8, 64], strides = [1, 1]} : vector<8x192xf32> to vector<8x64xf32>
    %169 = vector.extract_strided_slice %167 {offsets = [0, 64], sizes = [8, 64], strides = [1, 1]} : vector<8x192xf32> to vector<8x64xf32>
    %170 = vector.extract_strided_slice %167 {offsets = [0, 128], sizes = [8, 64], strides = [1, 1]} : vector<8x192xf32> to vector<8x64xf32>
    %171 = vector.extract_strided_slice %161 {offsets = [0, 192], sizes = [8, 64], strides = [1, 1]} : vector<8x256xf32> to vector<8x64xf32>
    %172 = math.tanh %171 : vector<8x64xf32>
    %173 = arith.mulf %169, %148 : vector<8x64xf32>
    %174 = arith.mulf %168, %172 : vector<8x64xf32>
    %175 = arith.addf %173, %174 : vector<8x64xf32>
    %176 = math.tanh %175 : vector<8x64xf32>
    %177 = arith.mulf %170, %176 : vector<8x64xf32>
    %c4 = arith.constant 4 : index
    %c0_43 = arith.constant 0 : index
    %c0_44 = arith.constant 0 : index
    %178 = vector.load %arg2[%c4, %c0_43, %c0_44] : memref<8x8x64xf32, #tpu.memory_space<vmem>>, vector<1x8x64xf32>
    %179 = vector.shape_cast %178 : vector<1x8x64xf32> to vector<8x64xf32>
    %180 = arith.subf %175, %148 : vector<8x64xf32>
    %181 = arith.mulf %179, %180 : vector<8x64xf32>
    %182 = arith.addf %148, %181 : vector<8x64xf32>
    %183 = arith.subf %177, %151 : vector<8x64xf32>
    %184 = arith.mulf %179, %183 : vector<8x64xf32>
    %185 = arith.addf %151, %184 : vector<8x64xf32>
    %186 = arith.mulf %177, %179 : vector<8x64xf32>
    %c4_45 = arith.constant 4 : index
    %c0_46 = arith.constant 0 : index
    %c0_47 = arith.constant 0 : index
    %187 = vector.load %arg3[%c4_45, %c0_46, %c0_47] : memref<8x1x64xf32, #tpu.memory_space<vmem>>, vector<1x1x64xf32>
    %188 = vector.shape_cast %187 : vector<1x1x64xf32> to vector<1x64xf32>
    %189 = vector.broadcast %188 : vector<1x64xf32> to vector<8x64xf32>
    %190 = arith.addf %186, %189 : vector<8x64xf32>
    %191 = arith.maximumf %157, %190 : vector<8x64xf32>
    %192 = vector.extract_strided_slice %17 {offsets = [40, 0], sizes = [8, 256], strides = [1, 1]} : vector<64x256xf32> to vector<8x256xf32>
    %193 = arith.truncf %185 : vector<8x64xf32> to vector<8x64xbf16>
    %cst_48 = arith.constant dense<0.000000e+00> : vector<8x256xf32>
    %194 = tpu.matmul %193, %18, %cst_48 {dimension_numbers = #tpu.dot_dimension_numbers<[1], [0], [0], [1], [0, 0, 1, 1], [], []>} : vector<8x64xbf16>, vector<64x256xbf16>, vector<8x256xf32> -> vector<8x256xf32>
    %195 = arith.addf %192, %194 : vector<8x256xf32>
    %196 = vector.extract_strided_slice %195 {offsets = [0, 0], sizes = [8, 192], strides = [1, 1]} : vector<8x256xf32> to vector<8x192xf32>
    %197 = arith.negf %196 : vector<8x192xf32>
    %198 = math.exp %197 : vector<8x192xf32>
    %cst_49 = arith.constant 1.000000e+00 : f32
    %199 = vector.broadcast %cst_49 : f32 to vector<8x192xf32>
    %200 = arith.addf %199, %198 : vector<8x192xf32>
    %201 = arith.divf %199, %200 : vector<8x192xf32>
    %202 = vector.extract_strided_slice %201 {offsets = [0, 0], sizes = [8, 64], strides = [1, 1]} : vector<8x192xf32> to vector<8x64xf32>
    %203 = vector.extract_strided_slice %201 {offsets = [0, 64], sizes = [8, 64], strides = [1, 1]} : vector<8x192xf32> to vector<8x64xf32>
    %204 = vector.extract_strided_slice %201 {offsets = [0, 128], sizes = [8, 64], strides = [1, 1]} : vector<8x192xf32> to vector<8x64xf32>
    %205 = vector.extract_strided_slice %195 {offsets = [0, 192], sizes = [8, 64], strides = [1, 1]} : vector<8x256xf32> to vector<8x64xf32>
    %206 = math.tanh %205 : vector<8x64xf32>
    %207 = arith.mulf %203, %182 : vector<8x64xf32>
    %208 = arith.mulf %202, %206 : vector<8x64xf32>
    %209 = arith.addf %207, %208 : vector<8x64xf32>
    %210 = math.tanh %209 : vector<8x64xf32>
    %211 = arith.mulf %204, %210 : vector<8x64xf32>
    %c5 = arith.constant 5 : index
    %c0_50 = arith.constant 0 : index
    %c0_51 = arith.constant 0 : index
    %212 = vector.load %arg2[%c5, %c0_50, %c0_51] : memref<8x8x64xf32, #tpu.memory_space<vmem>>, vector<1x8x64xf32>
    %213 = vector.shape_cast %212 : vector<1x8x64xf32> to vector<8x64xf32>
    %214 = arith.subf %209, %182 : vector<8x64xf32>
    %215 = arith.mulf %213, %214 : vector<8x64xf32>
    %216 = arith.addf %182, %215 : vector<8x64xf32>
    %217 = arith.subf %211, %185 : vector<8x64xf32>
    %218 = arith.mulf %213, %217 : vector<8x64xf32>
    %219 = arith.addf %185, %218 : vector<8x64xf32>
    %220 = arith.mulf %211, %213 : vector<8x64xf32>
    %c5_52 = arith.constant 5 : index
    %c0_53 = arith.constant 0 : index
    %c0_54 = arith.constant 0 : index
    %221 = vector.load %arg3[%c5_52, %c0_53, %c0_54] : memref<8x1x64xf32, #tpu.memory_space<vmem>>, vector<1x1x64xf32>
    %222 = vector.shape_cast %221 : vector<1x1x64xf32> to vector<1x64xf32>
    %223 = vector.broadcast %222 : vector<1x64xf32> to vector<8x64xf32>
    %224 = arith.addf %220, %223 : vector<8x64xf32>
    %225 = arith.maximumf %191, %224 : vector<8x64xf32>
    %226 = vector.extract_strided_slice %17 {offsets = [48, 0], sizes = [8, 256], strides = [1, 1]} : vector<64x256xf32> to vector<8x256xf32>
    %227 = arith.truncf %219 : vector<8x64xf32> to vector<8x64xbf16>
    %cst_55 = arith.constant dense<0.000000e+00> : vector<8x256xf32>
    %228 = tpu.matmul %227, %18, %cst_55 {dimension_numbers = #tpu.dot_dimension_numbers<[1], [0], [0], [1], [0, 0, 1, 1], [], []>} : vector<8x64xbf16>, vector<64x256xbf16>, vector<8x256xf32> -> vector<8x256xf32>
    %229 = arith.addf %226, %228 : vector<8x256xf32>
    %230 = vector.extract_strided_slice %229 {offsets = [0, 0], sizes = [8, 192], strides = [1, 1]} : vector<8x256xf32> to vector<8x192xf32>
    %231 = arith.negf %230 : vector<8x192xf32>
    %232 = math.exp %231 : vector<8x192xf32>
    %cst_56 = arith.constant 1.000000e+00 : f32
    %233 = vector.broadcast %cst_56 : f32 to vector<8x192xf32>
    %234 = arith.addf %233, %232 : vector<8x192xf32>
    %235 = arith.divf %233, %234 : vector<8x192xf32>
    %236 = vector.extract_strided_slice %235 {offsets = [0, 0], sizes = [8, 64], strides = [1, 1]} : vector<8x192xf32> to vector<8x64xf32>
    %237 = vector.extract_strided_slice %235 {offsets = [0, 64], sizes = [8, 64], strides = [1, 1]} : vector<8x192xf32> to vector<8x64xf32>
    %238 = vector.extract_strided_slice %235 {offsets = [0, 128], sizes = [8, 64], strides = [1, 1]} : vector<8x192xf32> to vector<8x64xf32>
    %239 = vector.extract_strided_slice %229 {offsets = [0, 192], sizes = [8, 64], strides = [1, 1]} : vector<8x256xf32> to vector<8x64xf32>
    %240 = math.tanh %239 : vector<8x64xf32>
    %241 = arith.mulf %237, %216 : vector<8x64xf32>
    %242 = arith.mulf %236, %240 : vector<8x64xf32>
    %243 = arith.addf %241, %242 : vector<8x64xf32>
    %244 = math.tanh %243 : vector<8x64xf32>
    %245 = arith.mulf %238, %244 : vector<8x64xf32>
    %c6 = arith.constant 6 : index
    %c0_57 = arith.constant 0 : index
    %c0_58 = arith.constant 0 : index
    %246 = vector.load %arg2[%c6, %c0_57, %c0_58] : memref<8x8x64xf32, #tpu.memory_space<vmem>>, vector<1x8x64xf32>
    %247 = vector.shape_cast %246 : vector<1x8x64xf32> to vector<8x64xf32>
    %248 = arith.subf %243, %216 : vector<8x64xf32>
    %249 = arith.mulf %247, %248 : vector<8x64xf32>
    %250 = arith.addf %216, %249 : vector<8x64xf32>
    %251 = arith.subf %245, %219 : vector<8x64xf32>
    %252 = arith.mulf %247, %251 : vector<8x64xf32>
    %253 = arith.addf %219, %252 : vector<8x64xf32>
    %254 = arith.mulf %245, %247 : vector<8x64xf32>
    %c6_59 = arith.constant 6 : index
    %c0_60 = arith.constant 0 : index
    %c0_61 = arith.constant 0 : index
    %255 = vector.load %arg3[%c6_59, %c0_60, %c0_61] : memref<8x1x64xf32, #tpu.memory_space<vmem>>, vector<1x1x64xf32>
    %256 = vector.shape_cast %255 : vector<1x1x64xf32> to vector<1x64xf32>
    %257 = vector.broadcast %256 : vector<1x64xf32> to vector<8x64xf32>
    %258 = arith.addf %254, %257 : vector<8x64xf32>
    %259 = arith.maximumf %225, %258 : vector<8x64xf32>
    %260 = vector.extract_strided_slice %17 {offsets = [56, 0], sizes = [8, 256], strides = [1, 1]} : vector<64x256xf32> to vector<8x256xf32>
    %261 = arith.truncf %253 : vector<8x64xf32> to vector<8x64xbf16>
    %cst_62 = arith.constant dense<0.000000e+00> : vector<8x256xf32>
    %262 = tpu.matmul %261, %18, %cst_62 {dimension_numbers = #tpu.dot_dimension_numbers<[1], [0], [0], [1], [0, 0, 1, 1], [], []>} : vector<8x64xbf16>, vector<64x256xbf16>, vector<8x256xf32> -> vector<8x256xf32>
    %263 = arith.addf %260, %262 : vector<8x256xf32>
    %264 = vector.extract_strided_slice %263 {offsets = [0, 0], sizes = [8, 192], strides = [1, 1]} : vector<8x256xf32> to vector<8x192xf32>
    %265 = arith.negf %264 : vector<8x192xf32>
    %266 = math.exp %265 : vector<8x192xf32>
    %cst_63 = arith.constant 1.000000e+00 : f32
    %267 = vector.broadcast %cst_63 : f32 to vector<8x192xf32>
    %268 = arith.addf %267, %266 : vector<8x192xf32>
    %269 = arith.divf %267, %268 : vector<8x192xf32>
    %270 = vector.extract_strided_slice %269 {offsets = [0, 0], sizes = [8, 64], strides = [1, 1]} : vector<8x192xf32> to vector<8x64xf32>
    %271 = vector.extract_strided_slice %269 {offsets = [0, 64], sizes = [8, 64], strides = [1, 1]} : vector<8x192xf32> to vector<8x64xf32>
    %272 = vector.extract_strided_slice %269 {offsets = [0, 128], sizes = [8, 64], strides = [1, 1]} : vector<8x192xf32> to vector<8x64xf32>
    %273 = vector.extract_strided_slice %263 {offsets = [0, 192], sizes = [8, 64], strides = [1, 1]} : vector<8x256xf32> to vector<8x64xf32>
    %274 = math.tanh %273 : vector<8x64xf32>
    %275 = arith.mulf %271, %250 : vector<8x64xf32>
    %276 = arith.mulf %270, %274 : vector<8x64xf32>
    %277 = arith.addf %275, %276 : vector<8x64xf32>
    %278 = math.tanh %277 : vector<8x64xf32>
    %279 = arith.mulf %272, %278 : vector<8x64xf32>
    %c7 = arith.constant 7 : index
    %c0_64 = arith.constant 0 : index
    %c0_65 = arith.constant 0 : index
    %280 = vector.load %arg2[%c7, %c0_64, %c0_65] : memref<8x8x64xf32, #tpu.memory_space<vmem>>, vector<1x8x64xf32>
    %281 = vector.shape_cast %280 : vector<1x8x64xf32> to vector<8x64xf32>
    %282 = arith.mulf %279, %281 : vector<8x64xf32>
    %c7_66 = arith.constant 7 : index
    %c0_67 = arith.constant 0 : index
    %c0_68 = arith.constant 0 : index
    %283 = vector.load %arg3[%c7_66, %c0_67, %c0_68] : memref<8x1x64xf32, #tpu.memory_space<vmem>>, vector<1x1x64xf32>
    %284 = vector.shape_cast %283 : vector<1x1x64xf32> to vector<1x64xf32>
    %285 = vector.broadcast %284 : vector<1x64xf32> to vector<8x64xf32>
    %286 = arith.addf %282, %285 : vector<8x64xf32>
    %287 = arith.maximumf %259, %286 : vector<8x64xf32>
    %288 = arith.truncf %287 : vector<8x64xf32> to vector<8x64xbf16>
    %c0_69 = arith.constant 0 : index
    %c0_70 = arith.constant 0 : index
    %289 = vector.load %arg7[%c0_69, %c0_70] : memref<64x256xbf16, #tpu.memory_space<vmem>>, vector<64x256xbf16>
    %cst_71 = arith.constant dense<0.000000e+00> : vector<8x256xf32>
    %290 = tpu.matmul %288, %289, %cst_71 {dimension_numbers = #tpu.dot_dimension_numbers<[1], [0], [0], [1], [0, 0, 1, 1], [], []>} : vector<8x64xbf16>, vector<64x256xbf16>, vector<8x256xf32> -> vector<8x256xf32>
    %c0_72 = arith.constant 0 : index
    %c0_73 = arith.constant 0 : index
    %291 = vector.load %arg9[%c0_72, %c0_73] : memref<1x256xf32, #tpu.memory_space<vmem>>, vector<1x256xf32>
    %292 = vector.broadcast %291 : vector<1x256xf32> to vector<8x256xf32>
    %293 = arith.addf %290, %292 : vector<8x256xf32>
    %c0_74 = arith.constant 0 : index
    %c0_75 = arith.constant 0 : index
    %294 = vector.load %arg8[%c0_74, %c0_75] : memref<64x256xbf16, #tpu.memory_space<vmem>>, vector<64x256xbf16>
    %cst_76 = arith.constant dense<0.000000e+00> : vector<8x256xf32>
    %295 = tpu.matmul %288, %294, %cst_76 {dimension_numbers = #tpu.dot_dimension_numbers<[1], [0], [0], [1], [0, 0, 1, 1], [], []>} : vector<8x64xbf16>, vector<64x256xbf16>, vector<8x256xf32> -> vector<8x256xf32>
    %c0_77 = arith.constant 0 : index
    %c0_78 = arith.constant 0 : index
    %296 = vector.load %arg10[%c0_77, %c0_78] : memref<64x256xbf16, #tpu.memory_space<vmem>>, vector<64x256xbf16>
    %cst_79 = arith.constant 0.000000e+00 : f32
    %297 = vector.broadcast %cst_79 : f32 to vector<1x64xf32>
    %cst_80 = arith.constant 0.000000e+00 : f32
    %298 = vector.broadcast %cst_80 : f32 to vector<1x64xf32>
    %299 = vector.extract_strided_slice %293 {offsets = [0, 0], sizes = [1, 256], strides = [1, 1]} : vector<8x256xf32> to vector<1x256xf32>
    %300 = vector.extract_strided_slice %295 {offsets = [7, 0], sizes = [1, 256], strides = [1, 1]} : vector<8x256xf32> to vector<1x256xf32>
    %301 = arith.addf %299, %300 : vector<1x256xf32>
    %302 = arith.truncf %297 : vector<1x64xf32> to vector<1x64xbf16>
    %cst_81 = arith.constant dense<0.000000e+00> : vector<1x256xf32>
    %303 = tpu.matmul %302, %296, %cst_81 {dimension_numbers = #tpu.dot_dimension_numbers<[1], [0], [0], [1], [0, 0, 1, 1], [], []>} : vector<1x64xbf16>, vector<64x256xbf16>, vector<1x256xf32> -> vector<1x256xf32>
    %304 = arith.addf %301, %303 : vector<1x256xf32>
    %305 = vector.extract_strided_slice %304 {offsets = [0, 0], sizes = [1, 192], strides = [1, 1]} : vector<1x256xf32> to vector<1x192xf32>
    %306 = arith.negf %305 : vector<1x192xf32>
    %307 = math.exp %306 : vector<1x192xf32>
    %cst_82 = arith.constant 1.000000e+00 : f32
    %308 = vector.broadcast %cst_82 : f32 to vector<1x192xf32>
    %309 = arith.addf %308, %307 : vector<1x192xf32>
    %310 = arith.divf %308, %309 : vector<1x192xf32>
    %311 = vector.extract_strided_slice %310 {offsets = [0, 0], sizes = [1, 64], strides = [1, 1]} : vector<1x192xf32> to vector<1x64xf32>
    %312 = vector.extract_strided_slice %310 {offsets = [0, 64], sizes = [1, 64], strides = [1, 1]} : vector<1x192xf32> to vector<1x64xf32>
    %313 = vector.extract_strided_slice %310 {offsets = [0, 128], sizes = [1, 64], strides = [1, 1]} : vector<1x192xf32> to vector<1x64xf32>
    %314 = vector.extract_strided_slice %304 {offsets = [0, 192], sizes = [1, 64], strides = [1, 1]} : vector<1x256xf32> to vector<1x64xf32>
    %315 = math.tanh %314 : vector<1x64xf32>
    %316 = arith.mulf %312, %298 : vector<1x64xf32>
    %317 = arith.mulf %311, %315 : vector<1x64xf32>
    %318 = arith.addf %316, %317 : vector<1x64xf32>
    %319 = math.tanh %318 : vector<1x64xf32>
    %320 = arith.mulf %313, %319 : vector<1x64xf32>
    %321 = vector.extract_strided_slice %320 {offsets = [0, 0], sizes = [1, 32], strides = [1, 1]} : vector<1x64xf32> to vector<1x32xf32>
    %c0_83 = arith.constant 0 : index
    %c0_84 = arith.constant 0 : index
    %322 = vector.load %arg18[%c0_83, %c0_84] : memref<8x32xf32, #tpu.memory_space<vmem>>, vector<1x32xf32>
    tpu.vector_store %arg18[%c0_83, %c0_84], %321 {strides = array<i32>} : memref<8x32xf32, #tpu.memory_space<vmem>>, vector<1x32xf32>,
    %323 = vector.extract_strided_slice %320 {offsets = [0, 32], sizes = [1, 32], strides = [1, 1]} : vector<1x64xf32> to vector<1x32xf32>
    %c7_85 = arith.constant 7 : index
    %c0_86 = arith.constant 0 : index
    %324 = vector.load %arg19[%c7_85, %c0_86] : memref<8x32xf32, #tpu.memory_space<vmem>>, vector<1x32xf32>
    tpu.vector_store %arg19[%c7_85, %c0_86], %323 {strides = array<i32>} : memref<8x32xf32, #tpu.memory_space<vmem>>, vector<1x32xf32>,
    %325 = vector.extract_strided_slice %293 {offsets = [1, 0], sizes = [1, 256], strides = [1, 1]} : vector<8x256xf32> to vector<1x256xf32>
    %326 = vector.extract_strided_slice %295 {offsets = [6, 0], sizes = [1, 256], strides = [1, 1]} : vector<8x256xf32> to vector<1x256xf32>
    %327 = arith.addf %325, %326 : vector<1x256xf32>
    %328 = arith.truncf %320 : vector<1x64xf32> to vector<1x64xbf16>
    %cst_87 = arith.constant dense<0.000000e+00> : vector<1x256xf32>
    %329 = tpu.matmul %328, %296, %cst_87 {dimension_numbers = #tpu.dot_dimension_numbers<[1], [0], [0], [1], [0, 0, 1, 1], [], []>} : vector<1x64xbf16>, vector<64x256xbf16>, vector<1x256xf32> -> vector<1x256xf32>
    %330 = arith.addf %327, %329 : vector<1x256xf32>
    %331 = vector.extract_strided_slice %330 {offsets = [0, 0], sizes = [1, 192], strides = [1, 1]} : vector<1x256xf32> to vector<1x192xf32>
    %332 = arith.negf %331 : vector<1x192xf32>
    %333 = math.exp %332 : vector<1x192xf32>
    %cst_88 = arith.constant 1.000000e+00 : f32
    %334 = vector.broadcast %cst_88 : f32 to vector<1x192xf32>
    %335 = arith.addf %334, %333 : vector<1x192xf32>
    %336 = arith.divf %334, %335 : vector<1x192xf32>
    %337 = vector.extract_strided_slice %336 {offsets = [0, 0], sizes = [1, 64], strides = [1, 1]} : vector<1x192xf32> to vector<1x64xf32>
    %338 = vector.extract_strided_slice %336 {offsets = [0, 64], sizes = [1, 64], strides = [1, 1]} : vector<1x192xf32> to vector<1x64xf32>
    %339 = vector.extract_strided_slice %336 {offsets = [0, 128], sizes = [1, 64], strides = [1, 1]} : vector<1x192xf32> to vector<1x64xf32>
    %340 = vector.extract_strided_slice %330 {offsets = [0, 192], sizes = [1, 64], strides = [1, 1]} : vector<1x256xf32> to vector<1x64xf32>
    %341 = math.tanh %340 : vector<1x64xf32>
    %342 = arith.mulf %338, %318 : vector<1x64xf32>
    %343 = arith.mulf %337, %341 : vector<1x64xf32>
    %344 = arith.addf %342, %343 : vector<1x64xf32>
    %345 = math.tanh %344 : vector<1x64xf32>
    %346 = arith.mulf %339, %345 : vector<1x64xf32>
    %347 = vector.extract_strided_slice %346 {offsets = [0, 0], sizes = [1, 32], strides = [1, 1]} : vector<1x64xf32> to vector<1x32xf32>
    %c1_89 = arith.constant 1 : index
    %c0_90 = arith.constant 0 : index
    %348 = vector.load %arg18[%c1_89, %c0_90] : memref<8x32xf32, #tpu.memory_space<vmem>>, vector<1x32xf32>
    tpu.vector_store %arg18[%c1_89, %c0_90], %347 {strides = array<i32>} : memref<8x32xf32, #tpu.memory_space<vmem>>, vector<1x32xf32>,
    %349 = vector.extract_strided_slice %346 {offsets = [0, 32], sizes = [1, 32], strides = [1, 1]} : vector<1x64xf32> to vector<1x32xf32>
    %c6_91 = arith.constant 6 : index
    %c0_92 = arith.constant 0 : index
    %350 = vector.load %arg19[%c6_91, %c0_92] : memref<8x32xf32, #tpu.memory_space<vmem>>, vector<1x32xf32>
    tpu.vector_store %arg19[%c6_91, %c0_92], %349 {strides = array<i32>} : memref<8x32xf32, #tpu.memory_space<vmem>>, vector<1x32xf32>,
    %351 = vector.extract_strided_slice %293 {offsets = [2, 0], sizes = [1, 256], strides = [1, 1]} : vector<8x256xf32> to vector<1x256xf32>
    %352 = vector.extract_strided_slice %295 {offsets = [5, 0], sizes = [1, 256], strides = [1, 1]} : vector<8x256xf32> to vector<1x256xf32>
    %353 = arith.addf %351, %352 : vector<1x256xf32>
    %354 = arith.truncf %346 : vector<1x64xf32> to vector<1x64xbf16>
    %cst_93 = arith.constant dense<0.000000e+00> : vector<1x256xf32>
    %355 = tpu.matmul %354, %296, %cst_93 {dimension_numbers = #tpu.dot_dimension_numbers<[1], [0], [0], [1], [0, 0, 1, 1], [], []>} : vector<1x64xbf16>, vector<64x256xbf16>, vector<1x256xf32> -> vector<1x256xf32>
    %356 = arith.addf %353, %355 : vector<1x256xf32>
    %357 = vector.extract_strided_slice %356 {offsets = [0, 0], sizes = [1, 192], strides = [1, 1]} : vector<1x256xf32> to vector<1x192xf32>
    %358 = arith.negf %357 : vector<1x192xf32>
    %359 = math.exp %358 : vector<1x192xf32>
    %cst_94 = arith.constant 1.000000e+00 : f32
    %360 = vector.broadcast %cst_94 : f32 to vector<1x192xf32>
    %361 = arith.addf %360, %359 : vector<1x192xf32>
    %362 = arith.divf %360, %361 : vector<1x192xf32>
    %363 = vector.extract_strided_slice %362 {offsets = [0, 0], sizes = [1, 64], strides = [1, 1]} : vector<1x192xf32> to vector<1x64xf32>
    %364 = vector.extract_strided_slice %362 {offsets = [0, 64], sizes = [1, 64], strides = [1, 1]} : vector<1x192xf32> to vector<1x64xf32>
    %365 = vector.extract_strided_slice %362 {offsets = [0, 128], sizes = [1, 64], strides = [1, 1]} : vector<1x192xf32> to vector<1x64xf32>
    %366 = vector.extract_strided_slice %356 {offsets = [0, 192], sizes = [1, 64], strides = [1, 1]} : vector<1x256xf32> to vector<1x64xf32>
    %367 = math.tanh %366 : vector<1x64xf32>
    %368 = arith.mulf %364, %344 : vector<1x64xf32>
    %369 = arith.mulf %363, %367 : vector<1x64xf32>
    %370 = arith.addf %368, %369 : vector<1x64xf32>
    %371 = math.tanh %370 : vector<1x64xf32>
    %372 = arith.mulf %365, %371 : vector<1x64xf32>
    %373 = vector.extract_strided_slice %372 {offsets = [0, 0], sizes = [1, 32], strides = [1, 1]} : vector<1x64xf32> to vector<1x32xf32>
    %c2_95 = arith.constant 2 : index
    %c0_96 = arith.constant 0 : index
    %374 = vector.load %arg18[%c2_95, %c0_96] : memref<8x32xf32, #tpu.memory_space<vmem>>, vector<1x32xf32>
    tpu.vector_store %arg18[%c2_95, %c0_96], %373 {strides = array<i32>} : memref<8x32xf32, #tpu.memory_space<vmem>>, vector<1x32xf32>,
    %375 = vector.extract_strided_slice %372 {offsets = [0, 32], sizes = [1, 32], strides = [1, 1]} : vector<1x64xf32> to vector<1x32xf32>
    %c5_97 = arith.constant 5 : index
    %c0_98 = arith.constant 0 : index
    %376 = vector.load %arg19[%c5_97, %c0_98] : memref<8x32xf32, #tpu.memory_space<vmem>>, vector<1x32xf32>
    tpu.vector_store %arg19[%c5_97, %c0_98], %375 {strides = array<i32>} : memref<8x32xf32, #tpu.memory_space<vmem>>, vector<1x32xf32>,
    %377 = vector.extract_strided_slice %293 {offsets = [3, 0], sizes = [1, 256], strides = [1, 1]} : vector<8x256xf32> to vector<1x256xf32>
    %378 = vector.extract_strided_slice %295 {offsets = [4, 0], sizes = [1, 256], strides = [1, 1]} : vector<8x256xf32> to vector<1x256xf32>
    %379 = arith.addf %377, %378 : vector<1x256xf32>
    %380 = arith.truncf %372 : vector<1x64xf32> to vector<1x64xbf16>
    %cst_99 = arith.constant dense<0.000000e+00> : vector<1x256xf32>
    %381 = tpu.matmul %380, %296, %cst_99 {dimension_numbers = #tpu.dot_dimension_numbers<[1], [0], [0], [1], [0, 0, 1, 1], [], []>} : vector<1x64xbf16>, vector<64x256xbf16>, vector<1x256xf32> -> vector<1x256xf32>
    %382 = arith.addf %379, %381 : vector<1x256xf32>
    %383 = vector.extract_strided_slice %382 {offsets = [0, 0], sizes = [1, 192], strides = [1, 1]} : vector<1x256xf32> to vector<1x192xf32>
    %384 = arith.negf %383 : vector<1x192xf32>
    %385 = math.exp %384 : vector<1x192xf32>
    %cst_100 = arith.constant 1.000000e+00 : f32
    %386 = vector.broadcast %cst_100 : f32 to vector<1x192xf32>
    %387 = arith.addf %386, %385 : vector<1x192xf32>
    %388 = arith.divf %386, %387 : vector<1x192xf32>
    %389 = vector.extract_strided_slice %388 {offsets = [0, 0], sizes = [1, 64], strides = [1, 1]} : vector<1x192xf32> to vector<1x64xf32>
    %390 = vector.extract_strided_slice %388 {offsets = [0, 64], sizes = [1, 64], strides = [1, 1]} : vector<1x192xf32> to vector<1x64xf32>
    %391 = vector.extract_strided_slice %388 {offsets = [0, 128], sizes = [1, 64], strides = [1, 1]} : vector<1x192xf32> to vector<1x64xf32>
    %392 = vector.extract_strided_slice %382 {offsets = [0, 192], sizes = [1, 64], strides = [1, 1]} : vector<1x256xf32> to vector<1x64xf32>
    %393 = math.tanh %392 : vector<1x64xf32>
    %394 = arith.mulf %390, %370 : vector<1x64xf32>
    %395 = arith.mulf %389, %393 : vector<1x64xf32>
    %396 = arith.addf %394, %395 : vector<1x64xf32>
    %397 = math.tanh %396 : vector<1x64xf32>
    %398 = arith.mulf %391, %397 : vector<1x64xf32>
    %399 = vector.extract_strided_slice %398 {offsets = [0, 0], sizes = [1, 32], strides = [1, 1]} : vector<1x64xf32> to vector<1x32xf32>
    %c3_101 = arith.constant 3 : index
    %c0_102 = arith.constant 0 : index
    %400 = vector.load %arg18[%c3_101, %c0_102] : memref<8x32xf32, #tpu.memory_space<vmem>>, vector<1x32xf32>
    tpu.vector_store %arg18[%c3_101, %c0_102], %399 {strides = array<i32>} : memref<8x32xf32, #tpu.memory_space<vmem>>, vector<1x32xf32>,
    %401 = vector.extract_strided_slice %398 {offsets = [0, 32], sizes = [1, 32], strides = [1, 1]} : vector<1x64xf32> to vector<1x32xf32>
    %c4_103 = arith.constant 4 : index
    %c0_104 = arith.constant 0 : index
    %402 = vector.load %arg19[%c4_103, %c0_104] : memref<8x32xf32, #tpu.memory_space<vmem>>, vector<1x32xf32>
    tpu.vector_store %arg19[%c4_103, %c0_104], %401 {strides = array<i32>} : memref<8x32xf32, #tpu.memory_space<vmem>>, vector<1x32xf32>,
    %403 = vector.extract_strided_slice %293 {offsets = [4, 0], sizes = [1, 256], strides = [1, 1]} : vector<8x256xf32> to vector<1x256xf32>
    %404 = vector.extract_strided_slice %295 {offsets = [3, 0], sizes = [1, 256], strides = [1, 1]} : vector<8x256xf32> to vector<1x256xf32>
    %405 = arith.addf %403, %404 : vector<1x256xf32>
    %406 = arith.truncf %398 : vector<1x64xf32> to vector<1x64xbf16>
    %cst_105 = arith.constant dense<0.000000e+00> : vector<1x256xf32>
    %407 = tpu.matmul %406, %296, %cst_105 {dimension_numbers = #tpu.dot_dimension_numbers<[1], [0], [0], [1], [0, 0, 1, 1], [], []>} : vector<1x64xbf16>, vector<64x256xbf16>, vector<1x256xf32> -> vector<1x256xf32>
    %408 = arith.addf %405, %407 : vector<1x256xf32>
    %409 = vector.extract_strided_slice %408 {offsets = [0, 0], sizes = [1, 192], strides = [1, 1]} : vector<1x256xf32> to vector<1x192xf32>
    %410 = arith.negf %409 : vector<1x192xf32>
    %411 = math.exp %410 : vector<1x192xf32>
    %cst_106 = arith.constant 1.000000e+00 : f32
    %412 = vector.broadcast %cst_106 : f32 to vector<1x192xf32>
    %413 = arith.addf %412, %411 : vector<1x192xf32>
    %414 = arith.divf %412, %413 : vector<1x192xf32>
    %415 = vector.extract_strided_slice %414 {offsets = [0, 0], sizes = [1, 64], strides = [1, 1]} : vector<1x192xf32> to vector<1x64xf32>
    %416 = vector.extract_strided_slice %414 {offsets = [0, 64], sizes = [1, 64], strides = [1, 1]} : vector<1x192xf32> to vector<1x64xf32>
    %417 = vector.extract_strided_slice %414 {offsets = [0, 128], sizes = [1, 64], strides = [1, 1]} : vector<1x192xf32> to vector<1x64xf32>
    %418 = vector.extract_strided_slice %408 {offsets = [0, 192], sizes = [1, 64], strides = [1, 1]} : vector<1x256xf32> to vector<1x64xf32>
    %419 = math.tanh %418 : vector<1x64xf32>
    %420 = arith.mulf %416, %396 : vector<1x64xf32>
    %421 = arith.mulf %415, %419 : vector<1x64xf32>
    %422 = arith.addf %420, %421 : vector<1x64xf32>
    %423 = math.tanh %422 : vector<1x64xf32>
    %424 = arith.mulf %417, %423 : vector<1x64xf32>
    %425 = vector.extract_strided_slice %424 {offsets = [0, 0], sizes = [1, 32], strides = [1, 1]} : vector<1x64xf32> to vector<1x32xf32>
    %c4_107 = arith.constant 4 : index
    %c0_108 = arith.constant 0 : index
    %426 = vector.load %arg18[%c4_107, %c0_108] : memref<8x32xf32, #tpu.memory_space<vmem>>, vector<1x32xf32>
    tpu.vector_store %arg18[%c4_107, %c0_108], %425 {strides = array<i32>} : memref<8x32xf32, #tpu.memory_space<vmem>>, vector<1x32xf32>,
    %427 = vector.extract_strided_slice %424 {offsets = [0, 32], sizes = [1, 32], strides = [1, 1]} : vector<1x64xf32> to vector<1x32xf32>
    %c3_109 = arith.constant 3 : index
    %c0_110 = arith.constant 0 : index
    %428 = vector.load %arg19[%c3_109, %c0_110] : memref<8x32xf32, #tpu.memory_space<vmem>>, vector<1x32xf32>
    tpu.vector_store %arg19[%c3_109, %c0_110], %427 {strides = array<i32>} : memref<8x32xf32, #tpu.memory_space<vmem>>, vector<1x32xf32>,
    %429 = vector.extract_strided_slice %293 {offsets = [5, 0], sizes = [1, 256], strides = [1, 1]} : vector<8x256xf32> to vector<1x256xf32>
    %430 = vector.extract_strided_slice %295 {offsets = [2, 0], sizes = [1, 256], strides = [1, 1]} : vector<8x256xf32> to vector<1x256xf32>
    %431 = arith.addf %429, %430 : vector<1x256xf32>
    %432 = arith.truncf %424 : vector<1x64xf32> to vector<1x64xbf16>
    %cst_111 = arith.constant dense<0.000000e+00> : vector<1x256xf32>
    %433 = tpu.matmul %432, %296, %cst_111 {dimension_numbers = #tpu.dot_dimension_numbers<[1], [0], [0], [1], [0, 0, 1, 1], [], []>} : vector<1x64xbf16>, vector<64x256xbf16>, vector<1x256xf32> -> vector<1x256xf32>
    %434 = arith.addf %431, %433 : vector<1x256xf32>
    %435 = vector.extract_strided_slice %434 {offsets = [0, 0], sizes = [1, 192], strides = [1, 1]} : vector<1x256xf32> to vector<1x192xf32>
    %436 = arith.negf %435 : vector<1x192xf32>
    %437 = math.exp %436 : vector<1x192xf32>
    %cst_112 = arith.constant 1.000000e+00 : f32
    %438 = vector.broadcast %cst_112 : f32 to vector<1x192xf32>
    %439 = arith.addf %438, %437 : vector<1x192xf32>
    %440 = arith.divf %438, %439 : vector<1x192xf32>
    %441 = vector.extract_strided_slice %440 {offsets = [0, 0], sizes = [1, 64], strides = [1, 1]} : vector<1x192xf32> to vector<1x64xf32>
    %442 = vector.extract_strided_slice %440 {offsets = [0, 64], sizes = [1, 64], strides = [1, 1]} : vector<1x192xf32> to vector<1x64xf32>
    %443 = vector.extract_strided_slice %440 {offsets = [0, 128], sizes = [1, 64], strides = [1, 1]} : vector<1x192xf32> to vector<1x64xf32>
    %444 = vector.extract_strided_slice %434 {offsets = [0, 192], sizes = [1, 64], strides = [1, 1]} : vector<1x256xf32> to vector<1x64xf32>
    %445 = math.tanh %444 : vector<1x64xf32>
    %446 = arith.mulf %442, %422 : vector<1x64xf32>
    %447 = arith.mulf %441, %445 : vector<1x64xf32>
    %448 = arith.addf %446, %447 : vector<1x64xf32>
    %449 = math.tanh %448 : vector<1x64xf32>
    %450 = arith.mulf %443, %449 : vector<1x64xf32>
    %451 = vector.extract_strided_slice %450 {offsets = [0, 0], sizes = [1, 32], strides = [1, 1]} : vector<1x64xf32> to vector<1x32xf32>
    %c5_113 = arith.constant 5 : index
    %c0_114 = arith.constant 0 : index
    %452 = vector.load %arg18[%c5_113, %c0_114] : memref<8x32xf32, #tpu.memory_space<vmem>>, vector<1x32xf32>
    tpu.vector_store %arg18[%c5_113, %c0_114], %451 {strides = array<i32>} : memref<8x32xf32, #tpu.memory_space<vmem>>, vector<1x32xf32>,
    %453 = vector.extract_strided_slice %450 {offsets = [0, 32], sizes = [1, 32], strides = [1, 1]} : vector<1x64xf32> to vector<1x32xf32>
    %c2_115 = arith.constant 2 : index
    %c0_116 = arith.constant 0 : index
    %454 = vector.load %arg19[%c2_115, %c0_116] : memref<8x32xf32, #tpu.memory_space<vmem>>, vector<1x32xf32>
    tpu.vector_store %arg19[%c2_115, %c0_116], %453 {strides = array<i32>} : memref<8x32xf32, #tpu.memory_space<vmem>>, vector<1x32xf32>,
    %455 = vector.extract_strided_slice %293 {offsets = [6, 0], sizes = [1, 256], strides = [1, 1]} : vector<8x256xf32> to vector<1x256xf32>
    %456 = vector.extract_strided_slice %295 {offsets = [1, 0], sizes = [1, 256], strides = [1, 1]} : vector<8x256xf32> to vector<1x256xf32>
    %457 = arith.addf %455, %456 : vector<1x256xf32>
    %458 = arith.truncf %450 : vector<1x64xf32> to vector<1x64xbf16>
    %cst_117 = arith.constant dense<0.000000e+00> : vector<1x256xf32>
    %459 = tpu.matmul %458, %296, %cst_117 {dimension_numbers = #tpu.dot_dimension_numbers<[1], [0], [0], [1], [0, 0, 1, 1], [], []>} : vector<1x64xbf16>, vector<64x256xbf16>, vector<1x256xf32> -> vector<1x256xf32>
    %460 = arith.addf %457, %459 : vector<1x256xf32>
    %461 = vector.extract_strided_slice %460 {offsets = [0, 0], sizes = [1, 192], strides = [1, 1]} : vector<1x256xf32> to vector<1x192xf32>
    %462 = arith.negf %461 : vector<1x192xf32>
    %463 = math.exp %462 : vector<1x192xf32>
    %cst_118 = arith.constant 1.000000e+00 : f32
    %464 = vector.broadcast %cst_118 : f32 to vector<1x192xf32>
    %465 = arith.addf %464, %463 : vector<1x192xf32>
    %466 = arith.divf %464, %465 : vector<1x192xf32>
    %467 = vector.extract_strided_slice %466 {offsets = [0, 0], sizes = [1, 64], strides = [1, 1]} : vector<1x192xf32> to vector<1x64xf32>
    %468 = vector.extract_strided_slice %466 {offsets = [0, 64], sizes = [1, 64], strides = [1, 1]} : vector<1x192xf32> to vector<1x64xf32>
    %469 = vector.extract_strided_slice %466 {offsets = [0, 128], sizes = [1, 64], strides = [1, 1]} : vector<1x192xf32> to vector<1x64xf32>
    %470 = vector.extract_strided_slice %460 {offsets = [0, 192], sizes = [1, 64], strides = [1, 1]} : vector<1x256xf32> to vector<1x64xf32>
    %471 = math.tanh %470 : vector<1x64xf32>
    %472 = arith.mulf %468, %448 : vector<1x64xf32>
    %473 = arith.mulf %467, %471 : vector<1x64xf32>
    %474 = arith.addf %472, %473 : vector<1x64xf32>
    %475 = math.tanh %474 : vector<1x64xf32>
    %476 = arith.mulf %469, %475 : vector<1x64xf32>
    %477 = vector.extract_strided_slice %476 {offsets = [0, 0], sizes = [1, 32], strides = [1, 1]} : vector<1x64xf32> to vector<1x32xf32>
    %c6_119 = arith.constant 6 : index
    %c0_120 = arith.constant 0 : index
    %478 = vector.load %arg18[%c6_119, %c0_120] : memref<8x32xf32, #tpu.memory_space<vmem>>, vector<1x32xf32>
    tpu.vector_store %arg18[%c6_119, %c0_120], %477 {strides = array<i32>} : memref<8x32xf32, #tpu.memory_space<vmem>>, vector<1x32xf32>,
    %479 = vector.extract_strided_slice %476 {offsets = [0, 32], sizes = [1, 32], strides = [1, 1]} : vector<1x64xf32> to vector<1x32xf32>
    %c1_121 = arith.constant 1 : index
    %c0_122 = arith.constant 0 : index
    %480 = vector.load %arg19[%c1_121, %c0_122] : memref<8x32xf32, #tpu.memory_space<vmem>>, vector<1x32xf32>
    tpu.vector_store %arg19[%c1_121, %c0_122], %479 {strides = array<i32>} : memref<8x32xf32, #tpu.memory_space<vmem>>, vector<1x32xf32>,
    %481 = vector.extract_strided_slice %293 {offsets = [7, 0], sizes = [1, 256], strides = [1, 1]} : vector<8x256xf32> to vector<1x256xf32>
    %482 = vector.extract_strided_slice %295 {offsets = [0, 0], sizes = [1, 256], strides = [1, 1]} : vector<8x256xf32> to vector<1x256xf32>
    %483 = arith.addf %481, %482 : vector<1x256xf32>
    %484 = arith.truncf %476 : vector<1x64xf32> to vector<1x64xbf16>
    %cst_123 = arith.constant dense<0.000000e+00> : vector<1x256xf32>
    %485 = tpu.matmul %484, %296, %cst_123 {dimension_numbers = #tpu.dot_dimension_numbers<[1], [0], [0], [1], [0, 0, 1, 1], [], []>} : vector<1x64xbf16>, vector<64x256xbf16>, vector<1x256xf32> -> vector<1x256xf32>
    %486 = arith.addf %483, %485 : vector<1x256xf32>
    %487 = vector.extract_strided_slice %486 {offsets = [0, 0], sizes = [1, 192], strides = [1, 1]} : vector<1x256xf32> to vector<1x192xf32>
    %488 = arith.negf %487 : vector<1x192xf32>
    %489 = math.exp %488 : vector<1x192xf32>
    %cst_124 = arith.constant 1.000000e+00 : f32
    %490 = vector.broadcast %cst_124 : f32 to vector<1x192xf32>
    %491 = arith.addf %490, %489 : vector<1x192xf32>
    %492 = arith.divf %490, %491 : vector<1x192xf32>
    %493 = vector.extract_strided_slice %492 {offsets = [0, 0], sizes = [1, 64], strides = [1, 1]} : vector<1x192xf32> to vector<1x64xf32>
    %494 = vector.extract_strided_slice %492 {offsets = [0, 64], sizes = [1, 64], strides = [1, 1]} : vector<1x192xf32> to vector<1x64xf32>
    %495 = vector.extract_strided_slice %492 {offsets = [0, 128], sizes = [1, 64], strides = [1, 1]} : vector<1x192xf32> to vector<1x64xf32>
    %496 = vector.extract_strided_slice %486 {offsets = [0, 192], sizes = [1, 64], strides = [1, 1]} : vector<1x256xf32> to vector<1x64xf32>
    %497 = math.tanh %496 : vector<1x64xf32>
    %498 = arith.mulf %494, %474 : vector<1x64xf32>
    %499 = arith.mulf %493, %497 : vector<1x64xf32>
    %500 = arith.addf %498, %499 : vector<1x64xf32>
    %501 = math.tanh %500 : vector<1x64xf32>
    %502 = arith.mulf %495, %501 : vector<1x64xf32>
    %503 = vector.extract_strided_slice %502 {offsets = [0, 0], sizes = [1, 32], strides = [1, 1]} : vector<1x64xf32> to vector<1x32xf32>
    %c7_125 = arith.constant 7 : index
    %c0_126 = arith.constant 0 : index
    %504 = vector.load %arg18[%c7_125, %c0_126] : memref<8x32xf32, #tpu.memory_space<vmem>>, vector<1x32xf32>
    tpu.vector_store %arg18[%c7_125, %c0_126], %503 {strides = array<i32>} : memref<8x32xf32, #tpu.memory_space<vmem>>, vector<1x32xf32>,
    %505 = vector.extract_strided_slice %502 {offsets = [0, 32], sizes = [1, 32], strides = [1, 1]} : vector<1x64xf32> to vector<1x32xf32>
    %c0_127 = arith.constant 0 : index
    %c0_128 = arith.constant 0 : index
    %506 = vector.load %arg19[%c0_127, %c0_128] : memref<8x32xf32, #tpu.memory_space<vmem>>, vector<1x32xf32>
    tpu.vector_store %arg19[%c0_127, %c0_128], %505 {strides = array<i32>} : memref<8x32xf32, #tpu.memory_space<vmem>>, vector<1x32xf32>,
    %c0_129 = arith.constant 0 : index
    %c0_130 = arith.constant 0 : index
    %507 = vector.load %arg18[%c0_129, %c0_130] : memref<8x32xf32, #tpu.memory_space<vmem>>, vector<8x32xf32>
    %c0_131 = arith.constant 0 : index
    %c0_132 = arith.constant 0 : index
    %508 = vector.load %arg19[%c0_131, %c0_132] : memref<8x32xf32, #tpu.memory_space<vmem>>, vector<8x32xf32>
    %509 = tpu.concatenate %507, %508 in 1 : vector<8x32xf32>, vector<8x32xf32> -> vector<8x64xf32>
    %510 = arith.truncf %509 : vector<8x64xf32> to vector<8x64xbf16>
    %c0_133 = arith.constant 0 : index
    %c0_134 = arith.constant 0 : index
    %511 = vector.load %arg11[%c0_133, %c0_134] : memref<64x64xbf16, #tpu.memory_space<vmem>>, vector<64x64xbf16>
    %cst_135 = arith.constant dense<0.000000e+00> : vector<8x64xf32>
    %512 = tpu.matmul %510, %511, %cst_135 {dimension_numbers = #tpu.dot_dimension_numbers<[1], [0], [0], [1], [0, 0, 1, 1], [], []>} : vector<8x64xbf16>, vector<64x64xbf16>, vector<8x64xf32> -> vector<8x64xf32>
    %c0_136 = arith.constant 0 : index
    %c0_137 = arith.constant 0 : index
    %513 = vector.load %arg12[%c0_136, %c0_137] : memref<1x64xf32, #tpu.memory_space<vmem>>, vector<1x64xf32>
    %514 = vector.broadcast %513 : vector<1x64xf32> to vector<8x64xf32>
    %515 = arith.addf %512, %514 : vector<8x64xf32>
    %cst_138 = arith.constant 0.000000e+00 : f32
    %516 = vector.broadcast %cst_138 : f32 to vector<8x64xf32>
    %517 = arith.maximumf %515, %516 : vector<8x64xf32>
    %518 = arith.truncf %517 : vector<8x64xf32> to vector<8x64xbf16>
    %c0_139 = arith.constant 0 : index
    %c0_140 = arith.constant 0 : index
    %519 = vector.load %arg13[%c0_139, %c0_140] : memref<64x64xbf16, #tpu.memory_space<vmem>>, vector<64x64xbf16>
    %cst_141 = arith.constant dense<0.000000e+00> : vector<8x64xf32>
    %520 = tpu.matmul %518, %519, %cst_141 {dimension_numbers = #tpu.dot_dimension_numbers<[1], [0], [0], [1], [0, 0, 1, 1], [], []>} : vector<8x64xbf16>, vector<64x64xbf16>, vector<8x64xf32> -> vector<8x64xf32>
    %c0_142 = arith.constant 0 : index
    %c0_143 = arith.constant 0 : index
    %521 = vector.load %arg14[%c0_142, %c0_143] : memref<1x64xf32, #tpu.memory_space<vmem>>, vector<1x64xf32>
    %522 = vector.broadcast %521 : vector<1x64xf32> to vector<8x64xf32>
    %523 = arith.addf %520, %522 : vector<8x64xf32>
    %cst_144 = arith.constant 0.000000e+00 : f32
    %524 = vector.broadcast %cst_144 : f32 to vector<8x64xf32>
    %525 = arith.maximumf %523, %524 : vector<8x64xf32>
    %526 = arith.truncf %525 : vector<8x64xf32> to vector<8x64xbf16>
    %c0_145 = arith.constant 0 : index
    %c0_146 = arith.constant 0 : index
    %527 = vector.load %arg15[%c0_145, %c0_146] : memref<64x128xbf16, #tpu.memory_space<vmem>>, vector<64x128xbf16>
    %cst_147 = arith.constant dense<0.000000e+00> : vector<8x128xf32>
    %528 = tpu.matmul %526, %527, %cst_147 {dimension_numbers = #tpu.dot_dimension_numbers<[1], [0], [0], [1], [0, 0, 1, 1], [], []>} : vector<8x64xbf16>, vector<64x128xbf16>, vector<8x128xf32> -> vector<8x128xf32>
    %c0_148 = arith.constant 0 : index
    %c0_149 = arith.constant 0 : index
    %529 = vector.load %arg16[%c0_148, %c0_149] : memref<1x128xf32, #tpu.memory_space<vmem>>, vector<1x128xf32>
    %530 = vector.broadcast %529 : vector<1x128xf32> to vector<8x128xf32>
    %531 = arith.addf %528, %530 : vector<8x128xf32>
    %c0_150 = arith.constant 0 : index
    %c0_151 = arith.constant 0 : index
    %532 = vector.load %arg17[%c0_150, %c0_151] : memref<8x128xf32, #tpu.memory_space<vmem>>, vector<8x128xf32>
    tpu.vector_store %arg17[%c0_150, %c0_151], %531 {strides = array<i32>} : memref<8x128xf32, #tpu.memory_space<vmem>>, vector<8x128xf32>,
    return
  }
}

</mosaic_0001>

<bundles_post_ra>
// kernel: bilstm_bilstm_forward.1
= control target key start
LH: loop header
LB: loop body
LE: loop exit
PB: predicated region body
PF: predicated region fallthrough
CT: control target
= control target key end

     0   :  { %s3911_s0 = inlined_call_operand.vmem [shape: s32[64,1], index: 0, kind: input, shape index: {}]   ;;  %s3912_s1 = inlined_call_operand.vmem [shape: s32[64,1], index: 1, kind: input, shape index: {}]   ;;  %s3913_s2 = inlined_call_operand.vmem [shape: f32[8,8,64], index: 2, kind: input, shape index: {}]   ;;  %s3914_s3 = inlined_call_operand.vmem [shape: f32[8,1,64], index: 3, kind: input, shape index: {}]   ;;  %s3915_s4 = inlined_call_operand.vmem [shape: bf16[100,256], index: 4, kind: input, shape index: {}]   ;;  %s3916_s5 = inlined_call_operand.vmem [shape: f32[1,256], index: 5, kind: input, shape index: {}]   ;;  %s3917_s6 = inlined_call_operand.vmem [shape: bf16[64,256], index: 6, kind: input, shape index: {}]   ;;  %s3918_s7 = inlined_call_operand.vmem [shape: bf16[64,256], index: 7, kind: input, shape index: {}]   ;;  %s3919_s8 = inlined_call_operand.vmem [shape: bf16[64,256], index: 8, kind: input, shape index: {}]   ;;  %s3920_s9 = inlined_call_operand.vmem [shape: f32[1,256], index: 9, kind: input, shape index: {}]   ;;  %s3921_s10 = inlined_call_operand.vmem [shape: bf16[64,256], index: 10, kind: input, shape index: {}]   ;;  %s3922_s11 = inlined_call_operand.vmem [shape: bf16[64,64], index: 11, kind: input, shape index: {}]   ;;  %s3923_s12 = inlined_call_operand.vmem [shape: f32[1,64], index: 12, kind: input, shape index: {}]   ;;  %s3924_s13 = inlined_call_operand.vmem [shape: bf16[64,64], index: 13, kind: input, shape index: {}]   ;;  %s3925_s14 = inlined_call_operand.vmem [shape: f32[1,64], index: 14, kind: input, shape index: {}]   ;;  %s3926_s15 = inlined_call_operand.vmem [shape: bf16[64,128], index: 15, kind: input, shape index: {}]   ;;  %s3927_s16 = inlined_call_operand.vmem [shape: f32[1,128], index: 16, kind: input, shape index: {}]   ;;  %s3928_s17 = inlined_call_operand.hbm [shape: f32[8,128], index: 17, kind: output, shape index: {}]  }
   0x1   :  { %3931 = sst [smem:[#allocation7_spill]] %s3911_s0 }
   0x2   :  { %3932 = sst [smem:[#allocation8_spill]] %s3912_s1 }
   0x3   :  { %3933 = sst [smem:[#allocation9_spill]] %s3923_s12 }
   0x4   :  { %s3934_s26 = sld [smem:[#allocation7_spill]]  ;;  %v3013_v2 = vmov 0   ;;  %v188_v5 = vld [vmem:[%s3915_s4 + $0x60] sm:$0x33]  ;;  %vm279_vm0 = vcmask 1041408  }
   0x5   :  { %s3935_s12 = sld [smem:[#allocation8_spill]]  ;;  %2714 = vset.pattern.permute.xlu0 %v3013_v2  ;;  %2715 = vset.pattern.permute.xlu1 %v3013_v2  ;;  %v2530_v6 = vcombine.high %v188_v5, %v188_v5  ;;  %v2529_v7 = vcombine.low %v188_v5, %v188_v5  ;;  %v2718_v8 = vld [vmem:[%s3915_s4 + $0x54] ss:$8 sps:$4 sm:$0xff]   ;;  %v2720_v13 = vld [vmem:[%s3915_s4 + $0x50] ss:$8 sps:$4 sm:$0xff]  }
   0x6   :  { %443 = vmatprep.mubr.bf16.mxu1 %v3013_v2  ;;  %318 = vmatprep.mubr.bf16.mxu0 %v3013_v2  ;;  %v3135_v12 = vld [vmem:[%s3917_s6 + $0x34] ss:$8 sps:$4 sm:$0xff]   ;;  %v3143_v14 = vld [vmem:[%s3917_s6 + $0x30] ss:$8 sps:$4 sm:$0xff]   ;;  %v2721_v15 = vld [vmem:[%s3915_s4 + $0x44] ss:$8 sps:$4 sm:$0xff]  }
   0x7   :  { %2531 = vmatprep.subr.msk.bf16.mxu0 %vm279_vm0, %v2530_v6  ;;  %v281_v11 = vsel %vm279_vm0, %v2529_v7, 0  ;;  %419 = vmatprep.subr.bf16.mxu1 %v3135_v12  ;;  %v3152_v16 = vld [vmem:[%s3917_s6 + $0x24] ss:$8 sps:$4 sm:$0xff]   ;;  %v3158_v17 = vld [vmem:[%s3917_s6 + $0x20] ss:$8 sps:$4 sm:$0xff]  }
   0x8   :  { %289 = vmatpush1.bf16.msra.mxu0 %v281_v11  ;;  %420 = vmatpush1.bf16.msra.mxu1 %v3143_v14  ;;  %v2725_v18 = vld [vmem:[%s3915_s4 + $0x40] ss:$8 sps:$4 sm:$0xff]   ;;  %v2727_v19 = vld [vmem:[%s3915_s4 + $0x34] ss:$8 sps:$4 sm:$0xff]   ;;  %v3176_v21 = vld [vmem:[%s3917_s6 + $0x10] ss:$8 sps:$4 sm:$0xff]  }
   0x9   :  { %290 = vmatprep.subr.bf16.mxu0 %v2718_v8  ;;  %421 = vmatprep.subr.bf16.mxu1 %v3152_v16  ;;  %v3170_v20 = vld [vmem:[%s3917_s6 + $0x14] ss:$8 sps:$4 sm:$0xff]   ;;  %v2731_v22 = vld [vmem:[%s3915_s4 + $0x30] ss:$8 sps:$4 sm:$0xff]   ;;  %v3185_v23 = vld [vmem:[%s3917_s6 + $0x4] ss:$8 sps:$4 sm:$0xff]  }
   0xa   :  { %v60_v0 = vld [vmem:[%s3934_s26] sm:$0xff]  ;;  %v61_v9 = vld [vmem:[%s3934_s26 + $0x8] sm:$0xff]  ;;  %v2739_v27 = vld [vmem:[%s3915_s4 + $0x14] ss:$8 sps:$4 sm:$0xff]  }
   0xb   :  { %v100_v1 = vld [vmem:[%s3935_s12] sm:$0xff]  ;;  %v101_v4 = vld [vmem:[%s3935_s12 + $0x8] sm:$0xff]  ;;  %69 = vperm.xlu0 %2714, %v60_v0   ;;  %v2743_v28 = vld [vmem:[%s3915_s4 + $0x10] ss:$8 sps:$4 sm:$0xff]  }
   0xc   :  { %v108_v3 = vadd.s32 50, %v100_v1  ;;  %v109_v10 = vadd.s32 50, %v101_v4  ;;  %291 = vmatpush1.bf16.msra.mxu0 %v2720_v13  ;;  %422 = vmatpush1.bf16.msra.mxu1 %v3158_v17  ;;  %v2733_v24 = vld [vmem:[%s3915_s4 + $0x24] ss:$8 sps:$4 sm:$0xff]   ;;  %v3193_v25 = vld [vmem:[%s3917_s6] ss:$8 sps:$4 sm:$0xff]  }
   0xd   :  { %292 = vmatprep.subr.bf16.mxu0 %v2721_v15  ;;  %423 = vmatprep.subr.bf16.mxu1 %v3170_v20  ;;  %v2737_v26 = vld [vmem:[%s3915_s4 + $0x20] ss:$8 sps:$4 sm:$0xff]   ;;  %v2745_v29 = vld [vmem:[%s3915_s4 + $0x4] ss:$8 sps:$4 sm:$0xff]  }
   0xe   :  { %117 = vperm.xlu1 %2715, %v108_v3   ;;  %v2747_v30 = vld [vmem:[%s3915_s4] ss:$8 sps:$4 sm:$0xff]  }
   0xf   :  { %72 = vperm.xlu0 %2714, %v61_v9  }
  0x10   :  { %293 = vmatpush1.bf16.msra.mxu0 %v2725_v18  ;;  %424 = vmatpush1.bf16.msra.mxu1 %v3176_v21 }
  0x11   :  { %294 = vmatprep.subr.bf16.mxu0 %v2727_v19  ;;  %425 = vmatprep.subr.bf16.mxu1 %v3185_v23 }
  0x12   :  { %120 = vperm.xlu1 %2715, %v109_v10  }
  0x14   :  { %295 = vmatpush1.bf16.msra.mxu0 %v2731_v22  ;;  %426 = vmatpush1.bf16.msra.mxu1 %v3193_v25 }
  0x15   :  { %296 = vmatprep.subr.bf16.mxu0 %v2733_v24  ;;  %513 = vmatprep.subr.bf16.mxu1 %v3135_v12 }
  0x17   :  { %444 = vmatmul.mubr.bf16.vlgmr.msra.gmra.mxu1 %v3013_v2 }
  0x18   :  { %297 = vmatpush1.bf16.msra.mxu0 %v2737_v26  ;;  %514 = vmatpush1.bf16.msra.mxu1 %v3143_v14 }
  0x19   :  { %298 = vmatprep.subr.bf16.mxu0 %v2739_v27  ;;  %537 = vmatprep.mubr.bf16.mxu1 %v3013_v2 }
  0x1a   :  { %515 = vmatprep.subr.bf16.mxu1 %v3152_v16 }
  0x1c   :  { %299 = vmatpush1.bf16.msra.mxu0 %v2743_v28  ;;  %516 = vmatpush1.bf16.msra.mxu1 %v3158_v17 }
  0x1d   :  { %300 = vmatprep.subr.bf16.mxu0 %v2745_v29  ;;  %517 = vmatprep.subr.bf16.mxu1 %v3170_v20 }
  0x20   :  { %301 = vmatpush1.bf16.msra.mxu0 %v2747_v30 }
  0x21   :  { %721 = vmatprep.subr.bf16.mxu0 %v3135_v12 }
  0x22   :  { %22 = vsyncpa [#allocation5], 0  ;;  %518 = vmatpush1.bf16.msra.mxu1 %v3176_v21  ;;  %v58_v31 = vlaneseq  ;;  %v3014_v37 = vmov 0.0   ;;  %vm266_vm7 = vcmask 818176   ;;  %v189_v47 = vld [vmem:[%s3916_s5] sm:$0x3] }
  0x23   :  { %519 = vmatprep.subr.bf16.mxu1 %v3185_v23  ;;  %s3015_s1 = smov 64   ;;  %v484_v8 = vld [vmem:[%s3913_s2] sm:$0xff]  ;;  %v62_v11 = vld [vmem:[%s3934_s26 + $0x10] sm:$0xff]  ;;  %vm407_vm8 = vcmask 523264   ;;  %s3018_s30 = smov 32  }
  0x24   :  { %v3225_v32 = vand.u32 127, %v58_v31  ;;  %v3243_v45 = vshrl.u32 %v58_v31, 7  ;;  %v102_v13 = vld [vmem:[%s3935_s12 + $0x10] sm:$0xff] }
  0x25   :  { %v110_v15 = vadd.s32 50, %v102_v13  ;;  %v64_v13 = vld [vmem:[%s3934_s26 + $0x20] sm:$0xff] }
  0x26   :  { %520 = vmatpush1.bf16.msra.mxu1 %v3193_v25  ;;  %v197_v46 = vsub.s32 1, %v3243_v45  ;;  %v193_v54 = vsub.s32 0, %v3243_v45 }
  0x27   :  { %617 = vmatprep.subr.bf16.mxu1 %v3135_v12 }
  0x28   :  { %v3251_v48 = vrot.slane %v189_v47, %v197_v46  ;;  %v3258_v55 = vrot.slane %v189_v47, %v193_v54 }
  0x86   :  { %v70_v33 = vpop.permute.xlu0 %69 }
  0x87   :  { %vm92_vm1 = vcmp.eq.s32.totalorder %v3225_v32, %v70_v33 }
  0x89   :  { %v118_v34 = vpop.permute.xlu1 %117 }
  0x8a   :  { %vm140_vm2 = vcmp.eq.s32.totalorder %v3225_v32, %v118_v34  ;;  %v73_v35 = vpop.permute.xlu0 %72 }
  0x8b   :  { %vm148_vm3 = vmor %vm92_vm1, %vm140_vm2  ;;  %vm93_vm4 = vcmp.eq.s32.totalorder %v3225_v32, %v73_v35 }
  0x8c   :  { %v2509_v38 = vsel %vm148_vm3, 1.0, %v3014_v37 }
  0x8d   :  { %v121_v36 = vpop.permute.xlu1 %120 }
  0x8e   :  { %vm141_vm5 = vcmp.eq.s32.totalorder %v3225_v32, %v121_v36 }
  0x8f   :  { %vm149_vm6 = vmor %vm93_vm4, %vm141_vm5 }
  0x90   :  { %v2510_v39 = vsel %vm149_vm6, 1.0, %v3014_v37 }
  0x91   :  { %v172_v40 = vpack.c.bf16 %v2510_v39, %v2509_v38 }
  0x93   :  { %2532 = vmatmul.mubr.msk.bf16.vlgmr.msra.gmra.mxu0 %vm266_vm7, %v172_v40 }
  0x94   :  { %328 = vmatprep.mubr.bf16.mxu0 %v3013_v2  ;;  %722 = vmatpush1.bf16.msra.mxu0 %v3143_v14 }
  0x95   :  { %723 = vmatprep.subr.bf16.mxu0 %v3152_v16 }
  0x98   :  { %724 = vmatpush1.bf16.msra.mxu0 %v3158_v17 }
  0x99   :  { %725 = vmatprep.subr.bf16.mxu0 %v3170_v20 }
  0x9c   :  { %726 = vmatpush1.bf16.msra.mxu0 %v3176_v21 }
  0x9d   :  { %727 = vmatprep.subr.bf16.mxu0 %v3185_v23 }
  0xa0   :  { %728 = vmatpush1.bf16.msra.mxu0 %v3193_v25 }
  0xa1   :  { %929 = vmatprep.subr.bf16.mxu0 %v3135_v12 }
  0xd7   :  { %v445_v41 = vpop.f32.mrf.mxu1 }
  0xd9   :  { %v447_v42 = vpop.f32.mrf.mxu1 }
  0xdb   :  { %v449_v43 = vpop.f32.mrf.mxu1 }
  0xdd   :  { %v450_v44 = vpop.f32.mrf.mxu1 }
 0x153   :  { %v320_v49 = vpop.f32.mrf.mxu0 }
 0x154   :  { %v321_v56 = vadd.f32 %v320_v49, %v3258_v55  ;;  %v63_v49 = vld [vmem:[%s3934_s26 + $0x18] sm:$0xff] }
 0x155   :  { %v322_v50 = vpop.f32.mrf.mxu0 }
 0x156   :  { %v323_v51 = vadd.f32 %v322_v50, %v3251_v48  ;;  %v452_v57 = vadd.f32 %v445_v41, %v321_v56  ;;  %v103_v50 = vld [vmem:[%s3935_s12 + $0x18] sm:$0xff] }
 0x157   :  { %v324_v27 = vpop.f32.mrf.mxu0 }
 0x158   :  { %v453_v52 = vadd.f32 %v447_v42, %v323_v51  ;;  %v2544_v58 = vmul.f32 -1.442695, %v452_v57  ;;  %v325_v29 = vadd.f32 %v324_v27, %v3258_v55  ;;  %v111_v51 = vadd.s32 50, %v103_v50  ;;  %v106_v27 = vld [vmem:[%s3935_s12 + $0x30] sm:$0xff] }
 0x159   :  { %v326_v28 = vpop.f32.mrf.mxu0 }
 0x15a   :  { %2796 = vtanh.f32 %v453_v52  ;;  %v2545_v5 = vmul.f32 -1.442695, %v453_v52  ;;  %v327_v31 = vadd.f32 %v326_v28, %v3251_v48 }
 0x15b   :  { %2798 = vpow2.f32 %v2544_v58 }
 0x167   :  { %v2797_v53 = vpop.eup %2796 }
 0x168   :  { %469 = vrot.lane.b32.xlu0 %v2797_v53, %s3015_s1  ;;  %v2799_v59 = vpop.eup %2798 }
 0x169   :  { %v460_v60 = vadd.f32 1.0, %v2799_v59 }
 0x16b   :  { %2800 = vrcp.f32 %v460_v60 }
 0x178   :  { %v2801_v61 = vpop.eup %2800 }
 0x179   :  { %v467_v0 = vmul.f32 0.0, %v2801_v61 }
 0x1da   :  { %v470_v62 = vpop.permute.xlu0 %469 }
 0x1db   :  { %v472_v63 = vmul.f32 %v2801_v61, %v470_v62 }
 0x1dd   :  { %474 = vrot.lane.b32.xlu1 %v472_v63, %s3015_s1 }
 0x24f   :  { %v475_v1 = vpop.permute.xlu1 %474 }
 0x250   :  { %v477_v3 = vadd.f32 %v475_v1, %v467_v0 }
 0x252   :  { %2802 = vtanh.f32 %v477_v3  ;;  %486 = vrot.lane.b32.xlu1 %v477_v3, %s3015_s1 }
 0x253   :  { %2804 = vpow2.f32 %v2545_v5 }
 0x25f   :  { %v2803_v4 = vpop.eup %2802 }
 0x260   :  { %480 = vrot.lane.b32.xlu0 %v2803_v4, %s3015_s1  ;;  %v2805_v6 = vpop.eup %2804 }
 0x261   :  { %v461_v7 = vadd.f32 1.0, %v2805_v6 }
 0x263   :  { %2806 = vrcp.f32 %v461_v7  ;;  %v2550_v7 = vld [vmem:[%s3913_s2 + $0x8] sm:$0xff] }
 0x270   :  { %v2807_v18 = vpop.eup %2806 }
 0x2c4   :  { %v487_v9 = vpop.permute.xlu1 %486 }
 0x2c5   :  { %v3267_v10 = vmul.f32 %v487_v9, %v484_v8 }
 0x2c7   :  { %562 = vrot.lane.b32.xlu1 %v3267_v10, %s3015_s1 }
 0x2cb   :  { %75 = vperm.xlu1 %2715, %v62_v11  }
 0x2cf   :  { %123 = vperm.xlu1 %2715, %v110_v15   ;;  %v104_v15 = vld [vmem:[%s3935_s12 + $0x20] sm:$0xff] }
 0x2d2   :  { %v481_v19 = vpop.permute.xlu0 %480 }
 0x2d3   :  { %v483_v22 = vmul.f32 %v2807_v18, %v481_v19  ;;  %v112_v18 = vadd.s32 50, %v104_v15 }
 0x2d5   :  { %v3277_v24 = vmul.f32 %v484_v8, %v483_v22 }
 0x2d7   :  { %v501_v26 = vpack.c.bf16 %v3277_v24, %v3277_v24 }
 0x2d9   :  { %2547 = vmatmul.mubr.msk.bf16.vlgmr.msra.gmra.mxu1 %vm407_vm8, %v501_v26 }
 0x2da   :  { %618 = vmatpush1.bf16.msra.mxu1 %v3143_v14  ;;  %641 = vmatprep.mubr.bf16.mxu1 %v3013_v2 }
 0x2db   :  { %619 = vmatprep.subr.bf16.mxu1 %v3152_v16 }
 0x2de   :  { %620 = vmatpush1.bf16.msra.mxu1 %v3158_v17 }
 0x2df   :  { %621 = vmatprep.subr.bf16.mxu1 %v3170_v20 }
 0x2e2   :  { %622 = vmatpush1.bf16.msra.mxu1 %v3176_v21 }
 0x2e3   :  { %623 = vmatprep.subr.bf16.mxu1 %v3185_v23 }
 0x2e6   :  { %624 = vmatpush1.bf16.msra.mxu1 %v3193_v25 }
 0x2e7   :  { %825 = vmatprep.subr.bf16.mxu1 %v3135_v12 }
 0x339   :  { %v563_v52 = vpop.permute.xlu1 %562 }
 0x346   :  { %v76_v59 = vpop.permute.xlu1 %75 }
 0x347   :  { %vm94_vm10 = vcmp.eq.s32.totalorder %v3225_v32, %v76_v59  ;;  %v105_v59 = vld [vmem:[%s3935_s12 + $0x28] sm:$0xff] }
 0x34a   :  { %v124_v60 = vpop.permute.xlu1 %123 }
 0x34b   :  { %vm142_vm9 = vcmp.eq.s32.totalorder %v3225_v32, %v124_v60  ;;  %v113_v60 = vadd.s32 50, %v105_v59 }
 0x34c   :  { %vm150_vm11 = vmor %vm94_vm10, %vm142_vm9 }
 0x34d   :  { %v2511_v0 = vsel %vm150_vm11, 1.0, %v3014_v37 }
 0x399   :  { %v539_v30 = vpop.f32.mrf.mxu1 }
 0x39a   :  { %v546_v33 = vadd.f32 %v539_v30, %v325_v29 }
 0x39b   :  { %v541_v34 = vpop.f32.mrf.mxu1 }
 0x39c   :  { %v547_v35 = vadd.f32 %v541_v34, %v327_v31  ;;  %v2548_v40 = vmul.f32 -1.442695, %v546_v33  ;;  %v114_v31 = vadd.s32 50, %v106_v27 }
 0x39d   :  { %v543_v36 = vpop.f32.mrf.mxu1 }
 0x39e   :  { %2808 = vtanh.f32 %v547_v35  ;;  %v2549_v4 = vmul.f32 -1.442695, %v547_v35 }
 0x39f   :  { %v544_v38 = vpop.f32.mrf.mxu1  ;;  %2810 = vpow2.f32 %v2548_v40 }
 0x3ab   :  { %v2809_v39 = vpop.eup %2808 }
 0x3ac   :  { %567 = vrot.lane.b32.xlu0 %v2809_v39, %s3015_s1  ;;  %v2811_v41 = vpop.eup %2810 }
 0x3ad   :  { %v554_v42 = vadd.f32 1.0, %v2811_v41 }
 0x3af   :  { %2812 = vrcp.f32 %v554_v42 }
 0x3bc   :  { %v2813_v43 = vpop.eup %2812 }
 0x3bd   :  { %v565_v53 = vmul.f32 %v2813_v43, %v563_v52 }
 0x41e   :  { %v568_v44 = vpop.permute.xlu0 %567 }
 0x41f   :  { %v570_v47 = vmul.f32 %v2813_v43, %v568_v44 }
 0x421   :  { %572 = vrot.lane.b32.xlu0 %v570_v47, %s3015_s1 }
 0x425   :  { %78 = vperm.xlu0 %2714, %v63_v49  }
 0x429   :  { %126 = vperm.xlu0 %2714, %v111_v51  }
 0x493   :  { %v573_v56 = vpop.permute.xlu0 %572 }
 0x494   :  { %v575_v57 = vadd.f32 %v573_v56, %v565_v53 }
 0x496   :  { %2814 = vtanh.f32 %v575_v57  ;;  %v584_v58 = vsub.f32 %v575_v57, %v563_v52 }
 0x497   :  { %2816 = vpow2.f32 %v2549_v4 }
 0x498   :  { %586 = vrot.lane.b32.xlu0 %v584_v58, %s3015_s1  ;;  %v65_v58 = vld [vmem:[%s3934_s26 + $0x28] sm:$0xff] }
 0x4a0   :  { %v79_v61 = vpop.permute.xlu0 %78 }
 0x4a1   :  { %vm95_vm12 = vcmp.eq.s32.totalorder %v3225_v32, %v79_v61  ;;  %v67_v61 = vld [vmem:[%s3934_s26 + $0x38] sm:$0xff] }
 0x4a3   :  { %v2815_v62 = vpop.eup %2814 }
 0x4a4   :  { %578 = vrot.lane.b32.xlu1 %v2815_v62, %s3015_s1  ;;  %v127_v63 = vpop.permute.xlu0 %126  ;;  %v2817_v5 = vpop.eup %2816  ;;  %v107_v62 = vld [vmem:[%s3935_s12 + $0x38] sm:$0xff] }
 0x4a5   :  { %vm143_vm13 = vcmp.eq.s32.totalorder %v3225_v32, %v127_v63  ;;  %v555_v6 = vadd.f32 1.0, %v2817_v5  ;;  %v115_v63 = vadd.s32 50, %v107_v62 }
 0x4a6   :  { %vm151_vm14 = vmor %vm95_vm12, %vm143_vm13  ;;  %vm1641_vm13 = vcmask 254977  }
 0x4a7   :  { %v2512_v1 = vsel %vm151_vm14, 1.0, %v3014_v37  ;;  %2818 = vrcp.f32 %v555_v6  ;;  %vm1743_vm14 = vcmask 256002  }
 0x4a8   :  { %v173_v3 = vpack.c.bf16 %v2512_v1, %v2511_v0 }
 0x4aa   :  { %2533 = vmatmul.mubr.msk.bf16.gmra.mxu0 %vm266_vm7, %v173_v3 }
 0x4ab   :  { %338 = vmatprep.mubr.bf16.mxu0 %v3013_v2 }
 0x4b4   :  { %v2819_v19 = vpop.eup %2818 }
 0x50a   :  { %v587_v8 = vpop.permute.xlu0 %586 }
 0x50b   :  { %v589_v9 = vmul.f32 %v2550_v7, %v587_v8 }
 0x50d   :  { %v3315_v11 = vadd.f32 %v589_v9, %v3267_v10  ;;  %v66_v10 = vld [vmem:[%s3934_s26 + $0x30] sm:$0xff] }
 0x50f   :  { %666 = vrot.lane.b32.xlu0 %v3315_v11, %s3015_s1 }
 0x513   :  { %81 = vperm.xlu0 %2714, %v64_v13  }
 0x516   :  { %v579_v22 = vpop.permute.xlu1 %578 }
 0x517   :  { %v581_v26 = vmul.f32 %v2819_v19, %v579_v22  ;;  %129 = vperm.xlu0 %2714, %v112_v18  }
 0x519   :  { %v591_v28 = vsub.f32 %v581_v26, %v3277_v24  ;;  %v3332_v29 = vmul.f32 %v2550_v7, %v581_v26 }
 0x51b   :  { %v592_v30 = vmul.f32 %v2550_v7, %v591_v28  ;;  %87 = vperm.xlu0 %2714, %v66_v10  }
 0x51d   :  { %v3335_v33 = vadd.f32 %v592_v30, %v3277_v24 }
 0x51f   :  { %v605_v34 = vpack.c.bf16 %v3335_v33, %v3335_v33  ;;  %135 = vperm.xlu0 %2714, %v114_v31  }
 0x521   :  { %2553 = vmatmul.mubr.msk.bf16.vlgmr.msra.gmra.mxu1 %vm407_vm8, %v605_v34 }
 0x522   :  { %826 = vmatpush1.bf16.msra.mxu1 %v3143_v14  ;;  %849 = vmatprep.mubr.bf16.mxu1 %v3013_v2 }
 0x523   :  { %827 = vmatprep.subr.bf16.mxu1 %v3152_v16 }
 0x526   :  { %828 = vmatpush1.bf16.msra.mxu1 %v3158_v17 }
 0x527   :  { %829 = vmatprep.subr.bf16.mxu1 %v3170_v20 }
 0x52a   :  { %830 = vmatpush1.bf16.msra.mxu1 %v3176_v21 }
 0x52b   :  { %831 = vmatprep.subr.bf16.mxu1 %v3185_v23 }
 0x52e   :  { %832 = vmatpush1.bf16.msra.mxu1 %v3193_v25 }
 0x52f   :  { %1033 = vmatprep.subr.bf16.mxu1 %v3135_v12 }
 0x56a   :  { %v330_v35 = vpop.f32.mrf.mxu0 }
 0x56b   :  { %v331_v38 = vadd.f32 %v330_v35, %v3258_v55 }
 0x56c   :  { %v332_v36 = vpop.f32.mrf.mxu0 }
 0x56d   :  { %v333_v40 = vadd.f32 %v332_v36, %v3251_v48 }
 0x581   :  { %v667_v0 = vpop.permute.xlu0 %666 }
 0x58e   :  { %v82_v4 = vpop.permute.xlu0 %81 }
 0x58f   :  { %vm96_vm0 = vcmp.eq.s32.totalorder %v3225_v32, %v82_v4 }
 0x592   :  { %v130_v7 = vpop.permute.xlu0 %129 }
 0x593   :  { %vm144_vm15 = vcmp.eq.s32.totalorder %v3225_v32, %v130_v7 }
 0x594   :  { %vm152_vm1 = vmor %vm96_vm0, %vm144_vm15  ;;  %vm1844_vm15 = vcmask 257027   ;;  %vm1941_vm0 = vcmask 258052  }
 0x595   :  { %v2513_v19 = vsel %vm152_vm1, 1.0, %v3014_v37  ;;  %vm2036_vm1 = vcmask 259077  }
 0x596   :  { %v88_v8 = vpop.permute.xlu0 %87 }
 0x597   :  { %vm98_vm6 = vcmp.eq.s32.totalorder %v3225_v32, %v88_v8 }
 0x59a   :  { %v136_v18 = vpop.permute.xlu0 %135 }
 0x59b   :  { %vm146_vm5 = vcmp.eq.s32.totalorder %v3225_v32, %v136_v18 }
 0x59c   :  { %vm154_vm9 = vmor %vm98_vm6, %vm146_vm5  ;;  %vm2241_vm5 = vcmask 261120  }
 0x59d   :  { %v2515_v28 = vsel %vm154_vm9, 1.0, %v3014_v37 }
 0x5e1   :  { %v643_v39 = vpop.f32.mrf.mxu1 }
 0x5e2   :  { %v650_v41 = vadd.f32 %v643_v39, %v331_v38  ;;  %v2556_v38 = vld [vmem:[%s3913_s2 + $0x10] sm:$0xff] }
 0x5e3   :  { %v645_v42 = vpop.f32.mrf.mxu1 }
 0x5e4   :  { %v3351_v43 = vadd.f32 %v645_v42, %v333_v40  ;;  %v2554_v50 = vmul.f32 -1.442695, %v650_v41  ;;  %v2552_v41 = vld [vmem:[%s3914_s3 + $0x1] ss:$0 sm:$0xff] }
 0x5e5   :  { %v647_v44 = vpop.f32.mrf.mxu1 }
 0x5e6   :  { %2820 = vtanh.f32 %v3351_v43  ;;  %v2555_v34 = vmul.f32 -1.442695, %v3351_v43  ;;  %v2546_v43 = vld [vmem:[%s3914_s3] ss:$0 sm:$0xff] }
 0x5e7   :  { %v648_v47 = vpop.f32.mrf.mxu1  ;;  %2822 = vpow2.f32 %v2554_v50  ;;  %v500_v50 = vadd.f32 %v2546_v43, %v3277_v24  ;;  %v334_v24 = vpop.f32.mrf.mxu0 }
 0x5e8   :  { %v603_v47 = vadd.f32 %v2552_v41, %v3332_v29 }
 0x5f3   :  { %v2821_v49 = vpop.eup %2820 }
 0x5f4   :  { %671 = vrot.lane.b32.xlu1 %v2821_v49, %s3015_s1  ;;  %v2823_v51 = vpop.eup %2822 }
 0x5f5   :  { %v658_v52 = vadd.f32 1.0, %v2823_v51 }
 0x5f7   :  { %2824 = vrcp.f32 %v658_v52 }
 0x604   :  { %v2825_v53 = vpop.eup %2824 }
 0x605   :  { %v669_v1 = vmul.f32 %v2825_v53, %v667_v0 }
 0x666   :  { %v672_v56 = vpop.permute.xlu1 %671 }
 0x667   :  { %v674_v57 = vmul.f32 %v2825_v53, %v672_v56  ;;  %v604_v53 = vmax.f32 %v500_v50, %v603_v47 }
 0x669   :  { %676 = vrot.lane.b32.xlu1 %v674_v57, %s3015_s1 }
 0x66d   :  { %84 = vperm.xlu1 %2715, %v65_v58  }
 0x671   :  { %132 = vperm.xlu1 %2715, %v113_v60  }
 0x675   :  { %90 = vperm.xlu1 %2715, %v67_v61  }
 0x679   :  { %138 = vperm.xlu1 %2715, %v115_v63  }
 0x6db   :  { %v677_v3 = vpop.permute.xlu1 %676 }
 0x6dc   :  { %v679_v5 = vadd.f32 %v677_v3, %v669_v1 }
 0x6de   :  { %2826 = vtanh.f32 %v679_v5  ;;  %v688_v6 = vsub.f32 %v679_v5, %v667_v0 }
 0x6df   :  { %2828 = vpow2.f32 %v2555_v34 }
 0x6e0   :  { %690 = vrot.lane.b32.xlu1 %v688_v6, %s3015_s1 }
 0x6e8   :  { %v85_v9 = vpop.permute.xlu1 %84 }
 0x6e9   :  { %vm97_vm2 = vcmp.eq.s32.totalorder %v3225_v32, %v85_v9 }
 0x6eb   :  { %v2827_v13 = vpop.eup %2826 }
 0x6ec   :  { %682 = vrot.lane.b32.xlu0 %v2827_v13, %s3015_s1  ;;  %v133_v15 = vpop.permute.xlu1 %132  ;;  %v2829_v35 = vpop.eup %2828 }
 0x6ed   :  { %vm145_vm3 = vcmp.eq.s32.totalorder %v3225_v32, %v133_v15  ;;  %v659_v36 = vadd.f32 1.0, %v2829_v35 }
 0x6ee   :  { %vm153_vm4 = vmor %vm97_vm2, %vm145_vm3  ;;  %vm2133_vm2 = vcmask 260102   ;;  %vm2228_vm3 = vcmask 261127  }
 0x6ef   :  { %v2514_v22 = vsel %vm153_vm4, 1.0, %v3014_v37  ;;  %2830 = vrcp.f32 %v659_v36  ;;  %vm3017_vm4 = vmmov 0  }
 0x6f0   :  { %v174_v26 = vpack.c.bf16 %v2514_v22, %v2513_v19  ;;  %v91_v10 = vpop.permute.xlu1 %90 }
 0x6f1   :  { %vm99_vm10 = vcmp.eq.s32.totalorder %v3225_v32, %v91_v10 }
 0x6f2   :  { %2534 = vmatmul.mubr.msk.bf16.gmra.mxu0 %vm266_vm7, %v174_v26 }
 0x6f3   :  { %348 = vmatprep.mubr.bf16.mxu0 %v3013_v2 }
 0x6f4   :  { %v139_v27 = vpop.permute.xlu1 %138 }
 0x6f5   :  { %vm147_vm11 = vcmp.eq.s32.totalorder %v3225_v32, %v139_v27 }
 0x6f6   :  { %vm155_vm12 = vmor %vm99_vm10, %vm147_vm11 }
 0x6f7   :  { %v2516_v30 = vsel %vm155_vm12, 1.0, %v3014_v37 }
 0x6f8   :  { %v175_v31 = vpack.c.bf16 %v2516_v30, %v2515_v28 }
 0x6fa   :  { %2535 = vmatmul.mubr.msk.bf16.gmra.mxu0 %vm266_vm7, %v175_v31  ;;  %vm1542_vm7 = vcmask 253952  }
 0x6fb   :  { %745 = vmatprep.mubr.bf16.mxu0 %v3013_v2 }
 0x6fc   :  { %v2831_v42 = vpop.eup %2830 }
 0x752   :  { %v691_v32 = vpop.permute.xlu1 %690 }
 0x753   :  { %v693_v39 = vmul.f32 %v2556_v38, %v691_v32 }
 0x755   :  { %v3391_v40 = vadd.f32 %v693_v39, %v3315_v11  ;;  %v2558_v11 = vld [vmem:[%s3914_s3 + $0x2] ss:$0 sm:$0xff] }
 0x757   :  { %770 = vrot.lane.b32.xlu1 %v3391_v40, %s3015_s1 }
 0x75e   :  { %v683_v44 = vpop.permute.xlu0 %682 }
 0x75f   :  { %v685_v49 = vmul.f32 %v2831_v42, %v683_v44  ;;  %v2562_v42 = vld [vmem:[%s3913_s2 + $0x18] sm:$0xff] }
 0x761   :  { %v695_v51 = vsub.f32 %v685_v49, %v3335_v33  ;;  %v698_v52 = vmul.f32 %v2556_v38, %v685_v49 }
 0x763   :  { %v696_v56 = vmul.f32 %v2556_v38, %v695_v51  ;;  %v707_v57 = vadd.f32 %v2558_v11, %v698_v52  ;;  %v2564_v51 = vld [vmem:[%s3914_s3 + $0x3] ss:$0 sm:$0xff] }
 0x765   :  { %v3408_v58 = vadd.f32 %v696_v56, %v3335_v33  ;;  %v3410_v59 = vmax.f32 %v604_v53, %v707_v57  ;;  %v336_v33 = vpop.f32.mrf.mxu0 }
 0x766   :  { %v337_v6 = vadd.f32 %v336_v33, %v3251_v48 }
 0x767   :  { %v709_v29 = vpack.c.bf16 %v3408_v58, %v3408_v58 }
 0x769   :  { %2559 = vmatmul.mubr.msk.bf16.vlgmr.msra.gmra.mxu0 %vm407_vm8, %v709_v29 }
 0x76a   :  { %930 = vmatpush1.bf16.msra.mxu0 %v3143_v14  ;;  %953 = vmatprep.mubr.bf16.mxu0 %v3013_v2 }
 0x76b   :  { %931 = vmatprep.subr.bf16.mxu0 %v3152_v16 }
 0x76e   :  { %932 = vmatpush1.bf16.msra.mxu0 %v3158_v17 }
 0x76f   :  { %933 = vmatprep.subr.bf16.mxu0 %v3170_v20 }
 0x772   :  { %934 = vmatpush1.bf16.msra.mxu0 %v3176_v21 }
 0x773   :  { %935 = vmatprep.subr.bf16.mxu0 %v3185_v23 }
 0x776   :  { %936 = vmatpush1.bf16.msra.mxu0 %v3193_v25 }
 0x777   :  { %1137 = vmatprep.subr.bf16.mxu0 %v3135_v12  ;;  %v335_v12 = vadd.f32 %v334_v24, %v3258_v55 }
 0x7b2   :  { %v3424_v60 = vpop.f32.mrf.mxu0 }
 0x7b4   :  { %v3426_v61 = vpop.f32.mrf.mxu0 }
 0x7b6   :  { %v3428_v62 = vpop.f32.mrf.mxu0 }
 0x7b8   :  { %v3430_v63 = vpop.f32.mrf.mxu0 }
 0x7ba   :  { %v3432_v0 = vpop.f32.mrf.mxu0 }
 0x7bc   :  { %v3434_v1 = vpop.f32.mrf.mxu0 }
 0x7be   :  { %v3436_v3 = vpop.f32.mrf.mxu0 }
 0x7c0   :  { %v3438_v4 = vpop.f32.mrf.mxu0 }
 0x7c9   :  { %v771_v30 = vpop.permute.xlu1 %770 }
 0x829   :  { %v747_v5 = vpop.f32.mrf.mxu0 }
 0x82a   :  { %v754_v7 = vadd.f32 %v747_v5, %v335_v12 }
 0x82b   :  { %v749_v8 = vpop.f32.mrf.mxu0 }
 0x82c   :  { %v755_v9 = vadd.f32 %v749_v8, %v337_v6  ;;  %v2560_v19 = vmul.f32 -1.442695, %v754_v7 }
 0x82d   :  { %v751_v13 = vpop.f32.mrf.mxu0 }
 0x82e   :  { %2832 = vtanh.f32 %v755_v9  ;;  %v2561_v32 = vmul.f32 -1.442695, %v755_v9 }
 0x82f   :  { %v752_v15 = vpop.f32.mrf.mxu0  ;;  %2834 = vpow2.f32 %v2560_v19 }
 0x83b   :  { %v2833_v18 = vpop.eup %2832 }
 0x83c   :  { %775 = vrot.lane.b32.xlu0 %v2833_v18, %s3015_s1  ;;  %v2835_v22 = vpop.eup %2834 }
 0x83d   :  { %v762_v26 = vadd.f32 1.0, %v2835_v22 }
 0x83f   :  { %2836 = vrcp.f32 %v762_v26 }
 0x84c   :  { %v2837_v10 = vpop.eup %2836 }
 0x84d   :  { %v773_v31 = vmul.f32 %v2837_v10, %v771_v30 }
 0x8ae   :  { %v776_v27 = vpop.permute.xlu0 %775 }
 0x8af   :  { %v778_v28 = vmul.f32 %v2837_v10, %v776_v27 }
 0x8b1   :  { %780 = vrot.lane.b32.xlu0 %v778_v28, %s3015_s1 }
 0x923   :  { %v781_v34 = vpop.permute.xlu0 %780 }
 0x924   :  { %v783_v35 = vadd.f32 %v781_v34, %v773_v31  ;;  %v2568_v31 = vld [vmem:[%s3913_s2 + $0x20] sm:$0xff] }
 0x926   :  { %2838 = vtanh.f32 %v783_v35  ;;  %v792_v36 = vsub.f32 %v783_v35, %v771_v30 }
 0x927   :  { %2840 = vpow2.f32 %v2561_v32 }
 0x928   :  { %794 = vrot.lane.b32.xlu0 %v792_v36, %s3015_s1 }
 0x933   :  { %v2839_v38 = vpop.eup %2838 }
 0x934   :  { %786 = vrot.lane.b32.xlu1 %v2839_v38, %s3015_s1  ;;  %v2841_v39 = vpop.eup %2840 }
 0x935   :  { %v763_v41 = vadd.f32 1.0, %v2841_v39 }
 0x937   :  { %2842 = vrcp.f32 %v763_v41  ;;  %v2570_v41 = vld [vmem:[%s3914_s3 + $0x4] ss:$0 sm:$0xff] }
 0x944   :  { %v2843_v49 = vpop.eup %2842 }
 0x99a   :  { %v795_v43 = vpop.permute.xlu0 %794 }
 0x99b   :  { %v797_v44 = vmul.f32 %v2562_v42, %v795_v43 }
 0x99d   :  { %v798_v47 = vadd.f32 %v797_v44, %v3391_v40  ;;  %v341_v40 = vadd.f32 %v3424_v60, %v3258_v55 }
 0x99f   :  { %874 = vrot.lane.b32.xlu0 %v798_v47, %s3015_s1 }
 0x9a6   :  { %v787_v11 = vpop.permute.xlu1 %786 }
 0x9a7   :  { %v789_v50 = vmul.f32 %v2843_v49, %v787_v11 }
 0x9a9   :  { %v799_v52 = vsub.f32 %v789_v50, %v3408_v58  ;;  %v802_v53 = vmul.f32 %v2562_v42, %v789_v50 }
 0x9ab   :  { %v800_v56 = vmul.f32 %v2562_v42, %v799_v52  ;;  %v811_v57 = vadd.f32 %v2564_v51, %v802_v53  ;;  %v2989_v52 = vld [vmem:[%s3917_s6 + $0x24] ss:$8 sps:$4 sm:$0xff]   ;;  %v2990_v53 = vld [vmem:[%s3917_s6 + $0x20] ss:$8 sps:$4 sm:$0xff]  }
 0x9ad   :  { %v801_v29 = vadd.f32 %v800_v56, %v3408_v58  ;;  %v812_v24 = vmax.f32 %v3410_v59, %v811_v57  ;;  %v345_v56 = vadd.f32 %v3428_v62, %v3258_v55 }
 0x9af   :  { %v813_v33 = vpack.c.bf16 %v801_v29, %v801_v29 }
 0x9b1   :  { %2565 = vmatmul.mubr.msk.bf16.vlgmr.msra.gmra.mxu1 %vm407_vm8, %v813_v33 }
 0x9b2   :  { %1034 = vmatpush1.bf16.msra.mxu1 %v3143_v14  ;;  %1057 = vmatprep.mubr.bf16.mxu1 %v3013_v2  ;;  %v343_v14 = vadd.f32 %v3426_v61, %v3251_v48 }
 0x9b3   :  { %1035 = vmatprep.subr.bf16.mxu1 %v3152_v16 }
 0x9b6   :  { %1036 = vmatpush1.bf16.msra.mxu1 %v3158_v17 }
 0x9b7   :  { %1037 = vmatprep.subr.bf16.mxu1 %v3170_v20 }
 0x9ba   :  { %1038 = vmatpush1.bf16.msra.mxu1 %v3176_v21 }
 0x9bb   :  { %1039 = vmatprep.subr.bf16.mxu1 %v3185_v23 }
 0x9be   :  { %1040 = vmatpush1.bf16.msra.mxu1 %v3193_v25 }
 0xa11   :  { %v875_v61 = vpop.permute.xlu0 %874 }
 0xa71   :  { %v851_v58 = vpop.f32.mrf.mxu1 }
 0xa72   :  { %v858_v59 = vadd.f32 %v851_v58, %v341_v40 }
 0xa73   :  { %v853_v12 = vpop.f32.mrf.mxu1 }
 0xa74   :  { %v859_v16 = vadd.f32 %v853_v12, %v343_v14  ;;  %v2566_v7 = vmul.f32 -1.442695, %v858_v59 }
 0xa75   :  { %v855_v5 = vpop.f32.mrf.mxu1 }
 0xa76   :  { %2844 = vtanh.f32 %v859_v16  ;;  %v2567_v27 = vmul.f32 -1.442695, %v859_v16 }
 0xa77   :  { %v856_v17 = vpop.f32.mrf.mxu1  ;;  %2846 = vpow2.f32 %v2566_v7 }
 0xa83   :  { %v2845_v6 = vpop.eup %2844 }
 0xa84   :  { %879 = vrot.lane.b32.xlu1 %v2845_v6, %s3015_s1  ;;  %v2847_v8 = vpop.eup %2846 }
 0xa85   :  { %v866_v9 = vadd.f32 1.0, %v2847_v8 }
 0xa87   :  { %2848 = vrcp.f32 %v866_v9 }
 0xa94   :  { %v2849_v13 = vpop.eup %2848 }
 0xa95   :  { %v877_v18 = vmul.f32 %v2849_v13, %v875_v61 }
 0xaf6   :  { %v880_v60 = vpop.permute.xlu1 %879 }
 0xaf7   :  { %v882_v15 = vmul.f32 %v2849_v13, %v880_v60  ;;  %v2574_v60 = vld [vmem:[%s3913_s2 + $0x28] sm:$0xff] }
 0xaf9   :  { %884 = vrot.lane.b32.xlu1 %v882_v15, %s3015_s1 }
 0xb6b   :  { %v885_v19 = vpop.permute.xlu1 %884 }
 0xb6c   :  { %v887_v22 = vadd.f32 %v885_v19, %v877_v18 }
 0xb6e   :  { %2850 = vtanh.f32 %v887_v22  ;;  %v896_v26 = vsub.f32 %v887_v22, %v875_v61 }
 0xb6f   :  { %2852 = vpow2.f32 %v2567_v27 }
 0xb70   :  { %898 = vrot.lane.b32.xlu1 %v896_v26, %s3015_s1 }
 0xb7b   :  { %v2851_v10 = vpop.eup %2850 }
 0xb7c   :  { %890 = vrot.lane.b32.xlu0 %v2851_v10, %s3015_s1  ;;  %v2853_v28 = vpop.eup %2852  ;;  %v2576_v10 = vld [vmem:[%s3914_s3 + $0x5] ss:$0 sm:$0xff] }
 0xb7d   :  { %v867_v30 = vadd.f32 1.0, %v2853_v28 }
 0xb7f   :  { %2854 = vrcp.f32 %v867_v30 }
 0xb8c   :  { %v2855_v38 = vpop.eup %2854 }
 0xbe2   :  { %v899_v34 = vpop.permute.xlu1 %898 }
 0xbe3   :  { %v901_v35 = vmul.f32 %v2568_v31, %v899_v34 }
 0xbe5   :  { %v902_v36 = vadd.f32 %v901_v35, %v798_v47  ;;  %v2988_v47 = vld [vmem:[%s3917_s6 + $0x30] ss:$8 sps:$4 sm:$0xff]  }
 0xbe7   :  { %978 = vrot.lane.b32.xlu1 %v902_v36, %s3015_s1 }
 0xbee   :  { %v891_v32 = vpop.permute.xlu0 %890 }
 0xbef   :  { %v893_v39 = vmul.f32 %v2855_v38, %v891_v32 }
 0xbf1   :  { %v903_v42 = vsub.f32 %v893_v39, %v801_v29  ;;  %v906_v43 = vmul.f32 %v2568_v31, %v893_v39  ;;  %v353_v39 = vadd.f32 %v3434_v1, %v3251_v48 }
 0xbf3   :  { %v904_v44 = vmul.f32 %v2568_v31, %v903_v42  ;;  %v915_v49 = vadd.f32 %v2570_v41, %v906_v43 }
 0xbf5   :  { %v905_v11 = vadd.f32 %v904_v44, %v801_v29  ;;  %v3481_v50 = vmax.f32 %v812_v24, %v915_v49  ;;  %v347_v29 = vadd.f32 %v3430_v63, %v3251_v48 }
 0xbf7   :  { %v917_v51 = vpack.c.bf16 %v905_v11, %v905_v11 }
 0xbf9   :  { %2571 = vmatmul.mubr.msk.bf16.vlgmr.msra.gmra.mxu0 %vm407_vm8, %v917_v51 }
 0xbfa   :  { %1138 = vmatpush1.bf16.msra.mxu0 %v2988_v47  ;;  %1161 = vmatprep.mubr.bf16.mxu0 %v3013_v2 }
 0xbfb   :  { %1139 = vmatprep.subr.bf16.mxu0 %v2989_v52 }
 0xbfe   :  { %1140 = vmatpush1.bf16.msra.mxu0 %v2990_v53 }
 0xbff   :  { %1141 = vmatprep.subr.bf16.mxu0 %v3170_v20 }
 0xc02   :  { %1142 = vmatpush1.bf16.msra.mxu0 %v3176_v21 }
 0xc03   :  { %1143 = vmatprep.subr.bf16.mxu0 %v3185_v23 }
 0xc06   :  { %1144 = vmatpush1.bf16.msra.mxu0 %v3193_v25 }
 0xc59   :  { %v979_v63 = vpop.permute.xlu1 %978 }
 0xcb9   :  { %v955_v57 = vpop.f32.mrf.mxu0 }
 0xcba   :  { %v962_v24 = vadd.f32 %v955_v57, %v345_v56 }
 0xcbb   :  { %v957_v33 = vpop.f32.mrf.mxu0 }
 0xcbc   :  { %v963_v40 = vadd.f32 %v957_v33, %v347_v29  ;;  %v2572_v21 = vmul.f32 -1.442695, %v962_v24 }
 0xcbd   :  { %v959_v58 = vpop.f32.mrf.mxu0 }
 0xcbe   :  { %2856 = vtanh.f32 %v963_v40  ;;  %v2573_v8 = vmul.f32 -1.442695, %v963_v40 }
 0xcbf   :  { %v960_v14 = vpop.f32.mrf.mxu0  ;;  %2858 = vpow2.f32 %v2572_v21 }
 0xccb   :  { %v2857_v20 = vpop.eup %2856 }
 0xccc   :  { %983 = vrot.lane.b32.xlu0 %v2857_v20, %s3015_s1  ;;  %v2859_v23 = vpop.eup %2858  ;;  %v2580_v20 = vld [vmem:[%s3913_s2 + $0x30] sm:$0xff] }
 0xccd   :  { %v970_v25 = vadd.f32 1.0, %v2859_v23 }
 0xccf   :  { %2860 = vrcp.f32 %v970_v25 }
 0xcdc   :  { %v2861_v59 = vpop.eup %2860 }
 0xcdd   :  { %v981_v16 = vmul.f32 %v2861_v59, %v979_v63 }
 0xd3e   :  { %v984_v62 = vpop.permute.xlu0 %983 }
 0xd3f   :  { %v986_v12 = vmul.f32 %v2861_v59, %v984_v62 }
 0xd41   :  { %988 = vrot.lane.b32.xlu0 %v986_v12, %s3015_s1 }
 0xdb3   :  { %v989_v5 = vpop.permute.xlu0 %988 }
 0xdb4   :  { %v991_v17 = vadd.f32 %v989_v5, %v981_v16 }
 0xdb6   :  { %2862 = vtanh.f32 %v991_v17  ;;  %v1000_v6 = vsub.f32 %v991_v17, %v979_v63  ;;  %v2582_v63 = vld [vmem:[%s3914_s3 + $0x6] ss:$0 sm:$0xff] }
 0xdb7   :  { %2864 = vpow2.f32 %v2573_v8 }
 0xdb8   :  { %1002 = vrot.lane.b32.xlu0 %v1000_v6, %s3015_s1 }
 0xdc3   :  { %v2863_v7 = vpop.eup %2862 }
 0xdc4   :  { %994 = vrot.lane.b32.xlu1 %v2863_v7, %s3015_s1  ;;  %v2865_v9 = vpop.eup %2864 }
 0xdc5   :  { %v971_v13 = vadd.f32 1.0, %v2865_v9 }
 0xdc7   :  { %2866 = vrcp.f32 %v971_v13  ;;  %v355_v13 = vadd.f32 %v3436_v3, %v3258_v55 }
 0xdd4   :  { %v2867_v19 = vpop.eup %2866 }
 0xe2a   :  { %v1003_v15 = vpop.permute.xlu0 %1002 }
 0xe2b   :  { %v1005_v61 = vmul.f32 %v2574_v60, %v1003_v15  ;;  %v357_v15 = vadd.f32 %v3438_v4, %v3251_v48  ;;  %v2748_v48 = vld [vmem:[%s3918_s7 + $0x30] ss:$8 sps:$4 sm:$0xff]   ;;  %v2750_v4 = vld [vmem:[%s3918_s7 + $0x34] ss:$8 sps:$4 sm:$0xff]  }
 0xe2c   :  { %1291 = vmatprep.subr.bf16.mxu1 %v2750_v4 }
 0xe2d   :  { %v1006_v18 = vadd.f32 %v1005_v61, %v902_v36  ;;  %v351_v36 = vadd.f32 %v3432_v0, %v3258_v55 }
 0xe2f   :  { %1082 = vrot.lane.b32.xlu0 %v1006_v18, %s3015_s1 }
 0xe36   :  { %v995_v22 = vpop.permute.xlu1 %994 }
 0xe37   :  { %v997_v26 = vmul.f32 %v2867_v19, %v995_v22 }
 0xe39   :  { %v1007_v27 = vsub.f32 %v997_v26, %v905_v11  ;;  %v1010_v28 = vmul.f32 %v2574_v60, %v997_v26 }
 0xe3b   :  { %v1008_v30 = vmul.f32 %v2574_v60, %v1007_v27  ;;  %v1019_v31 = vadd.f32 %v2576_v10, %v1010_v28 }
 0xe3d   :  { %v1009_v34 = vadd.f32 %v1008_v30, %v905_v11  ;;  %v1020_v35 = vmax.f32 %v3481_v50, %v1019_v31 }
 0xe3f   :  { %v1021_v38 = vpack.c.bf16 %v1009_v34, %v1009_v34 }
 0xe41   :  { %2577 = vmatmul.mubr.msk.bf16.vlgmr.msra.gmra.mxu1 %vm407_vm8, %v1021_v38  ;;  %v2756_v38 = vld [vmem:[%s3918_s7 + $0x24] ss:$8 sps:$4 sm:$0xff]  }
 0xe42   :  { %1315 = vmatprep.mubr.bf16.mxu1 %v3013_v2  ;;  %1292 = vmatpush1.bf16.msra.mxu1 %v2748_v48 }
 0xe43   :  { %1293 = vmatprep.subr.bf16.mxu1 %v2756_v38 }
 0xea1   :  { %v1083_v1 = vpop.permute.xlu0 %1082 }
 0xf01   :  { %v1059_v32 = vpop.f32.mrf.mxu1 }
 0xf02   :  { %v1066_v41 = vadd.f32 %v1059_v32, %v351_v36  ;;  %v2759_v36 = vld [vmem:[%s3919_s8 + $0x24] ss:$8 sps:$4 sm:$0xff]   ;;  %v2754_v32 = vld [vmem:[%s3918_s7 + $0x20] ss:$8 sps:$4 sm:$0xff]  }
 0xf03   :  { %v1061_v42 = vpop.f32.mrf.mxu1  ;;  %1294 = vmatpush1.bf16.msra.mxu1 %v2754_v32 }
 0xf04   :  { %v1067_v43 = vadd.f32 %v1061_v42, %v353_v39  ;;  %v2578_v50 = vmul.f32 -1.442695, %v1066_v41  ;;  %v2757_v39 = vld [vmem:[%s3919_s8 + $0x20] ss:$8 sps:$4 sm:$0xff]  }
 0xf05   :  { %v1063_v44 = vpop.f32.mrf.mxu1 }
 0xf06   :  { %2868 = vtanh.f32 %v1067_v43  ;;  %v2579_v40 = vmul.f32 -1.442695, %v1067_v43 }
 0xf07   :  { %v1064_v49 = vpop.f32.mrf.mxu1  ;;  %2870 = vpow2.f32 %v2578_v50  ;;  %v2765_v50 = vld [vmem:[%s3919_s8 + $0x14] ss:$8 sps:$4 sm:$0xff]  }
 0xf08   :  { %v2762_v49 = vld [vmem:[%s3918_s7 + $0x14] ss:$8 sps:$4 sm:$0xff]  }
 0xf09   :  { %1295 = vmatprep.subr.bf16.mxu1 %v2762_v49 }
 0xf13   :  { %v2869_v11 = vpop.eup %2868 }
 0xf14   :  { %1087 = vrot.lane.b32.xlu1 %v2869_v11, %s3015_s1  ;;  %v2871_v51 = vpop.eup %2870  ;;  %v2760_v11 = vld [vmem:[%s3918_s7 + $0x10] ss:$8 sps:$4 sm:$0xff]  }
 0xf15   :  { %v1074_v47 = vadd.f32 1.0, %v2871_v51  ;;  %v2763_v51 = vld [vmem:[%s3919_s8 + $0x10] ss:$8 sps:$4 sm:$0xff]   ;;  %1296 = vmatpush1.bf16.msra.mxu1 %v2760_v11 }
 0xf17   :  { %2872 = vrcp.f32 %v1074_v47  ;;  %v2768_v47 = vld [vmem:[%s3918_s7 + $0x4] ss:$8 sps:$4 sm:$0xff]  }
 0xf18   :  { %1297 = vmatprep.subr.bf16.mxu1 %v2768_v47 }
 0xf24   :  { %v2873_v52 = vpop.eup %2872 }
 0xf25   :  { %v1085_v56 = vmul.f32 %v2873_v52, %v1083_v1 }
 0xf86   :  { %v1088_v0 = vpop.permute.xlu1 %1087 }
 0xf87   :  { %v1090_v53 = vmul.f32 %v2873_v52, %v1088_v0  ;;  %v2766_v52 = vld [vmem:[%s3918_s7] ss:$8 sps:$4 sm:$0xff]   ;;  %v2771_v0 = vld [vmem:[%s3919_s8 + $0x4] ss:$8 sps:$4 sm:$0xff]  }
 0xf88   :  { %1298 = vmatpush1.bf16.msra.mxu1 %v2766_v52 }
 0xf89   :  { %1092 = vrot.lane.b32.xlu1 %v1090_v53, %s3015_s1  ;;  %v2769_v53 = vld [vmem:[%s3919_s8] ss:$8 sps:$4 sm:$0xff]  }
 0xffb   :  { %v1093_v57 = vpop.permute.xlu1 %1092 }
 0xffc   :  { %v1095_v29 = vadd.f32 %v1093_v57, %v1085_v56 }
 0xffe   :  { %2874 = vtanh.f32 %v1095_v29  ;;  %v1104_v24 = vsub.f32 %v1095_v29, %v1083_v1  ;;  %v3592_v1 = vld [vmem:[%s3921_s10 + $0x34] ss:$8 sps:$4 sm:$0xff]  }
 0xfff   :  { %2876 = vpow2.f32 %v2579_v40  ;;  %1477 = vmatprep.subr.bf16.mxu1 %v3592_v1  ;;  %v2586_v40 = vld [vmem:[%s3913_s2 + $0x38] sm:$0xff] }
0x1000   :  { %1106 = vrot.lane.b32.xlu1 %v1104_v24, %s3015_s1 }
0x100b   :  { %v2875_v33 = vpop.eup %2874 }
0x100c   :  { %1098 = vrot.lane.b32.xlu0 %v2875_v33, %s3015_s1  ;;  %v2877_v58 = vpop.eup %2876 }
0x100d   :  { %v1075_v14 = vadd.f32 1.0, %v2877_v58 }
0x100f   :  { %2878 = vrcp.f32 %v1075_v14 }
0x101c   :  { %v2879_v59 = vpop.eup %2878 }
0x1072   :  { %v1107_v21 = vpop.permute.xlu1 %1106 }
0x1073   :  { %v1109_v23 = vmul.f32 %v2580_v20, %v1107_v21 }
0x1075   :  { %v1110_v25 = vadd.f32 %v1109_v23, %v1006_v18 }
0x1077   :  { %1186 = vrot.lane.b32.xlu1 %v1110_v25, %s3015_s1 }
0x107e   :  { %v1099_v62 = vpop.permute.xlu0 %1098 }
0x107f   :  { %v1101_v12 = vmul.f32 %v2879_v59, %v1099_v62  ;;  %v3607_v59 = vld [vmem:[%s3921_s10 + $0x30] ss:$8 sps:$4 sm:$0xff]  }
0x1081   :  { %v1111_v16 = vsub.f32 %v1101_v12, %v1009_v34  ;;  %v1114_v5 = vmul.f32 %v2580_v20, %v1101_v12  ;;  %v3612_v12 = vld [vmem:[%s3921_s10 + $0x24] ss:$8 sps:$4 sm:$0xff]  }
0x1083   :  { %v1112_v17 = vmul.f32 %v2580_v20, %v1111_v16  ;;  %v1123_v6 = vadd.f32 %v2582_v63, %v1114_v5  ;;  %v2588_v20 = vld [vmem:[%s3914_s3 + $0x7] ss:$0 sm:$0xff]  ;;  %v3620_v63 = vld [vmem:[%s3921_s10 + $0x20] ss:$8 sps:$4 sm:$0xff]   ;;  %v3627_v16 = vld [vmem:[%s3921_s10 + $0x14] ss:$8 sps:$4 sm:$0xff]  }
0x1084   :  { %v3636_v5 = vld [vmem:[%s3921_s10 + $0x10] ss:$8 sps:$4 sm:$0xff]  }
0x1085   :  { %v1113_v7 = vadd.f32 %v1112_v17, %v1009_v34  ;;  %v3531_v8 = vmax.f32 %v1020_v35, %v1123_v6  ;;  %v2751_v34 = vld [vmem:[%s3919_s8 + $0x30] ss:$8 sps:$4 sm:$0xff]   ;;  %v2753_v35 = vld [vmem:[%s3919_s8 + $0x34] ss:$8 sps:$4 sm:$0xff]   ;;  %v3642_v17 = vld [vmem:[%s3921_s10 + $0x4] ss:$8 sps:$4 sm:$0xff]  }
0x1086   :  { %1380 = vmatprep.subr.bf16.mxu0 %v2753_v35  ;;  %v3650_v6 = vld [vmem:[%s3921_s10] ss:$8 sps:$4 sm:$0xff]   ;;  %s3936_s10 = sld [smem:[#allocation9_spill]]  ;;  %s3019_s8 = smov [#allocation4]  }
0x1087   :  { %v1125_v9 = vpack.c.bf16 %v1113_v7, %v1113_v7  ;;  %v1228_v7 = vld [vmem:[%s3920_s9] sm:$0x3]  ;;  %s3016_s9 = smov 96  }
0x1089   :  { %2583 = vmatmul.mubr.msk.bf16.vlgmr.msra.gmra.mxu0 %vm407_vm8, %v1125_v9  ;;  %v1237_v9 = vrot.slane %v1228_v7, %v197_v46 }
0x108a   :  { %1404 = vmatprep.mubr.bf16.mxu0 %v3013_v2  ;;  %1381 = vmatpush1.bf16.msra.mxu0 %v2751_v34 }
0x108b   :  { %1382 = vmatprep.subr.bf16.mxu0 %v2759_v36 }
0x108e   :  { %1383 = vmatpush1.bf16.msra.mxu0 %v2757_v39 }
0x108f   :  { %1384 = vmatprep.subr.bf16.mxu0 %v2765_v50 }
0x1092   :  { %1385 = vmatpush1.bf16.msra.mxu0 %v2763_v51 }
0x1093   :  { %1386 = vmatprep.subr.bf16.mxu0 %v2771_v0 }
0x1096   :  { %1387 = vmatpush1.bf16.msra.mxu0 %v2769_v53 }
0x1097   :  { %1567 = vmatprep.subr.bf16.mxu0 %v3592_v1 }
0x10e9   :  { %v1187_v41 = vpop.permute.xlu1 %1186 }
0x1149   :  { %v1163_v60 = vpop.f32.mrf.mxu0 }
0x114a   :  { %v1170_v61 = vadd.f32 %v1163_v60, %v355_v13 }
0x114b   :  { %v1165_v18 = vpop.f32.mrf.mxu0 }
0x114c   :  { %v1171_v19 = vadd.f32 %v1165_v18, %v357_v15  ;;  %v2584_v27 = vmul.f32 -1.442695, %v1170_v61 }
0x114d   :  { %v1167_v22 = vpop.f32.mrf.mxu0 }
0x114e   :  { %2880 = vtanh.f32 %v1171_v19  ;;  %v2585_v57 = vmul.f32 -1.442695, %v1171_v19 }
0x114f   :  { %v1168_v26 = vpop.f32.mrf.mxu0  ;;  %2882 = vpow2.f32 %v2584_v27 }
0x115b   :  { %v2881_v10 = vpop.eup %2880 }
0x115c   :  { %1191 = vrot.lane.b32.xlu0 %v2881_v10, %s3015_s1  ;;  %v2883_v28 = vpop.eup %2882 }
0x115d   :  { %v1178_v30 = vadd.f32 1.0, %v2883_v28 }
0x115f   :  { %2884 = vrcp.f32 %v1178_v30 }
0x116c   :  { %v2885_v31 = vpop.eup %2884 }
0x116d   :  { %v1189_v42 = vmul.f32 %v2885_v31, %v1187_v41 }
0x11ce   :  { %v1192_v55 = vpop.permute.xlu0 %1191 }
0x11cf   :  { %v1194_v3 = vmul.f32 %v2885_v31, %v1192_v55 }
0x11d1   :  { %1196 = vrot.lane.b32.xlu0 %v1194_v3, %s3015_s1 }
0x1243   :  { %v1197_v43 = vpop.permute.xlu0 %1196 }
0x1244   :  { %v1199_v44 = vadd.f32 %v1197_v43, %v1189_v42 }
0x1246   :  { %2886 = vtanh.f32 %v1199_v44 }
0x1247   :  { %2888 = vpow2.f32 %v2585_v57 }
0x1253   :  { %v2887_v56 = vpop.eup %2886 }
0x1254   :  { %1202 = vrot.lane.b32.xlu1 %v2887_v56, %s3015_s1  ;;  %v2889_v29 = vpop.eup %2888 }
0x1255   :  { %v1179_v24 = vadd.f32 1.0, %v2889_v29 }
0x1257   :  { %2890 = vrcp.f32 %v1179_v24 }
0x1264   :  { %v2891_v33 = vpop.eup %2890 }
0x12c6   :  { %v1203_v58 = vpop.permute.xlu1 %1202 }
0x12c7   :  { %v1205_v14 = vmul.f32 %v2891_v33, %v1203_v58 }
0x12c9   :  { %v1208_v21 = vmul.f32 %v2586_v40, %v1205_v14 }
0x12cb   :  { %v1217_v23 = vadd.f32 %v2588_v20, %v1208_v21 }
0x12cd   :  { %v1218_v25 = vmax.f32 %v3531_v8, %v1217_v23  ;;  %v1233_v8 = vrot.slane %v1228_v7, %v193_v54 }
0x12cf   :  { %v1219_v62 = vpack.c.bf16 %v1218_v25, %v1218_v25 }
0x12d1   :  { %2597 = vmatmul.mubr.msk.bf16.vlgmr.msra.gmra.mxu1 %vm407_vm8, %v1219_v62  ;;  %2606 = vmatmul.mubr.msk.bf16.vlgmr.msra.gmra.mxu0 %vm407_vm8, %v1219_v62 }
0x12d2   :  { %1478 = vmatpush1.bf16.msra.mxu1 %v3607_v59  ;;  %1501 = vmatprep.mubr.bf16.mxu1 %v3013_v2 }
0x12d3   :  { %1479 = vmatprep.subr.bf16.mxu1 %v3612_v12  ;;  %1568 = vmatpush1.bf16.msra.mxu0 %v3607_v59 }
0x12d4   :  { %1569 = vmatprep.subr.bf16.mxu0 %v3612_v12  ;;  %1591 = vmatprep.mubr.bf16.mxu0 %v3013_v2 }
0x12d6   :  { %1480 = vmatpush1.bf16.msra.mxu1 %v3620_v63 }
0x12d7   :  { %1481 = vmatprep.subr.bf16.mxu1 %v3627_v16  ;;  %1570 = vmatpush1.bf16.msra.mxu0 %v3620_v63 }
0x12d8   :  { %1571 = vmatprep.subr.bf16.mxu0 %v3627_v16 }
0x12da   :  { %1482 = vmatpush1.bf16.msra.mxu1 %v3636_v5 }
0x12db   :  { %1483 = vmatprep.subr.bf16.mxu1 %v3642_v17  ;;  %1572 = vmatpush1.bf16.msra.mxu0 %v3636_v5 }
0x12dc   :  { %1573 = vmatprep.subr.bf16.mxu0 %v3642_v17 }
0x12de   :  { %1484 = vmatpush1.bf16.msra.mxu1 %v3650_v6 }
0x12df   :  { %1574 = vmatpush1.bf16.msra.mxu0 %v3650_v6  ;;  %1669 = vmatprep.subr.bf16.mxu1 %v3592_v1 }
0x12e0   :  { %1770 = vmatprep.subr.bf16.mxu0 %v3592_v1 }
0x12e1   :  { %1502 = vmatmul.mubr.bf16.vlgmr.msra.gmra.mxu1 %v3013_v2 }
0x12e2   :  { %1670 = vmatpush1.bf16.msra.mxu1 %v3607_v59  ;;  %1693 = vmatprep.mubr.bf16.mxu1 %v3013_v2 }
0x12e3   :  { %1671 = vmatprep.subr.bf16.mxu1 %v3612_v12 }
0x12e6   :  { %1672 = vmatpush1.bf16.msra.mxu1 %v3620_v63 }
0x12e7   :  { %1673 = vmatprep.subr.bf16.mxu1 %v3627_v16 }
0x12ea   :  { %1674 = vmatpush1.bf16.msra.mxu1 %v3636_v5 }
0x12eb   :  { %1675 = vmatprep.subr.bf16.mxu1 %v3642_v17 }
0x12ee   :  { %1676 = vmatpush1.bf16.msra.mxu1 %v3650_v6 }
0x12ef   :  { %1867 = vmatprep.subr.bf16.mxu1 %v3592_v1 }
0x1391   :  { %v1317_v13 = vpop.f32.mrf.mxu1  ;;  %v1406_v60 = vpop.f32.mrf.mxu0 }
0x1392   :  { %v1318_v15 = vadd.f32 %v1317_v13, %v1233_v8  ;;  %v1549_v61 = vrot.slane %v1406_v60, 5  ;;  %v1648_v18 = vrot.slane %v1406_v60, 3  ;;  %v1750_v19 = vrot.slane %v1406_v60, 1 }
0x1393   :  { %v1319_v22 = vpop.f32.mrf.mxu1  ;;  %v1408_v26 = vpop.f32.mrf.mxu0  ;;  %v1423_v10 = vrot.slane %v1406_v60, 7 }
0x1394   :  { %v1320_v27 = vadd.f32 %v1319_v22, %v1237_v9  ;;  %v1550_v28 = vrot.slane %v1408_v26, 5  ;;  %v1649_v30 = vrot.slane %v1408_v26, 3  ;;  %v1751_v31 = vrot.slane %v1408_v26, 1 }
0x1395   :  { %v1321_v55 = vpop.f32.mrf.mxu1  ;;  %v1410_v3 = vpop.f32.mrf.mxu0  ;;  %v3676_v48 = vadd.f32 %v1423_v10, %v1318_v15  ;;  %v3678_v54 = vadd.f32 %v1549_v61, %v1318_v15  ;;  %v3680_v45 = vadd.f32 %v1648_v18, %v1318_v15  ;;  %v3686_v34 = vadd.f32 %v1750_v19, %v1318_v15 }
0x1396   :  { %v3682_v46 = vadd.f32 %v1550_v28, %v1320_v27  ;;  %v3684_v4 = vadd.f32 %v1649_v30, %v1320_v27  ;;  %v3688_v35 = vadd.f32 %v1751_v31, %v1320_v27  ;;  %v1424_v32 = vrot.slane %v1408_v26, 7 }
0x1397   :  { %v1322_v38 = vpop.f32.mrf.mxu1  ;;  %v1411_v36 = vpop.f32.mrf.mxu0 }
0x1398   :  { %v3690_v41 = vadd.f32 %v1424_v32, %v1320_v27 }
0x13a1   :  { %v1503_v39 = vpop.f32.mrf.mxu1 }
0x13a2   :  { %v1510_v50 = vadd.f32 %v1503_v39, %v3676_v48 }
0x13a3   :  { %v1505_v42 = vpop.f32.mrf.mxu1 }
0x13a4   :  { %v1511_v43 = vadd.f32 %v1505_v42, %v3690_v41  ;;  %v2615_v51 = vmul.f32 -1.442695, %v1510_v50 }
0x13a5   :  { %v1507_v44 = vpop.f32.mrf.mxu1 }
0x13a6   :  { %2892 = vtanh.f32 %v1511_v43  ;;  %v2616_v40 = vmul.f32 -1.442695, %v1511_v43 }
0x13a7   :  { %v1508_v49 = vpop.f32.mrf.mxu1  ;;  %2894 = vpow2.f32 %v2615_v51 }
0x13b3   :  { %v2893_v11 = vpop.eup %2892 }
0x13b4   :  { %1527 = vrot.lane.b32.xlu0 %v2893_v11, %s3015_s1  ;;  %v2895_v47 = vpop.eup %2894 }
0x13b5   :  { %v1518_v52 = vadd.f32 1.0, %v2895_v47 }
0x13b7   :  { %2896 = vrcp.f32 %v1518_v52 }
0x13c4   :  { %v2897_v0 = vpop.eup %2896 }
0x13c5   :  { %v1525_v57 = vmul.f32 0.0, %v2897_v0 }
0x1426   :  { %v1528_v53 = vpop.permute.xlu0 %1527 }
0x1427   :  { %v1530_v56 = vmul.f32 %v2897_v0, %v1528_v53 }
0x1429   :  { %1532 = vrot.lane.b32.xlu1 %v1530_v56, %s3015_s1 }
0x149b   :  { %v1533_v29 = vpop.permute.xlu1 %1532 }
0x149c   :  { %v1535_v24 = vadd.f32 %v1533_v29, %v1525_v57 }
0x149e   :  { %2898 = vtanh.f32 %v1535_v24  ;;  %v1622_v30 = vrot.slane %v1535_v24, 7 }
0x149f   :  { %2900 = vpow2.f32 %v2616_v40 }
0x14ab   :  { %v2899_v33 = vpop.eup %2898 }
0x14ac   :  { %1538 = vrot.lane.b32.xlu0 %v2899_v33, %s3015_s1  ;;  %v2901_v58 = vpop.eup %2900 }
0x14ad   :  { %v1519_v14 = vadd.f32 1.0, %v2901_v58 }
0x14af   :  { %2902 = vrcp.f32 %v1519_v14 }
0x14bc   :  { %v2903_v20 = vpop.eup %2902 }
0x151e   :  { %v1539_v21 = vpop.permute.xlu0 %1538 }
0x151f   :  { %v3697_v23 = vmul.f32 %v2903_v20, %v1539_v21 }
0x1521   :  { %v1555_v25 = vpack.c.bf16 %v3697_v23, %v3697_v23  ;;  %1543 = vst.msk [vmem:[#allocation2] sm:$0x1] %vm1542_vm7, %v3697_v23 }
0x1523   :  { %2617 = vmatmul.mubr.msk.bf16.vlgmr.msra.gmra.mxu0 %vm407_vm8, %v1555_v25 }
0x1524   :  { %1771 = vmatpush1.bf16.msra.mxu0 %v3607_v59  ;;  %1794 = vmatprep.mubr.bf16.mxu0 %v3013_v2 }
0x1525   :  { %1772 = vmatprep.subr.bf16.mxu0 %v3612_v12 }
0x1528   :  { %1773 = vmatpush1.bf16.msra.mxu0 %v3620_v63 }
0x1529   :  { %1774 = vmatprep.subr.bf16.mxu0 %v3627_v16 }
0x152c   :  { %1775 = vmatpush1.bf16.msra.mxu0 %v3636_v5 }
0x152d   :  { %1776 = vmatprep.subr.bf16.mxu0 %v3642_v17 }
0x1530   :  { %1777 = vmatpush1.bf16.msra.mxu0 %v3650_v6 }
0x1531   :  { %1962 = vmatprep.subr.bf16.mxu0 %v3592_v1 }
0x15e3   :  { %v1593_v62 = vpop.f32.mrf.mxu0 }
0x15e4   :  { %v1602_v61 = vrot.slane %v1593_v62, 7 }
0x15e5   :  { %v1595_v7 = vpop.f32.mrf.mxu0 }
0x15e6   :  { %v1603_v8 = vrot.slane %v1595_v7, 7  ;;  %v1606_v18 = vadd.f32 %v1602_v61, %v3678_v54 }
0x15e7   :  { %v1597_v9 = vpop.f32.mrf.mxu0 }
0x15e8   :  { %v1607_v13 = vadd.f32 %v1603_v8, %v3682_v46  ;;  %v2618_v19 = vmul.f32 -1.442695, %v1606_v18 }
0x15e9   :  { %v1598_v60 = vpop.f32.mrf.mxu0 }
0x15ea   :  { %2904 = vtanh.f32 %v1607_v13  ;;  %v2619_v36 = vmul.f32 -1.442695, %v1607_v13 }
0x15eb   :  { %2906 = vpow2.f32 %v2618_v19 }
0x15f7   :  { %v2905_v15 = vpop.eup %2904 }
0x15f8   :  { %1626 = vrot.lane.b32.xlu1 %v2905_v15, %s3015_s1  ;;  %v2907_v22 = vpop.eup %2906 }
0x15f9   :  { %v1614_v26 = vadd.f32 1.0, %v2907_v22 }
0x15fb   :  { %2908 = vrcp.f32 %v1614_v26 }
0x1608   :  { %v2909_v10 = vpop.eup %2908 }
0x1609   :  { %v1624_v31 = vmul.f32 %v2909_v10, %v1622_v30 }
0x166a   :  { %v1627_v27 = vpop.permute.xlu1 %1626 }
0x166b   :  { %v1629_v28 = vmul.f32 %v2909_v10, %v1627_v27 }
0x166d   :  { %1631 = vrot.lane.b32.xlu0 %v1629_v28, %s3015_s1 }
0x16df   :  { %v1632_v55 = vpop.permute.xlu0 %1631 }
0x16e0   :  { %v1634_v3 = vadd.f32 %v1632_v55, %v1624_v31 }
0x16e2   :  { %2910 = vtanh.f32 %v1634_v3  ;;  %v1724_v21 = vrot.slane %v1634_v3, 7 }
0x16e3   :  { %2912 = vpow2.f32 %v2619_v36 }
0x16ef   :  { %v2911_v38 = vpop.eup %2910 }
0x16f0   :  { %1637 = vrot.lane.b32.xlu1 %v2911_v38, %s3015_s1  ;;  %v2913_v32 = vpop.eup %2912 }
0x16f1   :  { %v1615_v39 = vadd.f32 1.0, %v2913_v32 }
0x16f3   :  { %2914 = vrcp.f32 %v1615_v39 }
0x1700   :  { %v2915_v42 = vpop.eup %2914 }
0x1762   :  { %v1638_v43 = vpop.permute.xlu1 %1637 }
0x1763   :  { %v3718_v44 = vmul.f32 %v2915_v42, %v1638_v43 }
0x1765   :  { %v1654_v49 = vpack.c.bf16 %v3718_v44, %v3718_v44  ;;  %1642 = vst.msk [vmem:[#allocation2] sm:$0x2] %vm1641_vm13, %v3718_v44 }
0x1767   :  { %v1656_v11 = vshrl.u32 %v1654_v49, 16 }
0x1769   :  { %2620 = vmatmul.mubr.msk.bf16.vlgmr.msra.gmra.mxu1 %vm407_vm8, %v1656_v11 }
0x176a   :  { %1868 = vmatpush1.bf16.msra.mxu1 %v3607_v59  ;;  %1891 = vmatprep.mubr.bf16.mxu1 %v3013_v2 }
0x176b   :  { %1869 = vmatprep.subr.bf16.mxu1 %v3612_v12 }
0x176e   :  { %1870 = vmatpush1.bf16.msra.mxu1 %v3620_v63 }
0x176f   :  { %1871 = vmatprep.subr.bf16.mxu1 %v3627_v16 }
0x1772   :  { %1872 = vmatpush1.bf16.msra.mxu1 %v3636_v5 }
0x1773   :  { %1873 = vmatprep.subr.bf16.mxu1 %v3642_v17 }
0x1776   :  { %1874 = vmatpush1.bf16.msra.mxu1 %v3650_v6 }
0x1777   :  { %2059 = vmatprep.subr.bf16.mxu1 %v3592_v1 }
0x1829   :  { %v1695_v50 = vpop.f32.mrf.mxu1 }
0x182a   :  { %v1704_v57 = vrot.slane %v1695_v50, 6 }
0x182b   :  { %v1697_v51 = vpop.f32.mrf.mxu1 }
0x182c   :  { %v1705_v47 = vrot.slane %v1697_v51, 6  ;;  %v1708_v29 = vadd.f32 %v1704_v57, %v3680_v45 }
0x182d   :  { %v1699_v52 = vpop.f32.mrf.mxu1 }
0x182e   :  { %v1709_v0 = vadd.f32 %v1705_v47, %v3684_v4  ;;  %v2621_v24 = vmul.f32 -1.442695, %v1708_v29 }
0x182f   :  { %v1700_v53 = vpop.f32.mrf.mxu1 }
0x1830   :  { %2916 = vtanh.f32 %v1709_v0  ;;  %v2622_v9 = vmul.f32 -1.442695, %v1709_v0 }
0x1831   :  { %2918 = vpow2.f32 %v2621_v24 }
0x183d   :  { %v2917_v56 = vpop.eup %2916 }
0x183e   :  { %1728 = vrot.lane.b32.xlu0 %v2917_v56, %s3015_s1  ;;  %v2919_v33 = vpop.eup %2918 }
0x183f   :  { %v1716_v40 = vadd.f32 1.0, %v2919_v33 }
0x1841   :  { %2920 = vrcp.f32 %v1716_v40 }
0x184e   :  { %v2921_v58 = vpop.eup %2920 }
0x184f   :  { %v1726_v25 = vmul.f32 %v2921_v58, %v1724_v21 }
0x18b0   :  { %v1729_v14 = vpop.permute.xlu0 %1728 }
0x18b1   :  { %v1731_v20 = vmul.f32 %v2921_v58, %v1729_v14 }
0x18b3   :  { %1733 = vrot.lane.b32.xlu1 %v1731_v20, %s3015_s1 }
0x1925   :  { %v1734_v62 = vpop.permute.xlu1 %1733 }
0x1926   :  { %v1736_v7 = vadd.f32 %v1734_v62, %v1726_v25 }
0x1928   :  { %2922 = vtanh.f32 %v1736_v7  ;;  %v1825_v49 = vrot.slane %v1736_v7, 7 }
0x1929   :  { %2924 = vpow2.f32 %v2622_v9 }
0x1935   :  { %v2923_v8 = vpop.eup %2922 }
0x1936   :  { %1739 = vrot.lane.b32.xlu0 %v2923_v8, %s3015_s1  ;;  %v2925_v13 = vpop.eup %2924 }
0x1937   :  { %v1717_v60 = vadd.f32 1.0, %v2925_v13 }
0x1939   :  { %2926 = vrcp.f32 %v1717_v60 }
0x1946   :  { %v2927_v15 = vpop.eup %2926 }
0x19a8   :  { %v1740_v61 = vpop.permute.xlu0 %1739 }
0x19a9   :  { %v3739_v18 = vmul.f32 %v2927_v15, %v1740_v61 }
0x19ab   :  { %v1756_v19 = vpack.c.bf16 %v3739_v18, %v3739_v18  ;;  %1744 = vst.msk [vmem:[#allocation2] sm:$0x4] %vm1743_vm14, %v3739_v18 }
0x19ad   :  { %v1758_v22 = vrot.slane %v1756_v19, 1 }
0x19af   :  { %2623 = vmatmul.mubr.msk.bf16.vlgmr.msra.gmra.mxu0 %vm407_vm8, %v1758_v22 }
0x19b0   :  { %1963 = vmatpush1.bf16.msra.mxu0 %v3607_v59  ;;  %1986 = vmatprep.mubr.bf16.mxu0 %v3013_v2 }
0x19b1   :  { %1964 = vmatprep.subr.bf16.mxu0 %v3612_v12 }
0x19b4   :  { %1965 = vmatpush1.bf16.msra.mxu0 %v3620_v63 }
0x19b5   :  { %1966 = vmatprep.subr.bf16.mxu0 %v3627_v16 }
0x19b8   :  { %1967 = vmatpush1.bf16.msra.mxu0 %v3636_v5 }
0x19b9   :  { %1968 = vmatprep.subr.bf16.mxu0 %v3642_v17 }
0x19bc   :  { %1969 = vmatpush1.bf16.msra.mxu0 %v3650_v6 }
0x19bd   :  { %2154 = vmatprep.subr.bf16.mxu0 %v3592_v1 }
0x1a6f   :  { %v1796_v26 = vpop.f32.mrf.mxu0 }
0x1a70   :  { %v1805_v3 = vrot.slane %v1796_v26, 5 }
0x1a71   :  { %v1798_v10 = vpop.f32.mrf.mxu0 }
0x1a72   :  { %v1806_v27 = vrot.slane %v1798_v10, 5  ;;  %v1809_v38 = vadd.f32 %v1805_v3, %v3686_v34 }
0x1a73   :  { %v1800_v28 = vpop.f32.mrf.mxu0 }
0x1a74   :  { %v1810_v30 = vadd.f32 %v1806_v27, %v3688_v35  ;;  %v2624_v36 = vmul.f32 -1.442695, %v1809_v38 }
0x1a75   :  { %v1801_v31 = vpop.f32.mrf.mxu0 }
0x1a76   :  { %2928 = vtanh.f32 %v1810_v30  ;;  %v2625_v52 = vmul.f32 -1.442695, %v1810_v30 }
0x1a77   :  { %2930 = vpow2.f32 %v2624_v36 }
0x1a83   :  { %v2929_v55 = vpop.eup %2928 }
0x1a84   :  { %1829 = vrot.lane.b32.xlu1 %v2929_v55, %s3015_s1  ;;  %v2931_v32 = vpop.eup %2930 }
0x1a85   :  { %v1817_v39 = vadd.f32 1.0, %v2931_v32 }
0x1a87   :  { %2932 = vrcp.f32 %v1817_v39 }
0x1a94   :  { %v2933_v1 = vpop.eup %2932 }
0x1a95   :  { %v1827_v11 = vmul.f32 %v2933_v1, %v1825_v49 }
0x1af6   :  { %v1830_v42 = vpop.permute.xlu1 %1829 }
0x1af7   :  { %v1832_v43 = vmul.f32 %v2933_v1, %v1830_v42 }
0x1af9   :  { %1834 = vrot.lane.b32.xlu0 %v1832_v43, %s3015_s1 }
0x1b6b   :  { %v1835_v50 = vpop.permute.xlu0 %1834 }
0x1b6c   :  { %v1837_v51 = vadd.f32 %v1835_v50, %v1827_v11 }
0x1b6e   :  { %2934 = vtanh.f32 %v1837_v51  ;;  %v1922_v26 = vrot.slane %v1837_v51, 7 }
0x1b6f   :  { %2936 = vpow2.f32 %v2625_v52 }
0x1b7b   :  { %v2935_v47 = vpop.eup %2934 }
0x1b7c   :  { %1840 = vrot.lane.b32.xlu1 %v2935_v47, %s3015_s1  ;;  %v2937_v0 = vpop.eup %2936 }
0x1b7d   :  { %v1818_v53 = vadd.f32 1.0, %v2937_v0 }
0x1b7f   :  { %2938 = vrcp.f32 %v1818_v53 }
0x1b8c   :  { %v2939_v56 = vpop.eup %2938 }
0x1bee   :  { %v1841_v57 = vpop.permute.xlu1 %1840 }
0x1bef   :  { %v3760_v29 = vmul.f32 %v2939_v56, %v1841_v57 }
0x1bf1   :  { %v1851_v24 = vpack.c.bf16 %v3760_v29, %v3760_v29  ;;  %1845 = vst.msk [vmem:[#allocation2] sm:$0x8] %vm1844_vm15, %v3760_v29 }
0x1bf3   :  { %v1853_v33 = vshrl.u32 %v1851_v24, 16 }
0x1bf5   :  { %v1855_v40 = vrot.slane %v1853_v33, 1 }
0x1bf7   :  { %2626 = vmatmul.mubr.msk.bf16.vlgmr.msra.gmra.mxu1 %vm407_vm8, %v1855_v40 }
0x1bf8   :  { %2060 = vmatpush1.bf16.msra.mxu1 %v3607_v59  ;;  %2083 = vmatprep.mubr.bf16.mxu1 %v3013_v2 }
0x1bf9   :  { %2061 = vmatprep.subr.bf16.mxu1 %v3612_v12 }
0x1bfc   :  { %2062 = vmatpush1.bf16.msra.mxu1 %v3620_v63 }
0x1bfd   :  { %2063 = vmatprep.subr.bf16.mxu1 %v3627_v16 }
0x1c00   :  { %2064 = vmatpush1.bf16.msra.mxu1 %v3636_v5 }
0x1c01   :  { %2065 = vmatprep.subr.bf16.mxu1 %v3642_v17 }
0x1c04   :  { %2066 = vmatpush1.bf16.msra.mxu1 %v3650_v6 }
0x1c05   :  { %2671 = vmatprep.subr.bf16.mxu1 %v3014_v37 }
0x1cb7   :  { %v1893_v58 = vpop.f32.mrf.mxu1 }
0x1cb8   :  { %v1902_v8 = vrot.slane %v1893_v58, 4 }
0x1cb9   :  { %v1895_v14 = vpop.f32.mrf.mxu1 }
0x1cba   :  { %v1903_v20 = vrot.slane %v1895_v14, 4  ;;  %v1906_v9 = vadd.f32 %v1902_v8, %v3676_v48 }
0x1cbb   :  { %v1897_v21 = vpop.f32.mrf.mxu1 }
0x1cbc   :  { %v1907_v25 = vadd.f32 %v1903_v20, %v3690_v41  ;;  %v2627_v13 = vmul.f32 -1.442695, %v1906_v9 }
0x1cbd   :  { %v1898_v62 = vpop.f32.mrf.mxu1 }
0x1cbe   :  { %2940 = vtanh.f32 %v1907_v25  ;;  %v2628_v30 = vmul.f32 -1.442695, %v1907_v25 }
0x1cbf   :  { %2942 = vpow2.f32 %v2627_v13 }
0x1ccb   :  { %v2941_v7 = vpop.eup %2940 }
0x1ccc   :  { %1926 = vrot.lane.b32.xlu0 %v2941_v7, %s3015_s1  ;;  %v2943_v60 = vpop.eup %2942 }
0x1ccd   :  { %v1914_v15 = vadd.f32 1.0, %v2943_v60 }
0x1ccf   :  { %2944 = vrcp.f32 %v1914_v15 }
0x1cdc   :  { %v2945_v61 = vpop.eup %2944 }
0x1cdd   :  { %v1924_v41 = vmul.f32 %v2945_v61, %v1922_v26 }
0x1d3e   :  { %v1927_v19 = vpop.permute.xlu0 %1926 }
0x1d3f   :  { %v1929_v22 = vmul.f32 %v2945_v61, %v1927_v19 }
0x1d41   :  { %1931 = vrot.lane.b32.xlu1 %v1929_v22, %s3015_s1 }
0x1db3   :  { %v1932_v10 = vpop.permute.xlu1 %1931 }
0x1db4   :  { %v1934_v27 = vadd.f32 %v1932_v10, %v1924_v41 }
0x1db6   :  { %2946 = vtanh.f32 %v1934_v27  ;;  %v2017_v51 = vrot.slane %v1934_v27, 7 }
0x1db7   :  { %2948 = vpow2.f32 %v2628_v30 }
0x1dc3   :  { %v2947_v28 = vpop.eup %2946 }
0x1dc4   :  { %1937 = vrot.lane.b32.xlu0 %v2947_v28, %s3015_s1  ;;  %v2949_v48 = vpop.eup %2948 }
0x1dc5   :  { %v1915_v31 = vadd.f32 1.0, %v2949_v48 }
0x1dc7   :  { %2950 = vrcp.f32 %v1915_v31 }
0x1dd4   :  { %v2951_v55 = vpop.eup %2950 }
0x1e36   :  { %v1938_v3 = vpop.permute.xlu0 %1937 }
0x1e37   :  { %v3781_v38 = vmul.f32 %v2951_v55, %v1938_v3 }
0x1e39   :  { %v1948_v36 = vpack.c.bf16 %v3781_v38, %v3781_v38  ;;  %1942 = vst.msk [vmem:[#allocation2] sm:$0x10] %vm1941_vm0, %v3781_v38 }
0x1e3b   :  { %v1950_v32 = vrot.slane %v1948_v36, 2 }
0x1e3d   :  { %2629 = vmatmul.mubr.msk.bf16.vlgmr.msra.gmra.mxu0 %vm407_vm8, %v1950_v32 }
0x1e3e   :  { %2155 = vmatpush1.bf16.msra.mxu0 %v3607_v59  ;;  %2178 = vmatprep.mubr.bf16.mxu0 %v3013_v2 }
0x1e3f   :  { %2156 = vmatprep.subr.bf16.mxu0 %v3612_v12 }
0x1e42   :  { %2157 = vmatpush1.bf16.msra.mxu0 %v3620_v63 }
0x1e43   :  { %2158 = vmatprep.subr.bf16.mxu0 %v3627_v16 }
0x1e46   :  { %2159 = vmatpush1.bf16.msra.mxu0 %v3636_v5 }
0x1e47   :  { %2160 = vmatprep.subr.bf16.mxu0 %v3642_v17 }
0x1e4a   :  { %2161 = vmatpush1.bf16.msra.mxu0 %v3650_v6 }
0x1e4b   :  { %2683 = vmatprep.subr.bf16.mxu0 %v3014_v37 }
0x1efd   :  { %v1988_v39 = vpop.f32.mrf.mxu0 }
0x1efe   :  { %v1997_v63 = vrot.slane %v1988_v39, 3 }
0x1eff   :  { %v1990_v1 = vpop.f32.mrf.mxu0 }
0x1f00   :  { %v1998_v42 = vrot.slane %v1990_v1, 3  ;;  %v2001_v16 = vadd.f32 %v1997_v63, %v3678_v54 }
0x1f01   :  { %v1992_v59 = vpop.f32.mrf.mxu0 }
0x1f02   :  { %v2002_v2 = vadd.f32 %v1998_v42, %v3682_v46  ;;  %v2630_v5 = vmul.f32 -1.442695, %v2001_v16 }
0x1f03   :  { %v1993_v43 = vpop.f32.mrf.mxu0 }
0x1f04   :  { %2952 = vtanh.f32 %v2002_v2  ;;  %v2631_v53 = vmul.f32 -1.442695, %v2002_v2 }
0x1f05   :  { %2954 = vpow2.f32 %v2630_v5 }
0x1f11   :  { %v2953_v12 = vpop.eup %2952 }
0x1f12   :  { %2021 = vrot.lane.b32.xlu1 %v2953_v12, %s3015_s1  ;;  %v2955_v17 = vpop.eup %2954 }
0x1f13   :  { %v2009_v6 = vadd.f32 1.0, %v2955_v17 }
0x1f15   :  { %2956 = vrcp.f32 %v2009_v6 }
0x1f22   :  { %v2957_v49 = vpop.eup %2956 }
0x1f23   :  { %v2019_v46 = vmul.f32 %v2957_v49, %v2017_v51 }
0x1f84   :  { %v2022_v11 = vpop.permute.xlu1 %2021 }
0x1f85   :  { %v2024_v50 = vmul.f32 %v2957_v49, %v2022_v11 }
0x1f87   :  { %2026 = vrot.lane.b32.xlu0 %v2024_v50, %s3015_s1 }
0x1ff9   :  { %v2027_v47 = vpop.permute.xlu0 %2026 }
0x1ffa   :  { %v2029_v52 = vadd.f32 %v2027_v47, %v2019_v46 }
0x1ffc   :  { %2958 = vtanh.f32 %v2029_v52  ;;  %v2114_v10 = vrot.slane %v2029_v52, 7 }
0x1ffd   :  { %2960 = vpow2.f32 %v2631_v53 }
0x2009   :  { %v2959_v0 = vpop.eup %2958 }
0x200a   :  { %2032 = vrot.lane.b32.xlu1 %v2959_v0, %s3015_s1  ;;  %v2961_v54 = vpop.eup %2960 }
0x200b   :  { %v2010_v56 = vadd.f32 1.0, %v2961_v54 }
0x200d   :  { %2962 = vrcp.f32 %v2010_v56 }
0x201a   :  { %v2963_v57 = vpop.eup %2962 }
0x207c   :  { %v2033_v24 = vpop.permute.xlu1 %2032 }
0x207d   :  { %v3802_v33 = vmul.f32 %v2963_v57, %v2033_v24  ;;  %v2784_v57 = vld [vmem:[%s3922_s11 + $0x18] sm:$0xff]  }
0x207f   :  { %v2043_v40 = vpack.c.bf16 %v3802_v33, %v3802_v33  ;;  %2037 = vst.msk [vmem:[#allocation2] sm:$0x20] %vm2036_vm1, %v3802_v33 }
0x2081   :  { %v2045_v58 = vshrl.u32 %v2043_v40, 16 }
0x2083   :  { %v2047_v14 = vrot.slane %v2045_v58, 2  ;;  %v2786_v58 = vld [vmem:[%s3922_s11 + $0x8] sm:$0xff]  }
0x2085   :  { %2632 = vmatmul.mubr.msk.bf16.vlgmr.msra.gmra.mxu1 %vm407_vm8, %v2047_v14 }
0x2086   :  { %2672 = vmatpush3.bf16.msra.mxu1 %v2784_v57  ;;  %2679 = vmatprep.mubr.msk.bf16.mxu1 %vm3017_vm4, %v3014_v37 }
0x2087   :  { %2673 = vmatprep.subr.bf16.mxu1 %v3014_v37 }
0x2145   :  { %v2085_v20 = vpop.f32.mrf.mxu1 }
0x2146   :  { %v2094_v13 = vrot.slane %v2085_v20, 2 }
0x2147   :  { %v2087_v21 = vpop.f32.mrf.mxu1 }
0x2148   :  { %v2095_v25 = vrot.slane %v2087_v21, 2  ;;  %v2098_v60 = vadd.f32 %v2094_v13, %v3680_v45  ;;  %v2787_v21 = vld [vmem:[%s3922_s11] sm:$0xff]  }
0x2149   :  { %v2089_v62 = vpop.f32.mrf.mxu1 }
0x214a   :  { %v2099_v7 = vadd.f32 %v2095_v25, %v3684_v4  ;;  %v2633_v15 = vmul.f32 -1.442695, %v2098_v60  ;;  %v2788_v25 = vld [vmem:[%s3924_s13 + $0x18] sm:$0xff]  }
0x214b   :  { %v2090_v8 = vpop.f32.mrf.mxu1 }
0x214c   :  { %2964 = vtanh.f32 %v2099_v7  ;;  %v2634_v48 = vmul.f32 -1.442695, %v2099_v7  ;;  %v2789_v7 = vld [vmem:[%s3924_s13 + $0x10] sm:$0xff]  }
0x214d   :  { %2966 = vpow2.f32 %v2633_v15 }
0x2159   :  { %v2965_v9 = vpop.eup %2964 }
0x215a   :  { %2118 = vrot.lane.b32.xlu0 %v2965_v9, %s3015_s1  ;;  %v2967_v61 = vpop.eup %2966 }
0x215b   :  { %v2106_v19 = vadd.f32 1.0, %v2967_v61  ;;  %v2790_v61 = vld [vmem:[%s3924_s13 + $0x8] sm:$0xff]  }
0x215d   :  { %2968 = vrcp.f32 %v2106_v19  ;;  %v2791_v19 = vld [vmem:[%s3924_s13] sm:$0xff]  }
0x216a   :  { %v2969_v22 = vpop.eup %2968 }
0x216b   :  { %v2116_v4 = vmul.f32 %v2969_v22, %v2114_v10 }
0x21cc   :  { %v2119_v26 = vpop.permute.xlu0 %2118 }
0x21cd   :  { %v2121_v41 = vmul.f32 %v2969_v22, %v2119_v26  ;;  %v2792_v22 = vld [vmem:[%s3926_s15 + $0x18] sm:$0xff]   ;;  %v2793_v26 = vld [vmem:[%s3926_s15 + $0x10] sm:$0xff]  }
0x21cf   :  { %2123 = vrot.lane.b32.xlu1 %v2121_v41, %s3015_s1  ;;  %v2638_v41 = vld [vmem:[%s3936_s10] ss:$0 sm:$0xff] }
0x2241   :  { %v2124_v27 = vpop.permute.xlu1 %2123 }
0x2242   :  { %v2126_v28 = vadd.f32 %v2124_v27, %v2116_v4 }
0x2244   :  { %2970 = vtanh.f32 %v2126_v28 }
0x2245   :  { %2972 = vpow2.f32 %v2634_v48 }
0x2251   :  { %v2971_v30 = vpop.eup %2970 }
0x2252   :  { %2129 = vrot.lane.b32.xlu0 %v2971_v30, %s3015_s1  ;;  %v2973_v45 = vpop.eup %2972 }
0x2253   :  { %v2107_v31 = vadd.f32 1.0, %v2973_v45 }
0x2255   :  { %2974 = vrcp.f32 %v2107_v31  ;;  %v2794_v31 = vld [vmem:[%s3926_s15 + $0x8] sm:$0xff]  }
0x2262   :  { %v2975_v55 = vpop.eup %2974 }
0x22c4   :  { %v2130_v3 = vpop.permute.xlu0 %2129 }
0x22c5   :  { %v2132_v36 = vmul.f32 %v2975_v55, %v2130_v3  ;;  %v2795_v55 = vld [vmem:[%s3926_s15] sm:$0xff]   ;;  %s2501_s15 = sshll.u32 %s3019_s8, 4  ;;  %s2502_s15 = int_to_ptr.vmem [resolvable:$true] %s2501_s15 }
0x22c6   :  { %v2644_v3 = vld [vmem:[%s3925_s14] ss:$0 sm:$0xff]  ;;  %s2991_s14 = scalar_lea.vmem %s2502_s15, 128  ;;  %p2996_p1 = scmp.lt.s32.totalorder %s2502_s15, %s2502_s15 }
0x22c7   :  { %v2140_v32 = vpack.c.bf16 %v2132_v36, %v2132_v36  ;;  %2134 = vst.msk [vmem:[#allocation2] sm:$0x40] %vm2133_vm2, %v2132_v36  ;;  %p2992_p0 = scmp.ne.s32.totalorder %s2502_s15, %s2991_s14  ;;  %p2997_p2 = scmp.lt.s32.totalorder %s2991_s14, %s2991_s14 }
0x22c9   :  { %v2142_v39 = vrot.slane %v2140_v32, 3  ;;  %p2998_p3 = por %p2997_p2, %p2996_p1 }
0x22cb   :  { %2635 = vmatmul.mubr.msk.bf16.vlgmr.msra.gmra.mxu0 %vm407_vm8, %v2142_v39  ;;  %p2999_p4 = pnand %p2998_p3, %p2992_p0 }
0x22cc   :  { %2691 = vmatprep.mubr.msk.bf16.mxu0 %vm3017_vm4, %v3014_v37  ;;  %2684 = vmatpush3.bf16.msra.mxu0 %v2788_v25 }
0x22cd   :  { %2685 = vmatprep.subr.bf16.mxu0 %v3014_v37 }
0x22d0   :  { %2686 = vmatpush3.bf16.msra.mxu0 %v2789_v7 }
0x22d1   :  { %2687 = vmatprep.subr.bf16.mxu0 %v3014_v37 }
0x22d4   :  { %2688 = vmatpush3.bf16.msra.mxu0 %v2790_v61 }
0x22d5   :  { %2689 = vmatprep.subr.bf16.mxu0 %v3014_v37 }
0x22d8   :  { %2690 = vmatpush3.bf16.msra.mxu0 %v2791_v19 }
0x238b   :  { %v2180_v1 = vpop.f32.mrf.mxu0 }
0x238c   :  { %v2189_v16 = vrot.slane %v2180_v1, 1 }
0x238d   :  { %v2182_v42 = vpop.f32.mrf.mxu0 }
0x238e   :  { %v2190_v59 = vrot.slane %v2182_v42, 1  ;;  %v2193_v5 = vadd.f32 %v2189_v16, %v3686_v34  ;;  %v2209_v34 = vrot.slane %v2126_v28, 7 }
0x238f   :  { %v2184_v2 = vpop.f32.mrf.mxu0 }
0x2390   :  { %v2194_v43 = vadd.f32 %v2190_v59, %v3688_v35  ;;  %v2636_v17 = vmul.f32 -1.442695, %v2193_v5 }
0x2391   :  { %v2185_v12 = vpop.f32.mrf.mxu0 }
0x2392   :  { %2976 = vtanh.f32 %v2194_v43 }
0x2393   :  { %2978 = vpow2.f32 %v2636_v17 }
0x239f   :  { %v2977_v63 = vpop.eup %2976 }
0x23a0   :  { %2213 = vrot.lane.b32.xlu1 %v2977_v63, %s3015_s1  ;;  %v2979_v6 = vpop.eup %2978 }
0x23a1   :  { %v2201_v49 = vadd.f32 1.0, %v2979_v6 }
0x23a3   :  { %2980 = vrcp.f32 %v2201_v49 }
0x23b0   :  { %v2981_v11 = vpop.eup %2980 }
0x23b1   :  { %v2211_v35 = vmul.f32 %v2981_v11, %v2209_v34 }
0x2412   :  { %v2214_v50 = vpop.permute.xlu1 %2213 }
0x2413   :  { %v2216_v51 = vmul.f32 %v2981_v11, %v2214_v50 }
0x2415   :  { %2218 = vrot.lane.b32.xlu0 %v2216_v51, %s3015_s1 }
0x2419   :  { %1545 = vrot.lane.b32.xlu0 %v3697_v23, %s3016_s9 }
0x241d   :  { %1746 = vrot.lane.b32.xlu0 %v3739_v18, %s3016_s9 }
0x2421   :  { %1944 = vrot.lane.b32.xlu0 %v3781_v38, %s3016_s9  ;;  %v2637_v38 = vmul.f32 -1.442695, %v2194_v43 }
0x2425   :  { %2136 = vrot.lane.b32.xlu0 %v2132_v36, %s3016_s9 }
0x2487   :  { %v2219_v46 = vpop.permute.xlu0 %2218 }
0x2488   :  { %v2221_v47 = vadd.f32 %v2219_v46, %v2211_v35 }
0x248a   :  { %2982 = vtanh.f32 %v2221_v47 }
0x248b   :  { %v1546_v52 = vpop.permute.xlu0 %1545  ;;  %2984 = vpow2.f32 %v2637_v38 }
0x248c   :  { %1548 = vst.msk [vmem:[#allocation3 + $0x7] sm:$0x1] %vm1542_vm7, %v1546_v52 }
0x248f   :  { %v1747_v0 = vpop.permute.xlu0 %1746 }
0x2490   :  { %1749 = vst.msk [vmem:[#allocation3 + $0x3] sm:$0x4] %vm1743_vm14, %v1747_v0 }
0x2493   :  { %v1945_v23 = vpop.permute.xlu0 %1944 }
0x2494   :  { %1947 = vst.msk [vmem:[#allocation3 - $0x1] sm:$0x10] %vm1941_vm0, %v1945_v23 }
0x2497   :  { %v2983_v18 = vpop.eup %2982  ;;  %v2137_v53 = vpop.permute.xlu0 %2136 }
0x2498   :  { %2139 = vst.msk [vmem:[#allocation3 - $0x5] sm:$0x40] %vm2133_vm2, %v2137_v53  ;;  %2224 = vrot.lane.b32.xlu1 %v2983_v18, %s3015_s1  ;;  %v2985_v54 = vpop.eup %2984 }
0x2499   :  { %v2202_v56 = vadd.f32 1.0, %v2985_v54 }
0x249b   :  { %2986 = vrcp.f32 %v2202_v56 }
0x249c   :  { %1644 = vrot.lane.b32.xlu1 %v3718_v44, %s3016_s9  ;;  %v2785_v44 = vld [vmem:[%s3922_s11 + $0x10] sm:$0xff]  }
0x249d   :  { %2674 = vmatpush3.bf16.msra.mxu1 %v2785_v44 }
0x249e   :  { %2675 = vmatprep.subr.bf16.mxu1 %v3014_v37 }
0x24a0   :  { %1847 = vrot.lane.b32.xlu1 %v3760_v29, %s3016_s9 }
0x24a1   :  { %2676 = vmatpush3.bf16.msra.mxu1 %v2786_v58 }
0x24a2   :  { %2677 = vmatprep.subr.bf16.mxu1 %v3014_v37 }
0x24a4   :  { %2039 = vrot.lane.b32.xlu1 %v3802_v33, %s3016_s9 }
0x24a5   :  { %2678 = vmatpush3.bf16.msra.mxu1 %v2787_v21 }
0x24a6   :  { %2695 = vmatprep.subr.bf16.mxu1 %v3014_v37 }
0x24a8   :  { %v2987_v24 = vpop.eup %2986 }
0x250a   :  { %v2225_v40 = vpop.permute.xlu1 %2224 }
0x250b   :  { %v2227_v29 = vmul.f32 %v2987_v24, %v2225_v40 }
0x250d   :  { %2231 = vrot.lane.b32.xlu1 %v2227_v29, %s3016_s9  ;;  %2229 = vst.msk [vmem:[#allocation2] sm:$0x80] %vm2228_vm3, %v2227_v29 }
0x250e   :  { %v1645_v33 = vpop.permute.xlu1 %1644 }
0x250f   :  { %1647 = vst.msk [vmem:[#allocation3 + $0x5] sm:$0x2] %vm1641_vm13, %v1645_v33 }
0x2512   :  { %v1848_v14 = vpop.permute.xlu1 %1847 }
0x2513   :  { %1850 = vst.msk [vmem:[#allocation3 + $0x1] sm:$0x8] %vm1844_vm15, %v1848_v14 }
0x2514   :  { %v2235_v13 = vld [vmem:[#allocation2] sm:$0xff] }
0x2516   :  { %v2040_v20 = vpop.permute.xlu1 %2039 }
0x2517   :  { %2042 = vst.msk [vmem:[#allocation3 - $0x3] sm:$0x20] %vm2036_vm1, %v2040_v20 }
0x257f   :  { %v2232_v62 = vpop.permute.xlu1 %2231 }
0x2580   :  { %2234 = vst.msk [vmem:[#allocation3 - $0x7] sm:$0x80] %vm2228_vm3, %v2232_v62 }
0x2587   :  { %v2236_v8 = vld [vmem:[#allocation3] sm:$0xff] }
0x2588   :  { %2238 = vrot.lane.b32.xlu0 %v2236_v8, %s3018_s30 }
0x25fa   :  { %v2239_v9 = vpop.permute.xlu0 %2238 }
0x25fb   :  { %v2242_v60 = vsel %vm2241_vm5, %v2235_v13, %v2239_v9 }
0x25fc   :  { %v2243_v15 = vpack.c.bf16 %v2242_v60, %v2242_v60 }
0x25fe   :  { %2680 = vmatmul.mubr.msk.bf16.vlgmr.msra.gmra.mxu1 %vm407_vm8, %v2243_v15 }
0x25ff   :  { %2703 = vmatprep.mubr.msk.bf16.mxu1 %vm3017_vm4, %v3014_v37  ;;  %2696 = vmatpush3.bf16.msra.mxu1 %v2792_v22 }
0x2600   :  { %2697 = vmatprep.subr.bf16.mxu1 %v3014_v37 }
0x2603   :  { %2698 = vmatpush3.bf16.msra.mxu1 %v2793_v26 }
0x2604   :  { %2699 = vmatprep.subr.bf16.mxu1 %v3014_v37 }
0x2607   :  { %2700 = vmatpush3.bf16.msra.mxu1 %v2794_v31 }
0x2608   :  { %2701 = vmatprep.subr.bf16.mxu1 %v3014_v37  ;;  %v2650_v37 = vld [vmem:[%s3927_s16] ss:$0 sm:$0xff] }
0x260b   :  { %2702 = vmatpush3.bf16.msra.mxu1 %v2795_v55 }
0x26be   :  { %v2320_v10 = vpop.f32.mrf.mxu1 }
0x26bf   :  { %v2321_v4 = vadd.f32 %v2638_v41, %v2320_v10 }
0x26c0   :  { %v2681_v27 = vpop.f32.mrf.mxu1 }
0x26c1   :  { %v2326_v28 = vmax.f32 %v2321_v4, 0.0 }
0x26c2   :  { %v2323_v30 = vpop.f32.mrf.mxu1 }
0x26c3   :  { %v2327_v48 = vpack.c.bf16 %v2326_v28, %v2326_v28 }
0x26c4   :  { %v2682_v45 = vpop.f32.mrf.mxu1 }
0x26c5   :  { %2692 = vmatmul.mubr.msk.bf16.vlgmr.msra.gmra.mxu0 %vm407_vm8, %v2327_v48 }
0x2785   :  { %v2404_v36 = vpop.f32.mrf.mxu0 }
0x2786   :  { %v2405_v32 = vadd.f32 %v2644_v3, %v2404_v36 }
0x2787   :  { %v2693_v39 = vpop.f32.mrf.mxu0 }
0x2788   :  { %v2410_v1 = vmax.f32 %v2405_v32, 0.0 }
0x2789   :  { %v2407_v42 = vpop.f32.mrf.mxu0 }
0x278a   :  { %v2411_v59 = vpack.c.bf16 %v2410_v1, %v2410_v1 }
0x278b   :  { %v2694_v2 = vpop.f32.mrf.mxu0 }
0x278c   :  { %2704 = vmatmul.mubr.msk.bf16.vlgmr.msra.gmra.mxu1 %vm407_vm8, %v2411_v59 }
0x284c   :  { %v2488_v43 = vpop.f32.mrf.mxu1 }
0x284d   :  { %v2489_v12 = vadd.f32 %v2650_v37, %v2488_v43 }
0x284e   :  { %v2705_v63 = vpop.f32.mrf.mxu1 }
0x284f   :  { %2494 = vst [vmem:[#allocation4] sm:$0xff] %v2489_v12 }
0x2850   :  { %v2491_v16 = vpop.f32.mrf.mxu1 }
0x2851   :  { %3002 = shalt.err (!%p2999_p4)
}
0x2852   :  { %2504 = dma.vmem_to_hbm [thread:$0]  %s2502_s15, 128, %s3928_s17, [#allocation5]   ;;  %v2706_v5 = vpop.f32.mrf.mxu1 }
0x2853   :  { %3011 = dma.done.wait [#allocation5], 128  }
0x2854   :  { %3012 = vsyncadd [#allocation5], 4294967168 }
0x2855   :  { %2508 = vsyncpa [#allocation5], 1 }

</bundles_post_ra>
